<compile_context>
chip_gen: v7x
topology: tpu7x:2x2x1
jax: 0.10.0
libtpu: 0.0.40
codegen_flags: <defaults>
</compile_context>

<pallas_src>
import functools

import jax
import jax.numpy as jnp
from jax.experimental import pallas as pl
from jax.experimental.pallas import tpu as pltpu

LANE = 128
_VMEM_LIMIT = 48 * 1024 * 1024          # raised scoped-VMEM limit, safe on all chips
_FUSED_VMEM_BUDGET = 16 * 1024 * 1024   # threshold for the single-kernel path


def _round_up(x, m):
    return ((x + m - 1) // m) * m


def _pad_to(x, shape):
    return jnp.pad(x, [(0, t - s) for s, t in zip(x.shape, shape)])


def _pick_tile(n_p, cap):
    """Largest power-of-two multiple of 256 <= cap that divides n_p."""
    t = 256
    while t * 2 <= cap and n_p % (t * 2) == 0:
        t *= 2
    return t


def _masked_log_softmax(y, nclass):
    """Row-wise log_softmax over the first `nclass` lanes (rest are padding)."""
    col = jax.lax.broadcasted_iota(jnp.int32, y.shape, 1)
    valid = col < nclass
    neg = jnp.float32(-1e30)
    masked = jnp.where(valid, y, neg)
    m = jnp.max(masked, axis=-1, keepdims=True)
    e = jnp.where(valid, jnp.exp(masked - m), 0.0)
    lse = jnp.log(jnp.sum(e, axis=-1, keepdims=True))
    return masked - m - lse


# ---------------------------------------------------------------------------
# Fast path: whole 2-layer forward in ONE kernel, A resident in VMEM.
# ---------------------------------------------------------------------------
def _fused_kernel(a_ref, x_ref, w1_ref, b1_ref, w2_ref, b2_ref, o_ref, *, nclass):
    s1 = jnp.dot(x_ref[...], w1_ref[...],
                 preferred_element_type=jnp.float32).astype(jnp.bfloat16)
    h = jnp.maximum(
        jnp.dot(a_ref[...], s1, preferred_element_type=jnp.float32) + b1_ref[...],
        0.0).astype(jnp.bfloat16)
    # dropout -> identity in eval mode
    s2 = jnp.dot(h, w2_ref[...],
                 preferred_element_type=jnp.float32).astype(jnp.bfloat16)
    y = jnp.dot(a_ref[...], s2, preferred_element_type=jnp.float32) + b2_ref[...]
    o_ref[...] = _masked_log_softmax(y, nclass).astype(o_ref.dtype)


def _fused_vmem_bytes(n_p, f_p, h_p, c_p):
    dbl = 2  # double-buffered pipelining allocations
    a = n_p * n_p * 2 * dbl
    x = n_p * f_p * 2 * dbl
    w = (f_p * h_p + h_p * c_p) * 2 * dbl
    out = n_p * c_p * 4 * dbl
    temps = n_p * (h_p * 10 + c_p * 10)  # bf16 + f32 intermediates (s1, h, s2, y)
    return a + x + w + out + temps


def fused_forward(a_p, x_p, w1_p, b1_p, w2_p, b2_p, *, nclass):
    n_p, f_p = x_p.shape
    h_p = w1_p.shape[1]
    c_p = w2_p.shape[1]
    kernel = functools.partial(_fused_kernel, nclass=nclass)
    flops = 2 * n_p * f_p * h_p + 2 * n_p * n_p * h_p \
        + 2 * n_p * h_p * c_p + 2 * n_p * n_p * c_p
    bytes_accessed = (a_p.size * 2 + x_p.size * 2 + w1_p.size * 2
                      + w2_p.size * 2 + n_p * c_p * 4)
    return pl.pallas_call(
        kernel,
        out_shape=jax.ShapeDtypeStruct((n_p, c_p), jnp.float32),
        grid_spec=pltpu.PrefetchScalarGridSpec(
            num_scalar_prefetch=0,
            grid=(1,),
            in_specs=[
                pl.BlockSpec((n_p, n_p), lambda i: (0, 0)),   # A (resident)
                pl.BlockSpec((n_p, f_p), lambda i: (0, 0)),   # X
                pl.BlockSpec((f_p, h_p), lambda i: (0, 0)),   # W1
                pl.BlockSpec((1, h_p), lambda i: (0, 0)),     # b1
                pl.BlockSpec((h_p, c_p), lambda i: (0, 0)),   # W2
                pl.BlockSpec((1, c_p), lambda i: (0, 0)),     # b2
            ],
            out_specs=pl.BlockSpec((n_p, c_p), lambda i: (0, 0)),
        ),
        compiler_params=pltpu.CompilerParams(
            dimension_semantics=("arbitrary",),
            vmem_limit_bytes=_VMEM_LIMIT),
        cost_estimate=pl.CostEstimate(
            flops=flops, transcendentals=n_p * c_p, bytes_accessed=bytes_accessed),
    )(a_p, x_p, w1_p, b1_p, w2_p, b2_p)


# ---------------------------------------------------------------------------
# Streaming path kernel 1: support matmul  S1 = X @ W1  (row-tiled)
# ---------------------------------------------------------------------------
def _support_kernel(x_ref, w_ref, o_ref):
    o_ref[...] = jnp.dot(
        x_ref[...], w_ref[...], preferred_element_type=jnp.float32
    ).astype(o_ref.dtype)


def support_matmul(x, w, *, tm):
    n, f = x.shape
    h = w.shape[1]
    flops = 2 * n * f * h
    bytes_accessed = x.size * 2 + w.size * 2 + n * h * 2
    return pl.pallas_call(
        _support_kernel,
        out_shape=jax.ShapeDtypeStruct((n, h), jnp.bfloat16),
        grid_spec=pltpu.PrefetchScalarGridSpec(
            num_scalar_prefetch=0,
            grid=(n // tm,),
            in_specs=[
                pl.BlockSpec((tm, f), lambda i: (i, 0)),
                pl.BlockSpec((f, h), lambda i: (0, 0)),
            ],
            out_specs=pl.BlockSpec((tm, h), lambda i: (i, 0)),
        ),
        compiler_params=pltpu.CompilerParams(
            dimension_semantics=("parallel",),
            vmem_limit_bytes=_VMEM_LIMIT),
        cost_estimate=pl.CostEstimate(
            flops=flops, transcendentals=0, bytes_accessed=bytes_accessed),
    )(x, w)


# ---------------------------------------------------------------------------
# Streaming path kernel 2: layer-1 aggregation + fused (h @ W2) epilogue.
#   S2 = relu(A @ S1 + b1) @ W2     (S1 resident in VMEM, sliced per k-step)
# ---------------------------------------------------------------------------
def _layer1_kernel(a_ref, s1_ref, b1_ref, w2_ref, o_ref, acc_ref, *, tk):
    k = pl.program_id(1)

    @pl.when(k == 0)
    def _():
        acc_ref[...] = jnp.zeros_like(acc_ref)

    row0 = pl.multiple_of(k * tk, tk)
    acc_ref[...] += jnp.dot(
        a_ref[...], s1_ref[pl.ds(row0, tk), :],
        preferred_element_type=jnp.float32)

    @pl.when(k == pl.num_programs(1) - 1)
    def _():
        h = jnp.maximum(acc_ref[...] + b1_ref[...], 0.0).astype(jnp.bfloat16)
        o_ref[...] = jnp.dot(
            h, w2_ref[...], preferred_element_type=jnp.float32
        ).astype(o_ref.dtype)


def layer1_aggregate(a, s1, b1, w2, *, tm, tk):
    n_p = a.shape[0]
    h_p = s1.shape[1]
    c_p = w2.shape[1]
    kernel = functools.partial(_layer1_kernel, tk=tk)
    flops = 2 * n_p * n_p * h_p + 2 * n_p * h_p * c_p
    bytes_accessed = a.size * 2 + s1.size * 2 + w2.size * 2 + n_p * c_p * 2
    return pl.pallas_call(
        kernel,
        out_shape=jax.ShapeDtypeStruct((n_p, c_p), jnp.bfloat16),
        grid_spec=pltpu.PrefetchScalarGridSpec(
            num_scalar_prefetch=0,
            grid=(n_p // tm, n_p // tk),
            in_specs=[
                pl.BlockSpec((tm, tk), lambda i, k: (i, k)),   # A tile (hot stream)
                pl.BlockSpec((n_p, h_p), lambda i, k: (0, 0)),  # S1 resident in VMEM
                pl.BlockSpec((1, h_p), lambda i, k: (0, 0)),    # b1
                pl.BlockSpec((h_p, c_p), lambda i, k: (0, 0)),  # W2 (tiny, resident)
            ],
            out_specs=pl.BlockSpec((tm, c_p), lambda i, k: (i, 0)),
            scratch_shapes=[pltpu.VMEM((tm, h_p), jnp.float32)],
        ),
        compiler_params=pltpu.CompilerParams(
            dimension_semantics=("parallel", "arbitrary"),
            vmem_limit_bytes=_VMEM_LIMIT),
        cost_estimate=pl.CostEstimate(
            flops=flops, transcendentals=0, bytes_accessed=bytes_accessed),
    )(a, s1, b1, w2)


# ---------------------------------------------------------------------------
# Streaming path kernel 3: layer-2 aggregation + fused masked log_softmax.
#   out = log_softmax(A @ S2 + b2)   (S2 resident in VMEM)
# ---------------------------------------------------------------------------
def _layer2_kernel(a_ref, s2_ref, b2_ref, o_ref, acc_ref, *, tk, nclass):
    k = pl.program_id(1)

    @pl.when(k == 0)
    def _():
        acc_ref[...] = jnp.zeros_like(acc_ref)

    row0 = pl.multiple_of(k * tk, tk)
    acc_ref[...] += jnp.dot(
        a_ref[...], s2_ref[pl.ds(row0, tk), :],
        preferred_element_type=jnp.float32)

    @pl.when(k == pl.num_programs(1) - 1)
    def _():
        y = acc_ref[...] + b2_ref[...]
        o_ref[...] = _masked_log_softmax(y, nclass).astype(o_ref.dtype)


def layer2_aggregate(a, s2, b2, *, nclass, tm, tk):
    n_p = a.shape[0]
    c_p = s2.shape[1]
    kernel = functools.partial(_layer2_kernel, tk=tk, nclass=nclass)
    flops = 2 * n_p * n_p * c_p
    bytes_accessed = a.size * 2 + s2.size * 2 + n_p * c_p * 4
    return pl.pallas_call(
        kernel,
        out_shape=jax.ShapeDtypeStruct((n_p, c_p), jnp.float32),
        grid_spec=pltpu.PrefetchScalarGridSpec(
            num_scalar_prefetch=0,
            grid=(n_p // tm, n_p // tk),
            in_specs=[
                pl.BlockSpec((tm, tk), lambda i, k: (i, k)),    # A tile
                pl.BlockSpec((n_p, c_p), lambda i, k: (0, 0)),  # S2 resident
                pl.BlockSpec((1, c_p), lambda i, k: (0, 0)),    # b2
            ],
            out_specs=pl.BlockSpec((tm, c_p), lambda i, k: (i, 0)),
            scratch_shapes=[pltpu.VMEM((tm, c_p), jnp.float32)],
        ),
        compiler_params=pltpu.CompilerParams(
            dimension_semantics=("parallel", "arbitrary"),
            vmem_limit_bytes=_VMEM_LIMIT),
        cost_estimate=pl.CostEstimate(
            flops=flops, transcendentals=n_p * c_p, bytes_accessed=bytes_accessed),
    )(a, s2, b2)


# ---------------------------------------------------------------------------
# Preparation (done ONCE, outside the per-forward path) + forward
# ---------------------------------------------------------------------------
def prepare_inputs(x, adj_norm, w1, b1, w2, b2):
    """Pad to lane/tile granularity and cast streamed operands to bf16 once."""
    n, nfeat = x.shape
    nhid = w1.shape[1]
    nclass = w2.shape[1]
    n_p = _round_up(n, 256)          # modest padding, decoupled from tile size
    f_p = _round_up(nfeat, LANE)
    h_p = _round_up(nhid, LANE)
    c_p = _round_up(nclass, LANE)

    a_p = _pad_to(adj_norm.astype(jnp.float32), (n_p, n_p)).astype(jnp.bfloat16)
    x_p = _pad_to(x, (n_p, f_p)).astype(jnp.bfloat16)
    w1_p = _pad_to(w1, (f_p, h_p)).astype(jnp.bfloat16)
    b1_p = _pad_to(b1, (h_p,)).astype(jnp.float32).reshape(1, h_p)
    w2_p = _pad_to(w2, (h_p, c_p)).astype(jnp.bfloat16)
    b2_p = _pad_to(b2, (c_p,)).astype(jnp.float32).reshape(1, c_p)
    return a_p, x_p, w1_p, b1_p, w2_p, b2_p


def gcn_forward_prepared(a_p, x_p, w1_p, b1_p, w2_p, b2_p, *, n, nclass,
                         use_fused=None):
    """Forward pass from pre-padded / pre-cast operands (hot path)."""
    n_p, f_p = x_p.shape
    h_p = w1_p.shape[1]
    c_p = w2_p.shape[1]

    if use_fused is None:
        use_fused = _fused_vmem_bytes(n_p, f_p, h_p, c_p) <= _FUSED_VMEM_BUDGET

    if use_fused:
        # Single kernel, A resident in VMEM: 1 launch, A read from HBM once.
        y = fused_forward(a_p, x_p, w1_p, b1_p, w2_p, b2_p, nclass=nclass)
    else:
        tm = _pick_tile(n_p, 512)
        tk = _pick_tile(n_p, 1024)
        s1 = support_matmul(x_p, w1_p, tm=tm)                       # [n_p, h_p] bf16
        s2 = layer1_aggregate(a_p, s1, b1_p, w2_p, tm=tm, tk=tk)    # [n_p, c_p] bf16
        y = layer2_aggregate(a_p, s2, b2_p, nclass=nclass, tm=tm, tk=tk)
    # TODO(synk): dropout skipped — module evaluated in eval mode (identity).
    return y[:n, :nclass]


def gcn_forward(x, adj_norm, w1, b1, w2, b2):
    """Convenience one-shot forward (pads/casts inline; prefer the prepared path)."""
    prepared = prepare_inputs(x, adj_norm, w1, b1, w2, b2)
    return gcn_forward_prepared(*prepared, n=x.shape[0], nclass=w2.shape[1])


# ---------------------------------------------------------------------------
# Glue: adjacency normalization, params, reference
# ---------------------------------------------------------------------------
def glorot(key, shape):
    fan_in, fan_out = shape
    limit = jnp.sqrt(6.0 / (fan_in + fan_out))
    return jax.random.uniform(key, shape, jnp.float32, -limit, limit)


def normalize_adj(adj):
    """D^-1/2 (A + I) D^-1/2, dense — mirrors utils.normalize_adj_tensor."""
    n = adj.shape[0]
    a_hat = adj + jnp.eye(n, dtype=adj.dtype)
    deg = jnp.sum(a_hat, axis=1)
    d_inv_sqrt = jnp.where(deg > 0, 1.0 / jnp.sqrt(deg), 0.0)
    return a_hat * d_inv_sqrt[:, None] * d_inv_sqrt[None, :]


def reference_forward(x, adj_norm, w1, b1, w2, b2):
    """Pure-JAX reference mirroring the kernel's bf16-storage / f32-accum path."""
    bf = jnp.bfloat16
    a = adj_norm.astype(bf)
    xb = x.astype(bf)
    s1 = jnp.dot(xb, w1.astype(bf), preferred_element_type=jnp.float32).astype(bf)
    h = jnp.maximum(
        jnp.dot(a, s1, preferred_element_type=jnp.float32) + b1, 0.0).astype(bf)
    s2 = jnp.dot(h, w2.astype(bf), preferred_element_type=jnp.float32).astype(bf)
    y = jnp.dot(a, s2, preferred_element_type=jnp.float32) + b2
    return jax.nn.log_softmax(y, axis=1)


if __name__ == "__main__":
    # Cora-like small shapes: N nodes, nfeat -> nhid -> nclass.
    N, NFEAT, NHID, NCLASS = 512, 100, 32, 7

    key = jax.random.PRNGKey(0)
    k_x, k_a, k_w1, k_b1, k_w2, k_b2 = jax.random.split(key, 6)

    # Node features (x.to_dense() in the module).
    x = jax.random.normal(k_x, (N, NFEAT), jnp.float32)

    # Random symmetric 0/1 adjacency, then normalized (dense stand-in for the
    # sparse edge_index / edge_weight used by GCNConv).
    a_rand = (jax.random.uniform(k_a, (N, N)) < 0.02).astype(jnp.float32)
    adj = jnp.maximum(a_rand, a_rand.T) * (1.0 - jnp.eye(N, dtype=jnp.float32))
    adj_norm = normalize_adj(adj)

    # Deterministic params: gc1 (nfeat->nhid), gc2 (nhid->nclass), biases.
    w1 = glorot(k_w1, (NFEAT, NHID))
    b1 = 0.1 * jax.random.normal(k_b1, (NHID,), jnp.float32)
    w2 = glorot(k_w2, (NHID, NCLASS))
    b2 = 0.1 * jax.random.normal(k_b2, (NCLASS,), jnp.float32)

    # One-time preparation (padded bf16 adjacency cached across forwards).
    prepared = prepare_inputs(x, adj_norm, w1, b1, w2, b2)
    prepared = jax.block_until_ready(prepared)

    ref = reference_forward(x, adj_norm, w1, b1, w2, b2)

    # Fast single-kernel path (selected automatically for this size).
    fwd_fused = jax.jit(functools.partial(
        gcn_forward_prepared, n=N, nclass=NCLASS, use_fused=True))
    out = jax.block_until_ready(fwd_fused(*prepared))
    assert out.shape == (N, NCLASS)
    assert jnp.allclose(out, ref, atol=1e-2, rtol=1e-2), "fused path mismatch"
    assert jnp.allclose(jnp.exp(out).sum(axis=1), 1.0, atol=1e-3)

    # Streaming (tiled) path — exercised here for coverage; used for large N.
    fwd_stream = jax.jit(functools.partial(
        gcn_forward_prepared, n=N, nclass=NCLASS, use_fused=False))
    out_s = jax.block_until_ready(fwd_stream(*prepared))
    assert out_s.shape == (N, NCLASS)
    assert jnp.allclose(out_s, ref, atol=1e-2, rtol=1e-2), "streaming path mismatch"
    assert jnp.allclose(jnp.exp(out_s).sum(axis=1), 1.0, atol=1e-3)

    print("KERNEL_OK")
</pallas_src>

<mosaic_0001>
module attributes {stable_mosaic.version = 11 : i64} {
  func.func @_fused_kernel(%arg0: i32, %arg1: memref<512x512xbf16, #tpu.memory_space<vmem>>, %arg2: memref<512x128xbf16, #tpu.memory_space<vmem>>, %arg3: memref<128x128xbf16, #tpu.memory_space<vmem>>, %arg4: memref<1x128xf32, #tpu.memory_space<vmem>>, %arg5: memref<128x128xbf16, #tpu.memory_space<vmem>>, %arg6: memref<1x128xf32, #tpu.memory_space<vmem>>, %arg7: memref<512x128xf32, #tpu.memory_space<vmem>>) attributes {dimension_semantics = [#tpu.dimension_semantics<arbitrary>], iteration_bounds = array<i64: 1>, scalar_prefetch = 0 : i64, scratch_operands = 0 : i64, tpu.core_type = #tpu.core_type<tc>, window_params = [{pipeline_mode = #tpu.pipeline_mode<synchronous>, transform_indices = @transform_0, window_bounds = array<i64: 512, 512>}, {pipeline_mode = #tpu.pipeline_mode<synchronous>, transform_indices = @transform_1, window_bounds = array<i64: 512, 128>}, {pipeline_mode = #tpu.pipeline_mode<synchronous>, transform_indices = @transform_2, window_bounds = array<i64: 128, 128>}, {pipeline_mode = #tpu.pipeline_mode<synchronous>, transform_indices = @transform_3, window_bounds = array<i64: 1, 128>}, {pipeline_mode = #tpu.pipeline_mode<synchronous>, transform_indices = @transform_4, window_bounds = array<i64: 128, 128>}, {pipeline_mode = #tpu.pipeline_mode<synchronous>, transform_indices = @transform_5, window_bounds = array<i64: 1, 128>}, {pipeline_mode = #tpu.pipeline_mode<synchronous>, transform_indices = @transform_6, window_bounds = array<i64: 512, 128>}]} {
    %c0 = arith.constant 0 : index
    %c0_0 = arith.constant 0 : index
    %0 = vector.load %arg2[%c0, %c0_0] : memref<512x128xbf16, #tpu.memory_space<vmem>>, vector<512x128xbf16>
    %c0_1 = arith.constant 0 : index
    %c0_2 = arith.constant 0 : index
    %1 = vector.load %arg3[%c0_1, %c0_2] : memref<128x128xbf16, #tpu.memory_space<vmem>>, vector<128x128xbf16>
    %cst = arith.constant dense<0.000000e+00> : vector<512x128xf32>
    %2 = tpu.matmul %0, %1, %cst {dimension_numbers = #tpu.dot_dimension_numbers<[1], [0], [0], [1], [0, 0, 1, 1], [], []>} : vector<512x128xbf16>, vector<128x128xbf16>, vector<512x128xf32> -> vector<512x128xf32>
    %3 = arith.truncf %2 : vector<512x128xf32> to vector<512x128xbf16>
    %c0_3 = arith.constant 0 : index
    %c0_4 = arith.constant 0 : index
    %4 = vector.load %arg1[%c0_3, %c0_4] : memref<512x512xbf16, #tpu.memory_space<vmem>>, vector<512x512xbf16>
    %cst_5 = arith.constant dense<0.000000e+00> : vector<512x128xf32>
    %5 = tpu.matmul %4, %3, %cst_5 {dimension_numbers = #tpu.dot_dimension_numbers<[1], [0], [0], [1], [0, 0, 1, 1], [], []>} : vector<512x512xbf16>, vector<512x128xbf16>, vector<512x128xf32> -> vector<512x128xf32>
    %c0_6 = arith.constant 0 : index
    %c0_7 = arith.constant 0 : index
    %6 = vector.load %arg4[%c0_6, %c0_7] : memref<1x128xf32, #tpu.memory_space<vmem>>, vector<1x128xf32>
    %7 = vector.broadcast %6 : vector<1x128xf32> to vector<512x128xf32>
    %8 = arith.addf %5, %7 : vector<512x128xf32>
    %cst_8 = arith.constant 0.000000e+00 : f32
    %9 = vector.broadcast %cst_8 : f32 to vector<512x128xf32>
    %10 = arith.maximumf %8, %9 : vector<512x128xf32>
    %11 = arith.truncf %10 : vector<512x128xf32> to vector<512x128xbf16>
    %c0_9 = arith.constant 0 : index
    %c0_10 = arith.constant 0 : index
    %12 = vector.load %arg5[%c0_9, %c0_10] : memref<128x128xbf16, #tpu.memory_space<vmem>>, vector<128x128xbf16>
    %cst_11 = arith.constant dense<0.000000e+00> : vector<512x128xf32>
    %13 = tpu.matmul %11, %12, %cst_11 {dimension_numbers = #tpu.dot_dimension_numbers<[1], [0], [0], [1], [0, 0, 1, 1], [], []>} : vector<512x128xbf16>, vector<128x128xbf16>, vector<512x128xf32> -> vector<512x128xf32>
    %14 = arith.truncf %13 : vector<512x128xf32> to vector<512x128xbf16>
    %c0_12 = arith.constant 0 : index
    %c0_13 = arith.constant 0 : index
    %15 = vector.load %arg1[%c0_12, %c0_13] : memref<512x512xbf16, #tpu.memory_space<vmem>>, vector<512x512xbf16>
    %cst_14 = arith.constant dense<0.000000e+00> : vector<512x128xf32>
    %16 = tpu.matmul %15, %14, %cst_14 {dimension_numbers = #tpu.dot_dimension_numbers<[1], [0], [0], [1], [0, 0, 1, 1], [], []>} : vector<512x512xbf16>, vector<512x128xbf16>, vector<512x128xf32> -> vector<512x128xf32>
    %c0_15 = arith.constant 0 : index
    %c0_16 = arith.constant 0 : index
    %17 = vector.load %arg6[%c0_15, %c0_16] : memref<1x128xf32, #tpu.memory_space<vmem>>, vector<1x128xf32>
    %18 = vector.broadcast %17 : vector<1x128xf32> to vector<512x128xf32>
    %19 = arith.addf %16, %18 : vector<512x128xf32>
    %20 = tpu.iota {dimensions = array<i32: 1>} : vector<512x128xi32>
    %c7_i32 = arith.constant 7 : i32
    %21 = vector.broadcast %c7_i32 : i32 to vector<512x128xi32>
    %22 = arith.cmpi slt, %20, %21 : vector<512x128xi32>
    %cst_17 = arith.constant -1.000000e+30 : f32
    %23 = vector.broadcast %cst_17 : f32 to vector<512x128xf32>
    %24 = arith.select %22, %19, %23 : vector<512x128xi1>, vector<512x128xf32>
    %cst_18 = arith.constant dense<0xFF800000> : vector<512xf32>
    %25 = vector.multi_reduction <maximumf>, %24, %cst_18 [1] : vector<512x128xf32> to vector<512xf32>
    %26 = vector.shape_cast %25 : vector<512xf32> to vector<512x1xf32>
    %27 = vector.broadcast %26 : vector<512x1xf32> to vector<512x128xf32>
    %28 = arith.subf %24, %27 : vector<512x128xf32>
    %29 = math.exp %28 : vector<512x128xf32>
    %cst_19 = arith.constant 0.000000e+00 : f32
    %30 = vector.broadcast %cst_19 : f32 to vector<512x128xf32>
    %31 = arith.select %22, %29, %30 : vector<512x128xi1>, vector<512x128xf32>
    %cst_20 = arith.constant dense<0.000000e+00> : vector<512xf32>
    %32 = vector.multi_reduction <add>, %31, %cst_20 [1] : vector<512x128xf32> to vector<512xf32>
    %33 = vector.shape_cast %32 : vector<512xf32> to vector<512x1xf32>
    %34 = math.log %33 : vector<512x1xf32>
    %35 = vector.broadcast %26 : vector<512x1xf32> to vector<512x128xf32>
    %36 = arith.subf %24, %35 : vector<512x128xf32>
    %37 = vector.broadcast %34 : vector<512x1xf32> to vector<512x128xf32>
    %38 = arith.subf %36, %37 : vector<512x128xf32>
    %c0_21 = arith.constant 0 : index
    %c0_22 = arith.constant 0 : index
    %39 = vector.load %arg7[%c0_21, %c0_22] : memref<512x128xf32, #tpu.memory_space<vmem>>, vector<512x128xf32>
    tpu.vector_store %arg7[%c0_21, %c0_22], %38 {strides = array<i32>} : memref<512x128xf32, #tpu.memory_space<vmem>>, vector<512x128xf32>,
    return
  }
  func.func @transform_0(%arg0: i32) -> (i32, i32) {
    %c0_i32 = arith.constant 0 : i32
    %c0_i32_0 = arith.constant 0 : i32
    %c0_i32_1 = arith.constant 0 : i32
    return %c0_i32, %c0_i32_0 : i32, i32
  }
  func.func @transform_1(%arg0: i32) -> (i32, i32) {
    %c0_i32 = arith.constant 0 : i32
    %c0_i32_0 = arith.constant 0 : i32
    %c0_i32_1 = arith.constant 0 : i32
    return %c0_i32, %c0_i32_0 : i32, i32
  }
  func.func @transform_2(%arg0: i32) -> (i32, i32) {
    %c0_i32 = arith.constant 0 : i32
    %c0_i32_0 = arith.constant 0 : i32
    %c0_i32_1 = arith.constant 0 : i32
    return %c0_i32, %c0_i32_0 : i32, i32
  }
  func.func @transform_3(%arg0: i32) -> (i32, i32) {
    %c0_i32 = arith.constant 0 : i32
    %c0_i32_0 = arith.constant 0 : i32
    %c0_i32_1 = arith.constant 0 : i32
    return %c0_i32, %c0_i32_0 : i32, i32
  }
  func.func @transform_4(%arg0: i32) -> (i32, i32) {
    %c0_i32 = arith.constant 0 : i32
    %c0_i32_0 = arith.constant 0 : i32
    %c0_i32_1 = arith.constant 0 : i32
    return %c0_i32, %c0_i32_0 : i32, i32
  }
  func.func @transform_5(%arg0: i32) -> (i32, i32) {
    %c0_i32 = arith.constant 0 : i32
    %c0_i32_0 = arith.constant 0 : i32
    %c0_i32_1 = arith.constant 0 : i32
    return %c0_i32, %c0_i32_0 : i32, i32
  }
  func.func @transform_6(%arg0: i32) -> (i32, i32) {
    %c0_i32 = arith.constant 0 : i32
    %c0_i32_0 = arith.constant 0 : i32
    %c0_i32_1 = arith.constant 0 : i32
    return %c0_i32, %c0_i32_0 : i32, i32
  }
}

</mosaic_0001>

<bundles_post_ra>
// kernel: gcn_forward_prepared.1
= control target key start
LH: loop header
LB: loop body
LE: loop exit
PB: predicated region body
PF: predicated region fallthrough
CT: control target
= control target key end

     0   :  { %11 = vsyncpa [#allocation3], 0  ;;  %s6783_s0 = inlined_call_operand.hbm [shape: bf16[512,512], index: 0, kind: input, shape index: {}]   ;;  %s6784_s1 = inlined_call_operand.hbm [shape: bf16[512,128], index: 1, kind: input, shape index: {}]   ;;  %s6785_s2 = inlined_call_operand.hbm [shape: bf16[128,128], index: 2, kind: input, shape index: {}]   ;;  %s6786_s3 = inlined_call_operand.vmem [shape: f32[1,128], index: 3, kind: input, shape index: {}]   ;;  %s6787_s4 = inlined_call_operand.hbm [shape: bf16[128,128], index: 4, kind: input, shape index: {}]   ;;  %s6788_s5 = inlined_call_operand.vmem [shape: f32[1,128], index: 5, kind: input, shape index: {}]   ;;  %s6789_s6 = inlined_call_operand.vmem [shape: f32[512,128], index: 6, kind: output, shape index: {}]  }
   0x1   :  { %12 = vsyncpa [#allocation5], 0 }
   0x2   :  { %13 = vsyncpa [#allocation8], 0  ;;  %s5510_s21 = smov [#allocation4]   ;;  %s5416_s25 = scalar_lea.hbm %s6784_s1, 4096 }
   0x3   :  { %s31_s22 = sshll.u32 %s5510_s21, 4  ;;  %p5417_p0 = scmp.ne.s32.totalorder %s6784_s1, %s5416_s25  ;;  %s32_s22 = int_to_ptr.vmem [resolvable:$true] %s31_s22 }
   0x4   :  { %p5420_p1 = scmp.lt.u32.totalorder %s5416_s25, %s6784_s1 }
   0x6   :  { %p5422_p2 = pnand %p5420_p1, %p5417_p0 }
   0x8   :  { %5425 = shalt.err (!%p5422_p2)
}
   0x9   :  { %s5426_s30 = scalar_lea.vmem %s32_s22, 4096  ;;  %p5431_p4 = scmp.lt.s32.totalorder %s32_s22, %s32_s22 }
   0xa   :  { %p5427_p3 = scmp.ne.s32.totalorder %s32_s22, %s5426_s30  ;;  %p5432_p5 = scmp.lt.s32.totalorder %s5426_s30, %s5426_s30 }
   0xc   :  { %p5433_p6 = por %p5432_p5, %p5431_p4 }
   0xe   :  { %p5434_p7 = pnand %p5433_p6, %p5427_p3 }
  0x10   :  { %5437 = shalt.err (!%p5434_p7)
}
  0x11   :  { %s5511_s7 = smov 64   ;;  %s5512_s8 = smov 4  }
  0x12   :  { %37 = dma.hbm_to_vmem [thread:$0]  %s6784_s1, 4096, %s32_s22, [#allocation5], %s5511_s7, %s5511_s7, %s5512_s8  }
  0x13   :  { %s5513_s11 = smov [#allocation2]   ;;  %s5438_s15 = scalar_lea.hbm %s6783_s0, 16384 }
  0x14   :  { %s19_s12 = sshll.u32 %s5513_s11, 4  ;;  %p5439_p8 = scmp.ne.s32.totalorder %s6783_s0, %s5438_s15  ;;  %s20_s12 = int_to_ptr.vmem [resolvable:$true] %s19_s12 }
  0x15   :  { %p5442_p9 = scmp.lt.u32.totalorder %s5438_s15, %s6783_s0 }
  0x17   :  { %p5444_p10 = pnand %p5442_p9, %p5439_p8 }
  0x19   :  { %5447 = shalt.err (!%p5444_p10)
}
  0x1a   :  { %s5448_s20 = scalar_lea.vmem %s20_s12, 16384  ;;  %p5453_p12 = scmp.lt.s32.totalorder %s20_s12, %s20_s12 }
  0x1b   :  { %p5449_p11 = scmp.ne.s32.totalorder %s20_s12, %s5448_s20  ;;  %p5454_p13 = scmp.lt.s32.totalorder %s5448_s20, %s5448_s20 }
  0x1d   :  { %p5455_p0 = por %p5454_p13, %p5453_p12 }
  0x1f   :  { %p5456_p1 = pnand %p5455_p0, %p5449_p11 }
  0x21   :  { %5459 = shalt.err (!%p5456_p1)
}
  0x22   :  { %s5514_s1 = smov 256   ;;  %s5515_s21 = smov 16  }
  0x23   :  { %25 = dma.hbm_to_vmem [thread:$0]  %s6783_s0, 16384, %s20_s12, [#allocation3], %s5514_s1, %s5514_s1, %s5515_s21  }
  0x24   :  { %s5516_s24 = smov [#allocation6]   ;;  %s5517_s26 = smov [#allocation7]  }
  0x25   :  { %s43_s25 = sshll.u32 %s5516_s24, 4  ;;  %s57_s27 = sshll.u32 %s5517_s26, 4  ;;  %s44_s25 = int_to_ptr.vmem [resolvable:$true] %s43_s25  ;;  %s5581_s27 = int_to_ptr.vmem [resolvable:$true] %s57_s27 }
  0x26   :  { %s5460_s30 = scalar_lea.hbm %s6785_s2, 1024 }
  0x27   :  { %p5461_p2 = scmp.ne.s32.totalorder %s6785_s2, %s5460_s30  ;;  %p5464_p3 = scmp.lt.u32.totalorder %s5460_s30, %s6785_s2 }
  0x29   :  { %p5466_p4 = pnand %p5464_p3, %p5461_p2 }
  0x2b   :  { %5469 = shalt.err (!%p5466_p4)
}
  0x2c   :  { %s5470_s0 = scalar_lea.vmem %s44_s25, 1024  ;;  %p5475_p6 = scmp.lt.s32.totalorder %s44_s25, %s44_s25 }
  0x2d   :  { %p5471_p5 = scmp.ne.s32.totalorder %s44_s25, %s5470_s0  ;;  %p5476_p7 = scmp.lt.s32.totalorder %s5470_s0, %s5470_s0 }
  0x2f   :  { %p5477_p8 = por %p5476_p7, %p5475_p6 }
  0x31   :  { %p5478_p9 = pnand %p5477_p8, %p5471_p5 }
  0x33   :  { %5481 = shalt.err (!%p5478_p9)
}
  0x34   :  { %49 = dma.hbm_to_vmem [thread:$0]  %s6785_s2, 1024, %s44_s25, [#allocation5], %s5511_s7, %s5511_s7, %s5512_s8  }
  0x35   :  { %s5482_s17 = scalar_lea.hbm %s6787_s4, 1024 }
  0x36   :  { %p5483_p10 = scmp.ne.s32.totalorder %s6787_s4, %s5482_s17  ;;  %p5486_p11 = scmp.lt.u32.totalorder %s5482_s17, %s6787_s4 }
  0x38   :  { %p5488_p12 = pnand %p5486_p11, %p5483_p10 }
  0x3a   :  { %5491 = shalt.err (!%p5488_p12)
}
  0x3b   :  { %s5492_s21 = scalar_lea.vmem %s5581_s27, 1024  ;;  %p5497_p0 = scmp.lt.s32.totalorder %s5581_s27, %s5581_s27 }
  0x3c   :  { %p5493_p13 = scmp.ne.s32.totalorder %s5581_s27, %s5492_s21  ;;  %p5498_p1 = scmp.lt.s32.totalorder %s5492_s21, %s5492_s21 }
  0x3e   :  { %p5499_p2 = por %p5498_p1, %p5497_p0 }
  0x40   :  { %p5500_p3 = pnand %p5499_p2, %p5493_p13 }
  0x42   :  { %5503 = shalt.err (!%p5500_p3)
}
  0x43   :  { %63 = dma.hbm_to_vmem [thread:$0]  %s6787_s4, 1024, %s5581_s27, [#allocation8], %s5511_s7, %s5511_s7, %s5512_s8  }
  0x44   :  { %5504 = dma.done.wait [#allocation3], 16384  }
  0x45   :  { %5505 = vsyncadd [#allocation3], 4294950912 }
  0x46   :  { %5506 = dma.done.wait [#allocation5], 5120  }
  0x47   :  { %5507 = vsyncadd [#allocation5], 4294962176 }
  0x48   :  { %5508 = dma.done.wait [#allocation8], 1024  }
  0x49   :  { %5509 = vsyncadd [#allocation8], 4294966272  ;;  %v4792_v0 = vld [vmem:[#allocation6] sm:$0xff]   ;;  %v4793_v1 = vld [vmem:[#allocation6 + $0x8] sm:$0xff]   ;;  %v5518_v32 = vmov 0  }
  0x4a   :  { %4239 = vmatprep.subr.bf16.mxu1 %v4792_v0  ;;  %v4794_v2 = vld [vmem:[#allocation6 + $0x10] sm:$0xff]   ;;  %v4795_v3 = vld [vmem:[#allocation6 + $0x18] sm:$0xff]   ;;  %v4800_v4 = vld [vmem:[#allocation4] sm:$0xff]  }
  0x4b   :  { %4240 = vmatpush3.bf16.msra.mxu1 %v4792_v0  ;;  %4255 = vmatprep.mubr.bf16.mxu1 %v4800_v4  ;;  %v4796_v5 = vld [vmem:[#allocation6 + $0x20] sm:$0xff]   ;;  %v4797_v6 = vld [vmem:[#allocation6 + $0x28] sm:$0xff]   ;;  %v4798_v7 = vld [vmem:[#allocation6 + $0x30] sm:$0xff]  }
  0x4c   :  { %4241 = vmatprep.subr.bf16.mxu1 %v4793_v1  ;;  %v4799_v8 = vld [vmem:[#allocation6 + $0x38] sm:$0xff]   ;;  %v4801_v9 = vld [vmem:[#allocation4 + $0x8] sm:$0xff]   ;;  %v4802_v10 = vld [vmem:[#allocation4 + $0x10] sm:$0xff]  }
  0x4d   :  { %v4803_v11 = vld [vmem:[#allocation4 + $0x18] sm:$0xff]   ;;  %v4804_v12 = vld [vmem:[#allocation4 + $0x20] sm:$0xff]   ;;  %v4805_v13 = vld [vmem:[#allocation4 + $0x28] sm:$0xff]  }
  0x4e   :  { %v4806_v14 = vld [vmem:[#allocation4 + $0x30] sm:$0xff]   ;;  %v4807_v15 = vld [vmem:[#allocation4 + $0x38] sm:$0xff]   ;;  %v4808_v16 = vld [vmem:[#allocation4 + $0x40] sm:$0xff]  }
  0x4f   :  { %4242 = vmatpush3.bf16.msra.mxu1 %v4793_v1  ;;  %v4809_v17 = vld [vmem:[#allocation4 + $0x48] sm:$0xff]   ;;  %v4810_v18 = vld [vmem:[#allocation4 + $0x50] sm:$0xff]   ;;  %v4811_v19 = vld [vmem:[#allocation4 + $0x58] sm:$0xff]  }
  0x50   :  { %4243 = vmatprep.subr.bf16.mxu1 %v4794_v2  ;;  %v4812_v20 = vld [vmem:[#allocation4 + $0x60] sm:$0xff]   ;;  %v4813_v21 = vld [vmem:[#allocation4 + $0x68] sm:$0xff]   ;;  %v4814_v22 = vld [vmem:[#allocation4 + $0x70] sm:$0xff]  }
  0x51   :  { %v4815_v23 = vld [vmem:[#allocation4 + $0x78] sm:$0xff]   ;;  %v4816_v24 = vld [vmem:[#allocation4 + $0x80] sm:$0xff]   ;;  %v4817_v25 = vld [vmem:[#allocation4 + $0x88] sm:$0xff]  }
  0x52   :  { %v4818_v26 = vld [vmem:[#allocation4 + $0x90] sm:$0xff]   ;;  %v4819_v27 = vld [vmem:[#allocation4 + $0x98] sm:$0xff]   ;;  %v4820_v28 = vld [vmem:[#allocation4 + $0xa0] sm:$0xff]  }
  0x53   :  { %4244 = vmatpush3.bf16.msra.mxu1 %v4794_v2  ;;  %v4821_v29 = vld [vmem:[#allocation4 + $0xa8] sm:$0xff]   ;;  %v4822_v30 = vld [vmem:[#allocation4 + $0xb0] sm:$0xff]   ;;  %v4823_v31 = vld [vmem:[#allocation4 + $0xb8] sm:$0xff]  }
  0x54   :  { %4245 = vmatprep.subr.bf16.mxu1 %v4795_v3  ;;  %v4824_v33 = vld [vmem:[#allocation4 + $0xc0] sm:$0xff]   ;;  %v4825_v34 = vld [vmem:[#allocation4 + $0xc8] sm:$0xff]   ;;  %v4826_v35 = vld [vmem:[#allocation4 + $0xd0] sm:$0xff]  }
  0x55   :  { %v4827_v36 = vld [vmem:[#allocation4 + $0xd8] sm:$0xff]   ;;  %v4828_v37 = vld [vmem:[#allocation4 + $0xe0] sm:$0xff]   ;;  %v4829_v38 = vld [vmem:[#allocation4 + $0xe8] sm:$0xff]  }
  0x56   :  { %v4830_v39 = vld [vmem:[#allocation4 + $0xf0] sm:$0xff]   ;;  %v4831_v40 = vld [vmem:[#allocation4 + $0xf8] sm:$0xff]  }
  0x57   :  { %4246 = vmatpush3.bf16.msra.mxu1 %v4795_v3  ;;  %v4834_v41 = vld [vmem:[#allocation2 + $0x4] ss:$16 sps:$4 sm:$0xff]  }
  0x58   :  { %4247 = vmatprep.subr.bf16.mxu1 %v4796_v5 }
  0x5b   :  { %4248 = vmatpush3.bf16.msra.mxu1 %v4796_v5 }
  0x5c   :  { %4249 = vmatprep.subr.bf16.mxu1 %v4797_v6 }
  0x5f   :  { %4250 = vmatpush3.bf16.msra.mxu1 %v4797_v6 }
  0x60   :  { %4251 = vmatprep.subr.bf16.mxu1 %v4798_v7 }
  0x63   :  { %4252 = vmatpush3.bf16.msra.mxu1 %v4798_v7 }
  0x64   :  { %4253 = vmatprep.subr.bf16.mxu1 %v4799_v8 }
  0x67   :  { %4254 = vmatpush3.bf16.msra.mxu1 %v4799_v8 }
  0x68   :  { %1495 = vmatprep.subr.bf16.mxu1 %v5518_v32 }
  0x6a   :  { %4256 = vmatmul.mubr.bf16.vlgmr.msra.gmra.mrb[0].mxu1 %v4801_v9 }
  0x6b   :  { %4259 = vmatprep.mubr.bf16.mxu1 %v4802_v10 }
  0x72   :  { %4260 = vmatmul.mubr.bf16.gmra.mrb[4].mxu1 %v4803_v11 }
  0x73   :  { %4263 = vmatprep.mubr.bf16.mxu1 %v4804_v12 }
  0x7a   :  { %4264 = vmatmul.mubr.bf16.gmra.mrb[8].mxu1 %v4805_v13 }
  0x7b   :  { %4267 = vmatprep.mubr.bf16.mxu1 %v4806_v14 }
  0x82   :  { %4268 = vmatmul.mubr.bf16.gmra.mrb[12].mxu1 %v4807_v15 }
  0x83   :  { %4271 = vmatprep.mubr.bf16.mxu1 %v4808_v16 }
  0x8a   :  { %4272 = vmatmul.mubr.bf16.gmra.mrb[16].mxu1 %v4809_v17 }
  0x8b   :  { %4275 = vmatprep.mubr.bf16.mxu1 %v4810_v18 }
  0x92   :  { %4276 = vmatmul.mubr.bf16.gmra.mrb[20].mxu1 %v4811_v19 }
  0x93   :  { %4279 = vmatprep.mubr.bf16.mxu1 %v4812_v20 }
  0x9a   :  { %4280 = vmatmul.mubr.bf16.gmra.mrb[24].mxu1 %v4813_v21 }
  0x9b   :  { %4283 = vmatprep.mubr.bf16.mxu1 %v4814_v22 }
  0xa2   :  { %4284 = vmatmul.mubr.bf16.gmra.mrb[28].mxu1 %v4815_v23 }
  0xa3   :  { %4287 = vmatprep.mubr.bf16.mxu1 %v4816_v24 }
  0xaa   :  { %4288 = vmatmul.mubr.bf16.gmra.mrb[32].mxu1 %v4817_v25 }
  0xab   :  { %4291 = vmatprep.mubr.bf16.mxu1 %v4818_v26 }
  0xb2   :  { %4292 = vmatmul.mubr.bf16.gmra.mrb[36].mxu1 %v4819_v27  ;;  %v4832_v27 = vld [vmem:[#allocation2] ss:$16 sps:$4 sm:$0xff]  }
  0xb3   :  { %4295 = vmatprep.mubr.bf16.mxu1 %v4820_v28 }
  0xba   :  { %4296 = vmatmul.mubr.bf16.gmra.mrb[40].mxu1 %v4821_v29  ;;  %v4835_v29 = vld [vmem:[#allocation2 + $0x24] ss:$16 sps:$4 sm:$0xff]  }
  0xbb   :  { %4299 = vmatprep.mubr.bf16.mxu1 %v4822_v30 }
  0xc2   :  { %4300 = vmatmul.mubr.bf16.gmra.mrb[44].mxu1 %v4823_v31 }
  0xc3   :  { %4303 = vmatprep.mubr.bf16.mxu1 %v4824_v33 }
  0xca   :  { %4304 = vmatmul.mubr.bf16.gmra.mrb[48].mxu1 %v4825_v34 }
  0xcb   :  { %4307 = vmatprep.mubr.bf16.mxu1 %v4826_v35 }
  0xd2   :  { %4308 = vmatmul.mubr.bf16.gmra.mrb[52].mxu1 %v4827_v36  ;;  %v4837_v36 = vld [vmem:[#allocation2 + $0x20] ss:$16 sps:$4 sm:$0xff]  }
  0xd3   :  { %4311 = vmatprep.mubr.bf16.mxu1 %v4828_v37 }
  0xda   :  { %4312 = vmatmul.mubr.bf16.gmra.mrb[56].mxu1 %v4829_v38  ;;  %v4838_v38 = vld [vmem:[#allocation2 + $0x44] ss:$16 sps:$4 sm:$0xff]  }
  0xdb   :  { %4315 = vmatprep.mubr.bf16.mxu1 %v4830_v39 }
  0xe2   :  { %4316 = vmatmul.mubr.bf16.gmra.mrb[60].mxu1 %v4831_v40 }
  0xe3   :  { %1527 = vmatprep.mubr.bf16.mxu1 %v4834_v41 }
 0x13d   :  { %v4257_v42 = vpop.f32.mrb[0].mxu1 }
 0x13e   :  { %v433_v43 = vpop.f32.mrb[1].mxu1 }
 0x13f   :  { %v4258_v44 = vpop.f32.mrb[2].mxu1 }
 0x140   :  { %v689_v45 = vpack.c.bf16 %v4258_v44, %v4257_v42  ;;  %v436_v46 = vpop.f32.mrb[3].mxu1  ;;  %v4840_v44 = vld [vmem:[#allocation2 + $0x40] ss:$16 sps:$4 sm:$0xff]  }
 0x141   :  { %v688_v47 = vpack.c.bf16 %v436_v46, %v433_v43  ;;  %v4841_v46 = vld [vmem:[#allocation2 + $0x64] ss:$16 sps:$4 sm:$0xff]  }
 0x143   :  { %1496 = vmatpush1.bf16.msra.mxu1 %v688_v47 }
 0x144   :  { %1497 = vmatprep.subr.bf16.mxu1 %v5518_v32 }
 0x145   :  { %v4261_v48 = vpop.f32.mrb[4].mxu1 }
 0x146   :  { %v449_v49 = vpop.f32.mrb[5].mxu1 }
 0x147   :  { %v4262_v50 = vpop.f32.mrb[6].mxu1  ;;  %1498 = vmatpush1.bf16.msra.mxu1 %v689_v45 }
 0x148   :  { %v691_v51 = vpack.c.bf16 %v4262_v50, %v4261_v48  ;;  %v452_v52 = vpop.f32.mrb[7].mxu1  ;;  %1499 = vmatprep.subr.bf16.mxu1 %v5518_v32 }
 0x149   :  { %v690_v53 = vpack.c.bf16 %v452_v52, %v449_v49  ;;  %v4844_v52 = vld [vmem:[#allocation2 + $0x84] ss:$16 sps:$4 sm:$0xff]  }
 0x14b   :  { %1500 = vmatpush1.bf16.msra.mxu1 %v690_v53 }
 0x14c   :  { %1501 = vmatprep.subr.bf16.mxu1 %v5518_v32 }
 0x14d   :  { %v4265_v54 = vpop.f32.mrb[8].mxu1 }
 0x14e   :  { %v465_v55 = vpop.f32.mrb[9].mxu1 }
 0x14f   :  { %v4266_v56 = vpop.f32.mrb[10].mxu1  ;;  %1502 = vmatpush1.bf16.msra.mxu1 %v691_v51  ;;  %v4843_v51 = vld [vmem:[#allocation2 + $0x60] ss:$16 sps:$4 sm:$0xff]  }
 0x150   :  { %v693_v57 = vpack.c.bf16 %v4266_v56, %v4265_v54  ;;  %v468_v58 = vpop.f32.mrb[11].mxu1  ;;  %1503 = vmatprep.subr.bf16.mxu1 %v5518_v32 }
 0x151   :  { %v692_v59 = vpack.c.bf16 %v468_v58, %v465_v55 }
 0x153   :  { %1504 = vmatpush1.bf16.msra.mxu1 %v692_v59  ;;  %v4846_v59 = vld [vmem:[#allocation2 + $0x80] ss:$16 sps:$4 sm:$0xff]  }
 0x154   :  { %1505 = vmatprep.subr.bf16.mxu1 %v5518_v32 }
 0x155   :  { %v4269_v60 = vpop.f32.mrb[12].mxu1 }
 0x156   :  { %v481_v61 = vpop.f32.mrb[13].mxu1 }
 0x157   :  { %v4270_v62 = vpop.f32.mrb[14].mxu1  ;;  %1506 = vmatpush1.bf16.msra.mxu1 %v693_v57 }
 0x158   :  { %v695_v63 = vpack.c.bf16 %v4270_v62, %v4269_v60  ;;  %v484_v0 = vpop.f32.mrb[15].mxu1  ;;  %1507 = vmatprep.subr.bf16.mxu1 %v5518_v32  ;;  %v4847_v60 = vld [vmem:[#allocation2 + $0xa4] ss:$16 sps:$4 sm:$0xff]  }
 0x159   :  { %v694_v1 = vpack.c.bf16 %v484_v0, %v481_v61  ;;  %v4849_v61 = vld [vmem:[#allocation2 + $0xa0] ss:$16 sps:$4 sm:$0xff]   ;;  %v4850_v62 = vld [vmem:[#allocation2 + $0xc4] ss:$16 sps:$4 sm:$0xff]  }
 0x15b   :  { %1508 = vmatpush1.bf16.msra.mxu1 %v694_v1  ;;  %v4853_v1 = vld [vmem:[#allocation2 + $0xe4] ss:$16 sps:$4 sm:$0xff]  }
 0x15c   :  { %1509 = vmatprep.subr.bf16.mxu1 %v5518_v32 }
 0x15d   :  { %v4273_v2 = vpop.f32.mrb[16].mxu1 }
 0x15e   :  { %v497_v3 = vpop.f32.mrb[17].mxu1 }
 0x15f   :  { %v4274_v4 = vpop.f32.mrb[18].mxu1  ;;  %1510 = vmatpush1.bf16.msra.mxu1 %v695_v63  ;;  %v4852_v63 = vld [vmem:[#allocation2 + $0xc0] ss:$16 sps:$4 sm:$0xff]  }
 0x160   :  { %v697_v5 = vpack.c.bf16 %v4274_v4, %v4273_v2  ;;  %v500_v6 = vpop.f32.mrb[19].mxu1  ;;  %1511 = vmatprep.subr.bf16.mxu1 %v5518_v32 }
 0x161   :  { %v696_v7 = vpack.c.bf16 %v500_v6, %v497_v3 }
 0x163   :  { %1512 = vmatpush1.bf16.msra.mxu1 %v696_v7  ;;  %v4855_v7 = vld [vmem:[#allocation2 + $0xe0] ss:$16 sps:$4 sm:$0xff]  }
 0x164   :  { %1513 = vmatprep.subr.bf16.mxu1 %v5518_v32 }
 0x165   :  { %v4277_v8 = vpop.f32.mrb[20].mxu1 }
 0x166   :  { %v513_v9 = vpop.f32.mrb[21].mxu1 }
 0x167   :  { %v4278_v10 = vpop.f32.mrb[22].mxu1  ;;  %1514 = vmatpush1.bf16.msra.mxu1 %v697_v5 }
 0x168   :  { %v699_v11 = vpack.c.bf16 %v4278_v10, %v4277_v8  ;;  %v516_v12 = vpop.f32.mrb[23].mxu1  ;;  %1515 = vmatprep.subr.bf16.mxu1 %v5518_v32 }
 0x169   :  { %v698_v13 = vpack.c.bf16 %v516_v12, %v513_v9  ;;  %v4856_v9 = vld [vmem:[#allocation2 + $0x104] ss:$16 sps:$4 sm:$0xff]  }
 0x16b   :  { %1516 = vmatpush1.bf16.msra.mxu1 %v698_v13 }
 0x16c   :  { %1517 = vmatprep.subr.bf16.mxu1 %v5518_v32 }
 0x16d   :  { %v4281_v14 = vpop.f32.mrb[24].mxu1 }
 0x16e   :  { %v529_v15 = vpop.f32.mrb[25].mxu1 }
 0x16f   :  { %v4282_v16 = vpop.f32.mrb[26].mxu1  ;;  %1518 = vmatpush1.bf16.msra.mxu1 %v699_v11 }
 0x170   :  { %v701_v17 = vpack.c.bf16 %v4282_v16, %v4281_v14  ;;  %v532_v18 = vpop.f32.mrb[27].mxu1  ;;  %1519 = vmatprep.subr.bf16.mxu1 %v5518_v32  ;;  %v4858_v14 = vld [vmem:[#allocation2 + $0x100] ss:$16 sps:$4 sm:$0xff]  }
 0x171   :  { %v700_v19 = vpack.c.bf16 %v532_v18, %v529_v15 }
 0x173   :  { %1520 = vmatpush1.bf16.msra.mxu1 %v700_v19 }
 0x174   :  { %1521 = vmatprep.subr.bf16.mxu1 %v5518_v32 }
 0x175   :  { %v4285_v20 = vpop.f32.mrb[28].mxu1 }
 0x176   :  { %v545_v21 = vpop.f32.mrb[29].mxu1 }
 0x177   :  { %v4286_v22 = vpop.f32.mrb[30].mxu1  ;;  %1522 = vmatpush1.bf16.msra.mxu1 %v701_v17  ;;  %v4859_v17 = vld [vmem:[#allocation2 + $0x124] ss:$16 sps:$4 sm:$0xff]  }
 0x178   :  { %v703_v23 = vpack.c.bf16 %v4286_v22, %v4285_v20  ;;  %v548_v24 = vpop.f32.mrb[31].mxu1  ;;  %1523 = vmatprep.subr.bf16.mxu1 %v5518_v32  ;;  %v4861_v22 = vld [vmem:[#allocation2 + $0x120] ss:$16 sps:$4 sm:$0xff]  }
 0x179   :  { %v702_v25 = vpack.c.bf16 %v548_v24, %v545_v21 }
 0x17b   :  { %1524 = vmatpush1.bf16.msra.mxu1 %v702_v25  ;;  %v4862_v25 = vld [vmem:[#allocation2 + $0x144] ss:$16 sps:$4 sm:$0xff]  }
 0x17c   :  { %1525 = vmatprep.subr.bf16.mxu1 %v5518_v32 }
 0x17d   :  { %v4289_v26 = vpop.f32.mrb[32].mxu1 }
 0x17e   :  { %v561_v28 = vpop.f32.mrb[33].mxu1 }
 0x17f   :  { %1526 = vmatpush1.bf16.msra.mxu1 %v703_v23  ;;  %v4290_v30 = vpop.f32.mrb[34].mxu1 }
 0x180   :  { %v705_v31 = vpack.c.bf16 %v4290_v30, %v4289_v26  ;;  %v564_v33 = vpop.f32.mrb[35].mxu1  ;;  %1784 = vmatprep.subr.bf16.mxu1 %v5518_v32  ;;  %v4864_v30 = vld [vmem:[#allocation2 + $0x140] ss:$16 sps:$4 sm:$0xff]  }
 0x181   :  { %v704_v34 = vpack.c.bf16 %v564_v33, %v561_v28  ;;  %v4865_v33 = vld [vmem:[#allocation2 + $0x164] ss:$16 sps:$4 sm:$0xff]  }
 0x182   :  { %1528 = vmatmul.mubr.bf16.vlgmr.msra.gmra.mrb[64].mxu1 %v4832_v27 }
 0x183   :  { %1535 = vmatprep.mubr.bf16.mxu1 %v4835_v29  ;;  %1785 = vmatpush1.bf16.msra.mxu1 %v704_v34  ;;  %v4867_v34 = vld [vmem:[#allocation2 + $0x160] ss:$16 sps:$4 sm:$0xff]  }
 0x184   :  { %1786 = vmatprep.subr.bf16.mxu1 %v5518_v32 }
 0x185   :  { %v4293_v35 = vpop.f32.mrb[36].mxu1 }
 0x186   :  { %v577_v37 = vpop.f32.mrb[37].mxu1 }
 0x187   :  { %1787 = vmatpush1.bf16.msra.mxu1 %v705_v31  ;;  %v4294_v39 = vpop.f32.mrb[38].mxu1 }
 0x188   :  { %v707_v40 = vpack.c.bf16 %v4294_v39, %v4293_v35  ;;  %v580_v41 = vpop.f32.mrb[39].mxu1  ;;  %1788 = vmatprep.subr.bf16.mxu1 %v5518_v32  ;;  %v4868_v35 = vld [vmem:[#allocation2 + $0x184] ss:$16 sps:$4 sm:$0xff]  }
 0x189   :  { %v706_v42 = vpack.c.bf16 %v580_v41, %v577_v37  ;;  %v4871_v37 = vld [vmem:[#allocation2 + $0x1a4] ss:$16 sps:$4 sm:$0xff]  }
 0x18a   :  { %1536 = vmatmul.mubr.bf16.gmra.mrb[68].mxu1 %v4837_v36  ;;  %v4870_v36 = vld [vmem:[#allocation2 + $0x180] ss:$16 sps:$4 sm:$0xff]   ;;  %v4874_v39 = vld [vmem:[#allocation2 + $0x1c4] ss:$16 sps:$4 sm:$0xff]  }
 0x18b   :  { %1543 = vmatprep.mubr.bf16.mxu1 %v4838_v38  ;;  %1789 = vmatpush1.bf16.msra.mxu1 %v706_v42  ;;  %v4873_v38 = vld [vmem:[#allocation2 + $0x1a0] ss:$16 sps:$4 sm:$0xff]   ;;  %v4877_v41 = vld [vmem:[#allocation2 + $0x1e4] ss:$16 sps:$4 sm:$0xff]  }
 0x18c   :  { %1790 = vmatprep.subr.bf16.mxu1 %v5518_v32  ;;  %v4879_v42 = vld [vmem:[#allocation2 + $0x1e0] ss:$16 sps:$4 sm:$0xff]  }
 0x18d   :  { %v4297_v43 = vpop.f32.mrb[40].mxu1 }
 0x18e   :  { %v593_v45 = vpop.f32.mrb[41].mxu1 }
 0x18f   :  { %1791 = vmatpush1.bf16.msra.mxu1 %v707_v40  ;;  %v4298_v47 = vpop.f32.mrb[42].mxu1  ;;  %v4876_v40 = vld [vmem:[#allocation2 + $0x1c0] ss:$16 sps:$4 sm:$0xff]  }
 0x190   :  { %v709_v48 = vpack.c.bf16 %v4298_v47, %v4297_v43  ;;  %v596_v49 = vpop.f32.mrb[43].mxu1  ;;  %1792 = vmatprep.subr.bf16.mxu1 %v5518_v32  ;;  %v4880_v43 = vld [vmem:[#allocation2 + $0x204] ss:$16 sps:$4 sm:$0xff]  }
 0x191   :  { %v708_v50 = vpack.c.bf16 %v596_v49, %v593_v45  ;;  %v4883_v45 = vld [vmem:[#allocation2 + $0x224] ss:$16 sps:$4 sm:$0xff]  }
 0x192   :  { %1544 = vmatmul.mubr.bf16.gmra.mrb[72].mxu1 %v4840_v44  ;;  %v4882_v44 = vld [vmem:[#allocation2 + $0x200] ss:$16 sps:$4 sm:$0xff]   ;;  %v4886_v47 = vld [vmem:[#allocation2 + $0x244] ss:$16 sps:$4 sm:$0xff]  }
 0x193   :  { %1551 = vmatprep.mubr.bf16.mxu1 %v4841_v46  ;;  %1793 = vmatpush1.bf16.msra.mxu1 %v708_v50  ;;  %v4885_v46 = vld [vmem:[#allocation2 + $0x220] ss:$16 sps:$4 sm:$0xff]   ;;  %v4889_v49 = vld [vmem:[#allocation2 + $0x264] ss:$16 sps:$4 sm:$0xff]  }
 0x194   :  { %1794 = vmatprep.subr.bf16.mxu1 %v5518_v32  ;;  %v4891_v50 = vld [vmem:[#allocation2 + $0x260] ss:$16 sps:$4 sm:$0xff]  }
 0x195   :  { %v4301_v53 = vpop.f32.mrb[44].mxu1 }
 0x196   :  { %v609_v54 = vpop.f32.mrb[45].mxu1 }
 0x197   :  { %1795 = vmatpush1.bf16.msra.mxu1 %v709_v48  ;;  %v4302_v55 = vpop.f32.mrb[46].mxu1  ;;  %v4888_v48 = vld [vmem:[#allocation2 + $0x240] ss:$16 sps:$4 sm:$0xff]  }
 0x198   :  { %1796 = vmatprep.subr.bf16.mxu1 %v5518_v32  ;;  %v711_v56 = vpack.c.bf16 %v4302_v55, %v4301_v53  ;;  %v612_v57 = vpop.f32.mrb[47].mxu1  ;;  %v4895_v53 = vld [vmem:[#allocation2 + $0x2a4] ss:$16 sps:$4 sm:$0xff]  }
 0x199   :  { %v710_v58 = vpack.c.bf16 %v612_v57, %v609_v54  ;;  %v4897_v54 = vld [vmem:[#allocation2 + $0x2a0] ss:$16 sps:$4 sm:$0xff]   ;;  %v4898_v55 = vld [vmem:[#allocation2 + $0x2c4] ss:$16 sps:$4 sm:$0xff]  }
 0x19a   :  { %1552 = vmatmul.mubr.bf16.gmra.mrb[76].mxu1 %v4843_v51  ;;  %v4892_v51 = vld [vmem:[#allocation2 + $0x284] ss:$16 sps:$4 sm:$0xff]  }
 0x19b   :  { %1559 = vmatprep.mubr.bf16.mxu1 %v4844_v52  ;;  %1797 = vmatpush1.bf16.msra.mxu1 %v710_v58  ;;  %v4894_v52 = vld [vmem:[#allocation2 + $0x280] ss:$16 sps:$4 sm:$0xff]   ;;  %v4901_v57 = vld [vmem:[#allocation2 + $0x2e4] ss:$16 sps:$4 sm:$0xff]  }
 0x19c   :  { %1798 = vmatprep.subr.bf16.mxu1 %v5518_v32  ;;  %v4903_v58 = vld [vmem:[#allocation2 + $0x2e0] ss:$16 sps:$4 sm:$0xff]  }
 0x19d   :  { %v4305_v0 = vpop.f32.mrb[48].mxu1 }
 0x19e   :  { %v625_v2 = vpop.f32.mrb[49].mxu1 }
 0x19f   :  { %1799 = vmatpush1.bf16.msra.mxu1 %v711_v56  ;;  %v4306_v3 = vpop.f32.mrb[50].mxu1  ;;  %v4900_v56 = vld [vmem:[#allocation2 + $0x2c0] ss:$16 sps:$4 sm:$0xff]  }
 0x1a0   :  { %1800 = vmatprep.subr.bf16.mxu1 %v5518_v32  ;;  %v628_v4 = vpop.f32.mrb[51].mxu1  ;;  %v713_v5 = vpack.c.bf16 %v4306_v3, %v4305_v0  ;;  %v4912_v0 = vld [vmem:[#allocation2 + $0x340] ss:$16 sps:$4 sm:$0xff]   ;;  %v4916_v3 = vld [vmem:[#allocation2 + $0x384] ss:$16 sps:$4 sm:$0xff]  }
 0x1a1   :  { %v712_v6 = vpack.c.bf16 %v628_v4, %v625_v2  ;;  %v4915_v2 = vld [vmem:[#allocation2 + $0x360] ss:$16 sps:$4 sm:$0xff]  }
 0x1a2   :  { %1560 = vmatmul.mubr.bf16.gmra.mrb[80].mxu1 %v4846_v59  ;;  %v4904_v59 = vld [vmem:[#allocation2 + $0x304] ss:$16 sps:$4 sm:$0xff]   ;;  %v4918_v4 = vld [vmem:[#allocation2 + $0x380] ss:$16 sps:$4 sm:$0xff]  }
 0x1a3   :  { %1567 = vmatprep.mubr.bf16.mxu1 %v4847_v60  ;;  %1801 = vmatpush1.bf16.msra.mxu1 %v712_v6  ;;  %v4906_v60 = vld [vmem:[#allocation2 + $0x300] ss:$16 sps:$4 sm:$0xff]  }
 0x1a4   :  { %1802 = vmatprep.subr.bf16.mxu1 %v5518_v32  ;;  %v4921_v6 = vld [vmem:[#allocation2 + $0x3a0] ss:$16 sps:$4 sm:$0xff]  }
 0x1a5   :  { %v4309_v8 = vpop.f32.mrb[52].mxu1 }
 0x1a6   :  { %v641_v10 = vpop.f32.mrb[53].mxu1 }
 0x1a7   :  { %1803 = vmatpush1.bf16.msra.mxu1 %v713_v5  ;;  %v4310_v11 = vpop.f32.mrb[54].mxu1  ;;  %v4919_v5 = vld [vmem:[#allocation2 + $0x3a4] ss:$16 sps:$4 sm:$0xff]  }
 0x1a8   :  { %v644_v12 = vpop.f32.mrb[55].mxu1  ;;  %1804 = vmatprep.subr.bf16.mxu1 %v5518_v32  ;;  %v715_v15 = vpack.c.bf16 %v4310_v11, %v4309_v8  ;;  %v4924_v8 = vld [vmem:[#allocation2 + $0x3c0] ss:$16 sps:$4 sm:$0xff]   ;;  %v4930_v11 = vld [vmem:[#allocation2 + $0xc] ss:$16 sps:$4 sm:$0xff]  }
 0x1a9   :  { %v714_v13 = vpack.c.bf16 %v644_v12, %v641_v10  ;;  %v4927_v10 = vld [vmem:[#allocation2 + $0x3e0] ss:$16 sps:$4 sm:$0xff]   ;;  %v4928_v12 = vld [vmem:[#allocation2 + $0x8] ss:$16 sps:$4 sm:$0xff]  }
 0x1aa   :  { %1568 = vmatmul.mubr.bf16.gmra.mrb[84].mxu1 %v4849_v61  ;;  %v4907_v61 = vld [vmem:[#allocation2 + $0x324] ss:$16 sps:$4 sm:$0xff]  }
 0x1ab   :  { %1575 = vmatprep.mubr.bf16.mxu1 %v4850_v62  ;;  %1805 = vmatpush1.bf16.msra.mxu1 %v714_v13  ;;  %v4909_v62 = vld [vmem:[#allocation2 + $0x320] ss:$16 sps:$4 sm:$0xff]   ;;  %v4931_v13 = vld [vmem:[#allocation2 + $0x2c] ss:$16 sps:$4 sm:$0xff]  }
 0x1ac   :  { %1806 = vmatprep.subr.bf16.mxu1 %v5518_v32 }
 0x1ad   :  { %v4313_v16 = vpop.f32.mrb[56].mxu1 }
 0x1ae   :  { %v657_v18 = vpop.f32.mrb[57].mxu1 }
 0x1af   :  { %1807 = vmatpush1.bf16.msra.mxu1 %v715_v15  ;;  %v4314_v19 = vpop.f32.mrb[58].mxu1  ;;  %v4934_v15 = vld [vmem:[#allocation2 + $0x4c] ss:$16 sps:$4 sm:$0xff]  }
 0x1b0   :  { %v660_v20 = vpop.f32.mrb[59].mxu1  ;;  %1808 = vmatprep.subr.bf16.mxu1 %v5518_v32  ;;  %v717_v23 = vpack.c.bf16 %v4314_v19, %v4313_v16  ;;  %v4936_v16 = vld [vmem:[#allocation2 + $0x48] ss:$16 sps:$4 sm:$0xff]   ;;  %v4940_v19 = vld [vmem:[#allocation2 + $0x8c] ss:$16 sps:$4 sm:$0xff]  }
 0x1b1   :  { %v716_v21 = vpack.c.bf16 %v660_v20, %v657_v18  ;;  %v4939_v18 = vld [vmem:[#allocation2 + $0x68] ss:$16 sps:$4 sm:$0xff]  }
 0x1b2   :  { %1576 = vmatmul.mubr.bf16.gmra.mrb[88].mxu1 %v4852_v63  ;;  %v4910_v63 = vld [vmem:[#allocation2 + $0x344] ss:$16 sps:$4 sm:$0xff]   ;;  %v4942_v20 = vld [vmem:[#allocation2 + $0x88] ss:$16 sps:$4 sm:$0xff]  }
 0x1b3   :  { %1583 = vmatprep.mubr.bf16.mxu1 %v4853_v1  ;;  %1809 = vmatpush1.bf16.msra.mxu1 %v716_v21  ;;  %v4913_v1 = vld [vmem:[#allocation2 + $0x364] ss:$16 sps:$4 sm:$0xff]   ;;  %v4943_v21 = vld [vmem:[#allocation2 + $0xac] ss:$16 sps:$4 sm:$0xff]  }
 0x1b4   :  { %1810 = vmatprep.subr.bf16.mxu1 %v5518_v32 }
 0x1b5   :  { %v4317_v24 = vpop.f32.mrb[60].mxu1 }
 0x1b6   :  { %v673_v26 = vpop.f32.mrb[61].mxu1 }
 0x1b7   :  { %v4318_v27 = vpop.f32.mrb[62].mxu1  ;;  %1811 = vmatpush1.bf16.msra.mxu1 %v717_v23  ;;  %v4946_v23 = vld [vmem:[#allocation2 + $0xcc] ss:$16 sps:$4 sm:$0xff]  }
 0x1b8   :  { %v676_v28 = vpop.f32.mrb[63].mxu1  ;;  %1812 = vmatprep.subr.bf16.mxu1 %v5518_v32  ;;  %v719_v31 = vpack.c.bf16 %v4318_v27, %v4317_v24  ;;  %v4948_v24 = vld [vmem:[#allocation2 + $0xc8] ss:$16 sps:$4 sm:$0xff]   ;;  %v4952_v27 = vld [vmem:[#allocation2 + $0x10c] ss:$16 sps:$4 sm:$0xff]  }
 0x1b9   :  { %v718_v29 = vpack.c.bf16 %v676_v28, %v673_v26  ;;  %v4951_v26 = vld [vmem:[#allocation2 + $0xe8] ss:$16 sps:$4 sm:$0xff]  }
 0x1ba   :  { %1584 = vmatmul.mubr.bf16.gmra.mrb[92].mxu1 %v4855_v7  ;;  %v4922_v7 = vld [vmem:[#allocation2 + $0x3c4] ss:$16 sps:$4 sm:$0xff]   ;;  %v4954_v28 = vld [vmem:[#allocation2 + $0x108] ss:$16 sps:$4 sm:$0xff]  }
 0x1bb   :  { %1591 = vmatprep.mubr.bf16.mxu1 %v4856_v9  ;;  %1813 = vmatpush1.bf16.msra.mxu1 %v718_v29  ;;  %v4925_v9 = vld [vmem:[#allocation2 + $0x3e4] ss:$16 sps:$4 sm:$0xff]   ;;  %v4955_v29 = vld [vmem:[#allocation2 + $0x12c] ss:$16 sps:$4 sm:$0xff]  }
 0x1bc   :  { %1814 = vmatprep.subr.bf16.mxu1 %v5518_v32 }
 0x1bf   :  { %1815 = vmatpush1.bf16.msra.mxu1 %v719_v31  ;;  %v4957_v31 = vld [vmem:[#allocation2 + $0x128] ss:$16 sps:$4 sm:$0xff]  }
 0x1c2   :  { %1592 = vmatmul.mubr.bf16.gmra.mrb[96].mxu1 %v4858_v14  ;;  %v4933_v14 = vld [vmem:[#allocation2 + $0x28] ss:$16 sps:$4 sm:$0xff]  }
 0x1c3   :  { %1599 = vmatprep.mubr.bf16.mxu1 %v4859_v17  ;;  %v4937_v17 = vld [vmem:[#allocation2 + $0x6c] ss:$16 sps:$4 sm:$0xff]  }
 0x1ca   :  { %1600 = vmatmul.mubr.bf16.gmra.mrb[100].mxu1 %v4861_v22  ;;  %v4945_v22 = vld [vmem:[#allocation2 + $0xa8] ss:$16 sps:$4 sm:$0xff]  }
 0x1cb   :  { %1607 = vmatprep.mubr.bf16.mxu1 %v4862_v25  ;;  %v4949_v25 = vld [vmem:[#allocation2 + $0xec] ss:$16 sps:$4 sm:$0xff]  }
 0x1d2   :  { %1608 = vmatmul.mubr.bf16.gmra.mrb[104].mxu1 %v4864_v30  ;;  %v5003_v30 = vld [vmem:[#allocation7] sm:$0xff]  }
 0x1d3   :  { %1615 = vmatprep.mubr.bf16.mxu1 %v4865_v33  ;;  %4319 = vmatprep.subr.bf16.mxu0 %v5003_v30  ;;  %v4958_v33 = vld [vmem:[#allocation2 + $0x14c] ss:$16 sps:$4 sm:$0xff]  }
 0x1d4   :  { %4320 = vmatpush3.bf16.msra.mxu0 %v5003_v30 }
 0x1da   :  { %1616 = vmatmul.mubr.bf16.gmra.mrb[108].mxu1 %v4867_v34  ;;  %v5007_v34 = vld [vmem:[#allocation7 + $0x8] sm:$0xff]  }
 0x1db   :  { %1623 = vmatprep.mubr.bf16.mxu1 %v4868_v35  ;;  %4321 = vmatprep.subr.bf16.mxu0 %v5007_v34  ;;  %v5008_v35 = vld [vmem:[#allocation7 + $0x10] sm:$0xff]  }
 0x1dc   :  { %4322 = vmatpush3.bf16.msra.mxu0 %v5007_v34 }
 0x1dd   :  { %4323 = vmatprep.subr.bf16.mxu0 %v5008_v35 }
 0x1e0   :  { %4324 = vmatpush3.bf16.msra.mxu0 %v5008_v35 }
 0x1e2   :  { %1624 = vmatmul.mubr.bf16.gmra.mrb[112].mxu1 %v4870_v36  ;;  %v4960_v36 = vld [vmem:[#allocation2 + $0x148] ss:$16 sps:$4 sm:$0xff]  }
 0x1e3   :  { %1631 = vmatprep.mubr.bf16.mxu1 %v4871_v37  ;;  %v4961_v37 = vld [vmem:[#allocation2 + $0x16c] ss:$16 sps:$4 sm:$0xff]  }
 0x1ea   :  { %1632 = vmatmul.mubr.bf16.gmra.mrb[116].mxu1 %v4873_v38  ;;  %v5012_v38 = vld [vmem:[#allocation7 + $0x18] sm:$0xff]  }
 0x1eb   :  { %1639 = vmatprep.mubr.bf16.mxu1 %v4874_v39  ;;  %4325 = vmatprep.subr.bf16.mxu0 %v5012_v38  ;;  %v5013_v39 = vld [vmem:[#allocation7 + $0x20] sm:$0xff]  }
 0x1ec   :  { %4326 = vmatpush3.bf16.msra.mxu0 %v5012_v38  ;;  %v5025_v38 = vld [vmem:[#allocation2 + $0x3a8] ss:$16 sps:$4 sm:$0xff]  }
 0x1ed   :  { %4327 = vmatprep.subr.bf16.mxu0 %v5013_v39 }
 0x1f0   :  { %4328 = vmatpush3.bf16.msra.mxu0 %v5013_v39 }
 0x1f2   :  { %1640 = vmatmul.mubr.bf16.gmra.mrb[120].mxu1 %v4876_v40  ;;  %v4963_v40 = vld [vmem:[#allocation2 + $0x168] ss:$16 sps:$4 sm:$0xff]  }
 0x1f3   :  { %1647 = vmatprep.mubr.bf16.mxu1 %v4877_v41  ;;  %v4964_v41 = vld [vmem:[#allocation2 + $0x18c] ss:$16 sps:$4 sm:$0xff]  }
 0x1fa   :  { %1648 = vmatmul.mubr.bf16.gmra.mrb[124].mxu1 %v4879_v42  ;;  %v5017_v42 = vld [vmem:[#allocation7 + $0x28] sm:$0xff]  }
 0x1fb   :  { %1655 = vmatprep.mubr.bf16.mxu1 %v4880_v43  ;;  %4329 = vmatprep.subr.bf16.mxu0 %v5017_v42  ;;  %v5018_v43 = vld [vmem:[#allocation7 + $0x30] sm:$0xff]  }
 0x1fc   :  { %4330 = vmatpush3.bf16.msra.mxu0 %v5017_v42 }
 0x1fd   :  { %4331 = vmatprep.subr.bf16.mxu0 %v5018_v43 }
 0x200   :  { %4332 = vmatpush3.bf16.msra.mxu0 %v5018_v43 }
 0x202   :  { %1656 = vmatmul.mubr.bf16.gmra.mrb[128].mxu1 %v4882_v44  ;;  %v4966_v44 = vld [vmem:[#allocation2 + $0x188] ss:$16 sps:$4 sm:$0xff]  }
 0x203   :  { %1663 = vmatprep.mubr.bf16.mxu1 %v4883_v45  ;;  %v4967_v45 = vld [vmem:[#allocation2 + $0x1ac] ss:$16 sps:$4 sm:$0xff]  }
 0x20a   :  { %1664 = vmatmul.mubr.bf16.gmra.mrb[132].mxu1 %v4885_v46  ;;  %v5022_v46 = vld [vmem:[#allocation7 + $0x38] sm:$0xff]  }
 0x20b   :  { %1671 = vmatprep.mubr.bf16.mxu1 %v4886_v47  ;;  %4333 = vmatprep.subr.bf16.mxu0 %v5022_v46  ;;  %v4969_v47 = vld [vmem:[#allocation2 + $0x1a8] ss:$16 sps:$4 sm:$0xff]  }
 0x20c   :  { %4334 = vmatpush3.bf16.msra.mxu0 %v5022_v46 }
 0x20d   :  { %2561 = vmatprep.subr.bf16.mxu0 %v5518_v32 }
 0x212   :  { %1672 = vmatmul.mubr.bf16.gmra.mrb[136].mxu1 %v4888_v48  ;;  %v4970_v48 = vld [vmem:[#allocation2 + $0x1cc] ss:$16 sps:$4 sm:$0xff]  }
 0x213   :  { %1679 = vmatprep.mubr.bf16.mxu1 %v4889_v49  ;;  %v4972_v49 = vld [vmem:[#allocation2 + $0x1c8] ss:$16 sps:$4 sm:$0xff]  }
 0x21a   :  { %1680 = vmatmul.mubr.bf16.gmra.mrb[140].mxu1 %v4891_v50  ;;  %v4973_v50 = vld [vmem:[#allocation2 + $0x1ec] ss:$16 sps:$4 sm:$0xff]  }
 0x21b   :  { %1687 = vmatprep.mubr.bf16.mxu1 %v4892_v51  ;;  %v4975_v51 = vld [vmem:[#allocation2 + $0x1e8] ss:$16 sps:$4 sm:$0xff]  }
 0x222   :  { %1688 = vmatmul.mubr.bf16.gmra.mrb[144].mxu1 %v4894_v52  ;;  %v4976_v52 = vld [vmem:[#allocation2 + $0x20c] ss:$16 sps:$4 sm:$0xff]  }
 0x223   :  { %1695 = vmatprep.mubr.bf16.mxu1 %v4895_v53  ;;  %v4978_v53 = vld [vmem:[#allocation2 + $0x208] ss:$16 sps:$4 sm:$0xff]  }
 0x22a   :  { %1696 = vmatmul.mubr.bf16.gmra.mrb[148].mxu1 %v4897_v54  ;;  %v4979_v54 = vld [vmem:[#allocation2 + $0x22c] ss:$16 sps:$4 sm:$0xff]  }
 0x22b   :  { %1703 = vmatprep.mubr.bf16.mxu1 %v4898_v55  ;;  %v4981_v55 = vld [vmem:[#allocation2 + $0x228] ss:$16 sps:$4 sm:$0xff]  }
 0x232   :  { %1704 = vmatmul.mubr.bf16.gmra.mrb[152].mxu1 %v4900_v56  ;;  %v4982_v56 = vld [vmem:[#allocation2 + $0x24c] ss:$16 sps:$4 sm:$0xff]  }
 0x233   :  { %1711 = vmatprep.mubr.bf16.mxu1 %v4901_v57  ;;  %v4984_v57 = vld [vmem:[#allocation2 + $0x248] ss:$16 sps:$4 sm:$0xff]  }
 0x23a   :  { %1712 = vmatmul.mubr.bf16.gmra.mrb[156].mxu1 %v4903_v58  ;;  %v4985_v58 = vld [vmem:[#allocation2 + $0x26c] ss:$16 sps:$4 sm:$0xff]  }
 0x23b   :  { %1719 = vmatprep.mubr.bf16.mxu1 %v4904_v59  ;;  %v4987_v59 = vld [vmem:[#allocation2 + $0x268] ss:$16 sps:$4 sm:$0xff]  }
 0x242   :  { %1720 = vmatmul.mubr.bf16.gmra.mrb[160].mxu1 %v4906_v60  ;;  %v4988_v60 = vld [vmem:[#allocation2 + $0x28c] ss:$16 sps:$4 sm:$0xff]  }
 0x243   :  { %1727 = vmatprep.mubr.bf16.mxu1 %v4907_v61  ;;  %v4990_v61 = vld [vmem:[#allocation2 + $0x288] ss:$16 sps:$4 sm:$0xff]  }
 0x24a   :  { %1728 = vmatmul.mubr.bf16.gmra.mrb[164].mxu1 %v4909_v62  ;;  %v4991_v62 = vld [vmem:[#allocation2 + $0x2ac] ss:$16 sps:$4 sm:$0xff]  }
 0x24b   :  { %1735 = vmatprep.mubr.bf16.mxu1 %v4910_v63  ;;  %v4993_v63 = vld [vmem:[#allocation2 + $0x2a8] ss:$16 sps:$4 sm:$0xff]  }
 0x252   :  { %1736 = vmatmul.mubr.bf16.gmra.mrb[168].mxu1 %v4912_v0  ;;  %v4994_v0 = vld [vmem:[#allocation2 + $0x2cc] ss:$16 sps:$4 sm:$0xff]  }
 0x253   :  { %1743 = vmatprep.mubr.bf16.mxu1 %v4913_v1  ;;  %v4996_v1 = vld [vmem:[#allocation2 + $0x2c8] ss:$16 sps:$4 sm:$0xff]  }
 0x25a   :  { %1744 = vmatmul.mubr.bf16.gmra.mrb[172].mxu1 %v4915_v2  ;;  %v4997_v2 = vld [vmem:[#allocation2 + $0x2ec] ss:$16 sps:$4 sm:$0xff]  }
 0x25b   :  { %1751 = vmatprep.mubr.bf16.mxu1 %v4916_v3  ;;  %v4999_v3 = vld [vmem:[#allocation2 + $0x2e8] ss:$16 sps:$4 sm:$0xff]  }
 0x262   :  { %1752 = vmatmul.mubr.bf16.gmra.mrb[176].mxu1 %v4918_v4  ;;  %v5000_v4 = vld [vmem:[#allocation2 + $0x30c] ss:$16 sps:$4 sm:$0xff]  }
 0x263   :  { %1759 = vmatprep.mubr.bf16.mxu1 %v4919_v5  ;;  %v5002_v5 = vld [vmem:[#allocation2 + $0x308] ss:$16 sps:$4 sm:$0xff]  }
 0x26a   :  { %1760 = vmatmul.mubr.bf16.gmra.mrb[180].mxu1 %v4921_v6  ;;  %v5004_v6 = vld [vmem:[#allocation2 + $0x32c] ss:$16 sps:$4 sm:$0xff]  }
 0x26b   :  { %1767 = vmatprep.mubr.bf16.mxu1 %v4922_v7  ;;  %v5006_v7 = vld [vmem:[#allocation2 + $0x328] ss:$16 sps:$4 sm:$0xff]  }
 0x272   :  { %1768 = vmatmul.mubr.bf16.gmra.mrb[184].mxu1 %v4924_v8  ;;  %v5009_v8 = vld [vmem:[#allocation2 + $0x34c] ss:$16 sps:$4 sm:$0xff]  }
 0x273   :  { %1775 = vmatprep.mubr.bf16.mxu1 %v4925_v9  ;;  %v5011_v9 = vld [vmem:[#allocation2 + $0x348] ss:$16 sps:$4 sm:$0xff]  }
 0x27a   :  { %1776 = vmatmul.mubr.bf16.gmra.mrb[188].mxu1 %v4927_v10  ;;  %v5014_v10 = vld [vmem:[#allocation2 + $0x36c] ss:$16 sps:$4 sm:$0xff]  }
 0x27b   :  { %1816 = vmatprep.mubr.bf16.mxu1 %v4930_v11  ;;  %v5654_v11 = vld [vmem:[%s6786_s3] ss:$0 sm:$0xff] }
 0x282   :  { %1817 = vmatmul.mubr.bf16.vlgmr.msra.gmra.mrb[64].mxu1 %v4928_v12 }
 0x283   :  { %1824 = vmatprep.mubr.bf16.mxu1 %v4931_v13 }
 0x28a   :  { %1825 = vmatmul.mubr.bf16.gmra.mrb[68].mxu1 %v4933_v14 }
 0x28b   :  { %1832 = vmatprep.mubr.bf16.mxu1 %v4934_v15  ;;  %v5016_v15 = vld [vmem:[#allocation2 + $0x368] ss:$16 sps:$4 sm:$0xff]  }
 0x292   :  { %1833 = vmatmul.mubr.bf16.gmra.mrb[72].mxu1 %v4936_v16 }
 0x293   :  { %1840 = vmatprep.mubr.bf16.mxu1 %v4937_v17  ;;  %v5019_v17 = vld [vmem:[#allocation2 + $0x38c] ss:$16 sps:$4 sm:$0xff]  }
 0x29a   :  { %1841 = vmatmul.mubr.bf16.gmra.mrb[76].mxu1 %v4939_v18 }
 0x29b   :  { %1848 = vmatprep.mubr.bf16.mxu1 %v4940_v19 }
 0x2a2   :  { %1849 = vmatmul.mubr.bf16.gmra.mrb[80].mxu1 %v4942_v20 }
 0x2a3   :  { %1856 = vmatprep.mubr.bf16.mxu1 %v4943_v21 }
 0x2aa   :  { %1857 = vmatmul.mubr.bf16.gmra.mrb[84].mxu1 %v4945_v22 }
 0x2ab   :  { %1864 = vmatprep.mubr.bf16.mxu1 %v4946_v23 }
 0x2b2   :  { %1865 = vmatmul.mubr.bf16.gmra.mrb[88].mxu1 %v4948_v24 }
 0x2b3   :  { %1872 = vmatprep.mubr.bf16.mxu1 %v4949_v25 }
 0x2ba   :  { %1873 = vmatmul.mubr.bf16.gmra.mrb[92].mxu1 %v4951_v26  ;;  %v5021_v26 = vld [vmem:[#allocation2 + $0x388] ss:$16 sps:$4 sm:$0xff]  }
 0x2bb   :  { %1880 = vmatprep.mubr.bf16.mxu1 %v4952_v27 }
 0x2c2   :  { %1881 = vmatmul.mubr.bf16.gmra.mrb[96].mxu1 %v4954_v28  ;;  %v5023_v28 = vld [vmem:[#allocation2 + $0x3ac] ss:$16 sps:$4 sm:$0xff]  }
 0x2c3   :  { %1888 = vmatprep.mubr.bf16.mxu1 %v4955_v29 }
 0x2ca   :  { %1889 = vmatmul.mubr.bf16.gmra.mrb[100].mxu1 %v4957_v31 }
 0x2cb   :  { %1896 = vmatprep.mubr.bf16.mxu1 %v4958_v33 }
 0x2d2   :  { %1897 = vmatmul.mubr.bf16.gmra.mrb[104].mxu1 %v4960_v36 }
 0x2d3   :  { %1904 = vmatprep.mubr.bf16.mxu1 %v4961_v37 }
 0x2da   :  { %1905 = vmatmul.mubr.bf16.gmra.mrb[108].mxu1 %v4963_v40  ;;  %v5026_v40 = vld [vmem:[#allocation2 + $0x3cc] ss:$16 sps:$4 sm:$0xff]  }
 0x2db   :  { %1912 = vmatprep.mubr.bf16.mxu1 %v4964_v41 }
 0x2e2   :  { %1913 = vmatmul.mubr.bf16.gmra.mrb[112].mxu1 %v4966_v44 }
 0x2e3   :  { %1920 = vmatprep.mubr.bf16.mxu1 %v4967_v45 }
 0x2ea   :  { %1921 = vmatmul.mubr.bf16.gmra.mrb[116].mxu1 %v4969_v47 }
 0x2eb   :  { %1928 = vmatprep.mubr.bf16.mxu1 %v4970_v48 }
 0x2f2   :  { %1929 = vmatmul.mubr.bf16.gmra.mrb[120].mxu1 %v4972_v49  ;;  %v5028_v49 = vld [vmem:[#allocation2 + $0x3c8] ss:$16 sps:$4 sm:$0xff]  }
 0x2f3   :  { %1936 = vmatprep.mubr.bf16.mxu1 %v4973_v50 }
 0x2fa   :  { %1937 = vmatmul.mubr.bf16.gmra.mrb[124].mxu1 %v4975_v51  ;;  %v5029_v51 = vld [vmem:[#allocation2 + $0x3ec] ss:$16 sps:$4 sm:$0xff]  }
 0x2fb   :  { %1944 = vmatprep.mubr.bf16.mxu1 %v4976_v52 }
 0x302   :  { %1945 = vmatmul.mubr.bf16.gmra.mrb[128].mxu1 %v4978_v53 }
 0x303   :  { %1952 = vmatprep.mubr.bf16.mxu1 %v4979_v54 }
 0x30a   :  { %1953 = vmatmul.mubr.bf16.gmra.mrb[132].mxu1 %v4981_v55 }
 0x30b   :  { %1960 = vmatprep.mubr.bf16.mxu1 %v4982_v56 }
 0x312   :  { %1961 = vmatmul.mubr.bf16.gmra.mrb[136].mxu1 %v4984_v57 }
 0x313   :  { %1968 = vmatprep.mubr.bf16.mxu1 %v4985_v58 }
 0x31a   :  { %1969 = vmatmul.mubr.bf16.gmra.mrb[140].mxu1 %v4987_v59 }
 0x31b   :  { %1976 = vmatprep.mubr.bf16.mxu1 %v4988_v60  ;;  %v5031_v60 = vld [vmem:[#allocation2 + $0x3e8] ss:$16 sps:$4 sm:$0xff]  }
 0x322   :  { %1977 = vmatmul.mubr.bf16.gmra.mrb[144].mxu1 %v4990_v61 }
 0x323   :  { %1984 = vmatprep.mubr.bf16.mxu1 %v4991_v62 }
 0x32a   :  { %1985 = vmatmul.mubr.bf16.gmra.mrb[148].mxu1 %v4993_v63 }
 0x32b   :  { %1992 = vmatprep.mubr.bf16.mxu1 %v4994_v0 }
 0x332   :  { %1993 = vmatmul.mubr.bf16.gmra.mrb[152].mxu1 %v4996_v1 }
 0x333   :  { %2000 = vmatprep.mubr.bf16.mxu1 %v4997_v2 }
 0x33a   :  { %2001 = vmatmul.mubr.bf16.gmra.mrb[156].mxu1 %v4999_v3 }
 0x33b   :  { %2008 = vmatprep.mubr.bf16.mxu1 %v5000_v4 }
 0x342   :  { %2009 = vmatmul.mubr.bf16.gmra.mrb[160].mxu1 %v5002_v5 }
 0x343   :  { %2016 = vmatprep.mubr.bf16.mxu1 %v5004_v6 }
 0x34a   :  { %2017 = vmatmul.mubr.bf16.gmra.mrb[164].mxu1 %v5006_v7 }
 0x34b   :  { %2024 = vmatprep.mubr.bf16.mxu1 %v5009_v8 }
 0x352   :  { %2025 = vmatmul.mubr.bf16.gmra.mrb[168].mxu1 %v5011_v9 }
 0x353   :  { %2032 = vmatprep.mubr.bf16.mxu1 %v5014_v10 }
 0x355   :  { %v1818_v12 = vpop.f32.mrb[64].mxu1 }
 0x356   :  { %v4399_v13 = vadd.f32 %v5654_v11, %v1818_v12  ;;  %v1820_v14 = vpop.f32.mrb[65].mxu1 }
 0x357   :  { %v1821_v16 = vpop.f32.mrb[66].mxu1 }
 0x358   :  { %v4400_v18 = vadd.f32 %v5654_v11, %v1821_v16  ;;  %v1823_v19 = vpop.f32.mrb[67].mxu1  ;;  %v2073_v20 = vmax.f32 %v4399_v13, 0.0 }
 0x35a   :  { %v2074_v21 = vmax.f32 %v4400_v18, 0.0  ;;  %2033 = vmatmul.mubr.bf16.gmra.mrb[172].mxu1 %v5016_v15 }
 0x35b   :  { %2040 = vmatprep.mubr.bf16.mxu1 %v5019_v17 }
 0x35c   :  { %v2137_v22 = vpack.c.bf16 %v2074_v21, %v2073_v20 }
 0x35d   :  { %v1826_v23 = vpop.f32.mrb[68].mxu1 }
 0x35e   :  { %v4401_v24 = vadd.f32 %v5654_v11, %v1826_v23  ;;  %v1828_v25 = vpop.f32.mrb[69].mxu1  ;;  %4335 = vmatprep.mubr.bf16.mxu0 %v2137_v22 }
 0x35f   :  { %v1829_v27 = vpop.f32.mrb[70].mxu1 }
 0x360   :  { %v4402_v29 = vadd.f32 %v5654_v11, %v1829_v27  ;;  %v1831_v30 = vpop.f32.mrb[71].mxu1  ;;  %v2075_v31 = vmax.f32 %v4401_v24, 0.0 }
 0x362   :  { %v2076_v33 = vmax.f32 %v4402_v29, 0.0  ;;  %2041 = vmatmul.mubr.bf16.gmra.mrb[176].mxu1 %v5021_v26 }
 0x363   :  { %2048 = vmatprep.mubr.bf16.mxu1 %v5023_v28 }
 0x364   :  { %v2138_v34 = vpack.c.bf16 %v2076_v33, %v2075_v31 }
 0x365   :  { %v1834_v35 = vpop.f32.mrb[72].mxu1 }
 0x366   :  { %v4403_v36 = vadd.f32 %v5654_v11, %v1834_v35  ;;  %v1836_v37 = vpop.f32.mrb[73].mxu1  ;;  %4336 = vmatmul.mubr.bf16.vlgmr.msra.gmra.mrb[0].mxu0 %v2138_v34 }
 0x367   :  { %v1837_v39 = vpop.f32.mrb[74].mxu1 }
 0x368   :  { %v4404_v41 = vadd.f32 %v5654_v11, %v1837_v39  ;;  %v1839_v42 = vpop.f32.mrb[75].mxu1  ;;  %v2077_v43 = vmax.f32 %v4403_v36, 0.0 }
 0x36a   :  { %v2078_v44 = vmax.f32 %v4404_v41, 0.0  ;;  %2049 = vmatmul.mubr.bf16.gmra.mrb[180].mxu1 %v5025_v38 }
 0x36b   :  { %2056 = vmatprep.mubr.bf16.mxu1 %v5026_v40 }
 0x36c   :  { %v2139_v45 = vpack.c.bf16 %v2078_v44, %v2077_v43 }
 0x36d   :  { %v1842_v46 = vpop.f32.mrb[76].mxu1 }
 0x36e   :  { %v4405_v47 = vadd.f32 %v5654_v11, %v1842_v46  ;;  %v1844_v48 = vpop.f32.mrb[77].mxu1  ;;  %4339 = vmatprep.mubr.bf16.mxu0 %v2139_v45 }
 0x36f   :  { %v1845_v50 = vpop.f32.mrb[78].mxu1 }
 0x370   :  { %v4406_v52 = vadd.f32 %v5654_v11, %v1845_v50  ;;  %v1847_v53 = vpop.f32.mrb[79].mxu1  ;;  %v2079_v54 = vmax.f32 %v4405_v47, 0.0 }
 0x372   :  { %v2080_v55 = vmax.f32 %v4406_v52, 0.0  ;;  %2057 = vmatmul.mubr.bf16.gmra.mrb[184].mxu1 %v5028_v49 }
 0x373   :  { %2064 = vmatprep.mubr.bf16.mxu1 %v5029_v51 }
 0x374   :  { %v2140_v56 = vpack.c.bf16 %v2080_v55, %v2079_v54 }
 0x375   :  { %v1850_v57 = vpop.f32.mrb[80].mxu1 }
 0x376   :  { %v4407_v58 = vadd.f32 %v5654_v11, %v1850_v57  ;;  %v1852_v59 = vpop.f32.mrb[81].mxu1  ;;  %4340 = vmatmul.mubr.bf16.gmra.mrb[4].mxu0 %v2140_v56 }
 0x377   :  { %v1853_v61 = vpop.f32.mrb[82].mxu1 }
 0x378   :  { %v4408_v62 = vadd.f32 %v5654_v11, %v1853_v61  ;;  %v1855_v63 = vpop.f32.mrb[83].mxu1  ;;  %v2081_v0 = vmax.f32 %v4407_v58, 0.0 }
 0x37a   :  { %v2082_v1 = vmax.f32 %v4408_v62, 0.0  ;;  %2065 = vmatmul.mubr.bf16.gmra.mrb[188].mxu1 %v5031_v60 }
 0x37c   :  { %v2141_v2 = vpack.c.bf16 %v2082_v1, %v2081_v0 }
 0x37d   :  { %v1858_v3 = vpop.f32.mrb[84].mxu1 }
 0x37e   :  { %v4409_v4 = vadd.f32 %v5654_v11, %v1858_v3  ;;  %v1860_v5 = vpop.f32.mrb[85].mxu1  ;;  %4343 = vmatprep.mubr.bf16.mxu0 %v2141_v2 }
 0x37f   :  { %v1861_v6 = vpop.f32.mrb[86].mxu1 }
 0x380   :  { %v4410_v7 = vadd.f32 %v5654_v11, %v1861_v6  ;;  %v1863_v8 = vpop.f32.mrb[87].mxu1  ;;  %v2083_v9 = vmax.f32 %v4409_v4, 0.0 }
 0x382   :  { %v2084_v10 = vmax.f32 %v4410_v7, 0.0 }
 0x384   :  { %v2142_v12 = vpack.c.bf16 %v2084_v10, %v2083_v9 }
 0x385   :  { %v1866_v13 = vpop.f32.mrb[88].mxu1 }
 0x386   :  { %v4411_v14 = vadd.f32 %v5654_v11, %v1866_v13  ;;  %v1868_v15 = vpop.f32.mrb[89].mxu1  ;;  %4344 = vmatmul.mubr.bf16.gmra.mrb[8].mxu0 %v2142_v12 }
 0x387   :  { %v1869_v16 = vpop.f32.mrb[90].mxu1 }
 0x388   :  { %v4412_v17 = vadd.f32 %v5654_v11, %v1869_v16  ;;  %v1871_v18 = vpop.f32.mrb[91].mxu1  ;;  %v2085_v19 = vmax.f32 %v4411_v14, 0.0 }
 0x38a   :  { %v2086_v20 = vmax.f32 %v4412_v17, 0.0 }
 0x38c   :  { %v2143_v21 = vpack.c.bf16 %v2086_v20, %v2085_v19 }
 0x38d   :  { %v1874_v22 = vpop.f32.mrb[92].mxu1 }
 0x38e   :  { %v4413_v23 = vadd.f32 %v5654_v11, %v1874_v22  ;;  %v1876_v24 = vpop.f32.mrb[93].mxu1  ;;  %4347 = vmatprep.mubr.bf16.mxu0 %v2143_v21 }
 0x38f   :  { %v1877_v25 = vpop.f32.mrb[94].mxu1 }
 0x390   :  { %v4414_v26 = vadd.f32 %v5654_v11, %v1877_v25  ;;  %v1879_v27 = vpop.f32.mrb[95].mxu1  ;;  %v2087_v28 = vmax.f32 %v4413_v23, 0.0 }
 0x392   :  { %v2088_v29 = vmax.f32 %v4414_v26, 0.0 }
 0x394   :  { %v2144_v30 = vpack.c.bf16 %v2088_v29, %v2087_v28 }
 0x395   :  { %v1882_v31 = vpop.f32.mrb[96].mxu1 }
 0x396   :  { %v4415_v33 = vadd.f32 %v5654_v11, %v1882_v31  ;;  %v1884_v34 = vpop.f32.mrb[97].mxu1  ;;  %4348 = vmatmul.mubr.bf16.gmra.mrb[12].mxu0 %v2144_v30 }
 0x397   :  { %v1885_v35 = vpop.f32.mrb[98].mxu1 }
 0x398   :  { %v4416_v36 = vadd.f32 %v5654_v11, %v1885_v35  ;;  %v1887_v37 = vpop.f32.mrb[99].mxu1  ;;  %v2089_v38 = vmax.f32 %v4415_v33, 0.0 }
 0x39a   :  { %v2090_v39 = vmax.f32 %v4416_v36, 0.0 }
 0x39c   :  { %v2145_v40 = vpack.c.bf16 %v2090_v39, %v2089_v38 }
 0x39d   :  { %v1890_v41 = vpop.f32.mrb[100].mxu1 }
 0x39e   :  { %v4417_v42 = vadd.f32 %v5654_v11, %v1890_v41  ;;  %v1892_v43 = vpop.f32.mrb[101].mxu1  ;;  %4351 = vmatprep.mubr.bf16.mxu0 %v2145_v40 }
 0x39f   :  { %v1893_v44 = vpop.f32.mrb[102].mxu1 }
 0x3a0   :  { %v4418_v45 = vadd.f32 %v5654_v11, %v1893_v44  ;;  %v1895_v46 = vpop.f32.mrb[103].mxu1  ;;  %v2091_v47 = vmax.f32 %v4417_v42, 0.0 }
 0x3a2   :  { %v2092_v48 = vmax.f32 %v4418_v45, 0.0 }
 0x3a4   :  { %v2146_v49 = vpack.c.bf16 %v2092_v48, %v2091_v47 }
 0x3a5   :  { %v1898_v50 = vpop.f32.mrb[104].mxu1 }
 0x3a6   :  { %v4419_v51 = vadd.f32 %v5654_v11, %v1898_v50  ;;  %v1900_v52 = vpop.f32.mrb[105].mxu1  ;;  %4352 = vmatmul.mubr.bf16.gmra.mrb[16].mxu0 %v2146_v49 }
 0x3a7   :  { %v1901_v53 = vpop.f32.mrb[106].mxu1 }
 0x3a8   :  { %v4420_v54 = vadd.f32 %v5654_v11, %v1901_v53  ;;  %v1903_v55 = vpop.f32.mrb[107].mxu1  ;;  %v2093_v56 = vmax.f32 %v4419_v51, 0.0 }
 0x3aa   :  { %v2094_v57 = vmax.f32 %v4420_v54, 0.0 }
 0x3ac   :  { %v2147_v58 = vpack.c.bf16 %v2094_v57, %v2093_v56 }
 0x3ad   :  { %v1906_v59 = vpop.f32.mrb[108].mxu1 }
 0x3ae   :  { %v4421_v60 = vadd.f32 %v5654_v11, %v1906_v59  ;;  %v1908_v61 = vpop.f32.mrb[109].mxu1  ;;  %4355 = vmatprep.mubr.bf16.mxu0 %v2147_v58 }
 0x3af   :  { %v1909_v62 = vpop.f32.mrb[110].mxu1 }
 0x3b0   :  { %v4422_v63 = vadd.f32 %v5654_v11, %v1909_v62  ;;  %v1911_v0 = vpop.f32.mrb[111].mxu1  ;;  %v2095_v1 = vmax.f32 %v4421_v60, 0.0 }
 0x3b2   :  { %v2096_v2 = vmax.f32 %v4422_v63, 0.0 }
 0x3b4   :  { %v2148_v3 = vpack.c.bf16 %v2096_v2, %v2095_v1 }
 0x3b5   :  { %v1914_v4 = vpop.f32.mrb[112].mxu1 }
 0x3b6   :  { %v4423_v5 = vadd.f32 %v5654_v11, %v1914_v4  ;;  %v1916_v6 = vpop.f32.mrb[113].mxu1  ;;  %4356 = vmatmul.mubr.bf16.gmra.mrb[20].mxu0 %v2148_v3 }
 0x3b7   :  { %v1917_v7 = vpop.f32.mrb[114].mxu1 }
 0x3b8   :  { %v4424_v8 = vadd.f32 %v5654_v11, %v1917_v7  ;;  %v1919_v9 = vpop.f32.mrb[115].mxu1  ;;  %v2097_v10 = vmax.f32 %v4423_v5, 0.0 }
 0x3ba   :  { %v2098_v12 = vmax.f32 %v4424_v8, 0.0 }
 0x3bc   :  { %v2149_v13 = vpack.c.bf16 %v2098_v12, %v2097_v10 }
 0x3bd   :  { %v1922_v14 = vpop.f32.mrb[116].mxu1 }
 0x3be   :  { %v4425_v15 = vadd.f32 %v5654_v11, %v1922_v14  ;;  %v1924_v16 = vpop.f32.mrb[117].mxu1  ;;  %4359 = vmatprep.mubr.bf16.mxu0 %v2149_v13 }
 0x3bf   :  { %v1925_v17 = vpop.f32.mrb[118].mxu1 }
 0x3c0   :  { %v4426_v18 = vadd.f32 %v5654_v11, %v1925_v17  ;;  %v1927_v19 = vpop.f32.mrb[119].mxu1  ;;  %v2099_v20 = vmax.f32 %v4425_v15, 0.0 }
 0x3c2   :  { %v2100_v21 = vmax.f32 %v4426_v18, 0.0 }
 0x3c4   :  { %v2150_v22 = vpack.c.bf16 %v2100_v21, %v2099_v20 }
 0x3c5   :  { %v1930_v23 = vpop.f32.mrb[120].mxu1 }
 0x3c6   :  { %v4427_v24 = vadd.f32 %v5654_v11, %v1930_v23  ;;  %v1932_v25 = vpop.f32.mrb[121].mxu1  ;;  %4360 = vmatmul.mubr.bf16.gmra.mrb[24].mxu0 %v2150_v22 }
 0x3c7   :  { %v1933_v26 = vpop.f32.mrb[122].mxu1 }
 0x3c8   :  { %v4428_v27 = vadd.f32 %v5654_v11, %v1933_v26  ;;  %v1935_v28 = vpop.f32.mrb[123].mxu1  ;;  %v2101_v29 = vmax.f32 %v4427_v24, 0.0 }
 0x3ca   :  { %v2102_v30 = vmax.f32 %v4428_v27, 0.0 }
 0x3cc   :  { %v2151_v31 = vpack.c.bf16 %v2102_v30, %v2101_v29 }
 0x3cd   :  { %v1938_v33 = vpop.f32.mrb[124].mxu1 }
 0x3ce   :  { %v4429_v34 = vadd.f32 %v5654_v11, %v1938_v33  ;;  %v1940_v35 = vpop.f32.mrb[125].mxu1  ;;  %4363 = vmatprep.mubr.bf16.mxu0 %v2151_v31 }
 0x3cf   :  { %v1941_v36 = vpop.f32.mrb[126].mxu1 }
 0x3d0   :  { %v4430_v37 = vadd.f32 %v5654_v11, %v1941_v36  ;;  %v1943_v38 = vpop.f32.mrb[127].mxu1  ;;  %v2103_v39 = vmax.f32 %v4429_v34, 0.0 }
 0x3d2   :  { %v2104_v40 = vmax.f32 %v4430_v37, 0.0 }
 0x3d4   :  { %v2152_v41 = vpack.c.bf16 %v2104_v40, %v2103_v39 }
 0x3d5   :  { %v1946_v42 = vpop.f32.mrb[128].mxu1 }
 0x3d6   :  { %v4431_v43 = vadd.f32 %v5654_v11, %v1946_v42  ;;  %v1948_v44 = vpop.f32.mrb[129].mxu1  ;;  %4364 = vmatmul.mubr.bf16.gmra.mrb[28].mxu0 %v2152_v41 }
 0x3d7   :  { %v1949_v45 = vpop.f32.mrb[130].mxu1 }
 0x3d8   :  { %v4432_v46 = vadd.f32 %v5654_v11, %v1949_v45  ;;  %v1951_v47 = vpop.f32.mrb[131].mxu1  ;;  %v2105_v48 = vmax.f32 %v4431_v43, 0.0 }
 0x3da   :  { %v2106_v49 = vmax.f32 %v4432_v46, 0.0 }
 0x3dc   :  { %v2153_v50 = vpack.c.bf16 %v2106_v49, %v2105_v48 }
 0x3dd   :  { %v1954_v51 = vpop.f32.mrb[132].mxu1 }
 0x3de   :  { %v4433_v52 = vadd.f32 %v5654_v11, %v1954_v51  ;;  %v1956_v53 = vpop.f32.mrb[133].mxu1  ;;  %4367 = vmatprep.mubr.bf16.mxu0 %v2153_v50 }
 0x3df   :  { %v1957_v54 = vpop.f32.mrb[134].mxu1 }
 0x3e0   :  { %v4434_v55 = vadd.f32 %v5654_v11, %v1957_v54  ;;  %v1959_v56 = vpop.f32.mrb[135].mxu1  ;;  %v2107_v57 = vmax.f32 %v4433_v52, 0.0 }
 0x3e2   :  { %v2108_v58 = vmax.f32 %v4434_v55, 0.0 }
 0x3e4   :  { %v2154_v59 = vpack.c.bf16 %v2108_v58, %v2107_v57 }
 0x3e5   :  { %v1962_v60 = vpop.f32.mrb[136].mxu1 }
 0x3e6   :  { %v4435_v61 = vadd.f32 %v5654_v11, %v1962_v60  ;;  %v1964_v62 = vpop.f32.mrb[137].mxu1  ;;  %4368 = vmatmul.mubr.bf16.gmra.mrb[32].mxu0 %v2154_v59 }
 0x3e7   :  { %v1965_v63 = vpop.f32.mrb[138].mxu1 }
 0x3e8   :  { %v4436_v0 = vadd.f32 %v5654_v11, %v1965_v63  ;;  %v1967_v1 = vpop.f32.mrb[139].mxu1  ;;  %v2109_v2 = vmax.f32 %v4435_v61, 0.0 }
 0x3ea   :  { %v2110_v3 = vmax.f32 %v4436_v0, 0.0 }
 0x3ec   :  { %v2155_v4 = vpack.c.bf16 %v2110_v3, %v2109_v2 }
 0x3ed   :  { %v1970_v5 = vpop.f32.mrb[140].mxu1 }
 0x3ee   :  { %v4437_v6 = vadd.f32 %v5654_v11, %v1970_v5  ;;  %v1972_v7 = vpop.f32.mrb[141].mxu1  ;;  %4371 = vmatprep.mubr.bf16.mxu0 %v2155_v4 }
 0x3ef   :  { %v1973_v8 = vpop.f32.mrb[142].mxu1 }
 0x3f0   :  { %v4438_v9 = vadd.f32 %v5654_v11, %v1973_v8  ;;  %v1975_v10 = vpop.f32.mrb[143].mxu1  ;;  %v2111_v12 = vmax.f32 %v4437_v6, 0.0 }
 0x3f2   :  { %v2112_v13 = vmax.f32 %v4438_v9, 0.0 }
 0x3f4   :  { %v2156_v14 = vpack.c.bf16 %v2112_v13, %v2111_v12 }
 0x3f5   :  { %v1978_v15 = vpop.f32.mrb[144].mxu1 }
 0x3f6   :  { %v4439_v16 = vadd.f32 %v5654_v11, %v1978_v15  ;;  %v1980_v17 = vpop.f32.mrb[145].mxu1  ;;  %4372 = vmatmul.mubr.bf16.gmra.mrb[36].mxu0 %v2156_v14 }
 0x3f7   :  { %v1981_v18 = vpop.f32.mrb[146].mxu1 }
 0x3f8   :  { %v4440_v19 = vadd.f32 %v5654_v11, %v1981_v18  ;;  %v1983_v20 = vpop.f32.mrb[147].mxu1  ;;  %v2113_v21 = vmax.f32 %v4439_v16, 0.0 }
 0x3fa   :  { %v2114_v22 = vmax.f32 %v4440_v19, 0.0 }
 0x3fc   :  { %v2157_v23 = vpack.c.bf16 %v2114_v22, %v2113_v21 }
 0x3fd   :  { %v1986_v24 = vpop.f32.mrb[148].mxu1 }
 0x3fe   :  { %v4441_v25 = vadd.f32 %v5654_v11, %v1986_v24  ;;  %v1988_v26 = vpop.f32.mrb[149].mxu1  ;;  %4375 = vmatprep.mubr.bf16.mxu0 %v2157_v23 }
 0x3ff   :  { %v1989_v27 = vpop.f32.mrb[150].mxu1 }
 0x400   :  { %v4442_v28 = vadd.f32 %v5654_v11, %v1989_v27  ;;  %v1991_v29 = vpop.f32.mrb[151].mxu1  ;;  %v2115_v30 = vmax.f32 %v4441_v25, 0.0 }
 0x402   :  { %v2116_v31 = vmax.f32 %v4442_v28, 0.0 }
 0x404   :  { %v2158_v33 = vpack.c.bf16 %v2116_v31, %v2115_v30 }
 0x405   :  { %v1994_v34 = vpop.f32.mrb[152].mxu1 }
 0x406   :  { %v4443_v35 = vadd.f32 %v5654_v11, %v1994_v34  ;;  %v1996_v36 = vpop.f32.mrb[153].mxu1  ;;  %4376 = vmatmul.mubr.bf16.gmra.mrb[40].mxu0 %v2158_v33 }
 0x407   :  { %v1997_v37 = vpop.f32.mrb[154].mxu1 }
 0x408   :  { %v4444_v38 = vadd.f32 %v5654_v11, %v1997_v37  ;;  %v1999_v39 = vpop.f32.mrb[155].mxu1  ;;  %v2117_v40 = vmax.f32 %v4443_v35, 0.0 }
 0x40a   :  { %v2118_v41 = vmax.f32 %v4444_v38, 0.0 }
 0x40c   :  { %v2159_v42 = vpack.c.bf16 %v2118_v41, %v2117_v40 }
 0x40d   :  { %v2002_v43 = vpop.f32.mrb[156].mxu1 }
 0x40e   :  { %v4445_v44 = vadd.f32 %v5654_v11, %v2002_v43  ;;  %v2004_v45 = vpop.f32.mrb[157].mxu1  ;;  %4379 = vmatprep.mubr.bf16.mxu0 %v2159_v42 }
 0x40f   :  { %v2005_v46 = vpop.f32.mrb[158].mxu1 }
 0x410   :  { %v4446_v47 = vadd.f32 %v5654_v11, %v2005_v46  ;;  %v2007_v48 = vpop.f32.mrb[159].mxu1  ;;  %v2119_v49 = vmax.f32 %v4445_v44, 0.0 }
 0x412   :  { %v2120_v50 = vmax.f32 %v4446_v47, 0.0 }
 0x414   :  { %v2160_v51 = vpack.c.bf16 %v2120_v50, %v2119_v49 }
 0x415   :  { %v2010_v52 = vpop.f32.mrb[160].mxu1 }
 0x416   :  { %v4447_v53 = vadd.f32 %v5654_v11, %v2010_v52  ;;  %v2012_v54 = vpop.f32.mrb[161].mxu1  ;;  %4380 = vmatmul.mubr.bf16.gmra.mrb[44].mxu0 %v2160_v51 }
 0x417   :  { %v2013_v55 = vpop.f32.mrb[162].mxu1 }
 0x418   :  { %v4448_v56 = vadd.f32 %v5654_v11, %v2013_v55  ;;  %v2015_v57 = vpop.f32.mrb[163].mxu1  ;;  %v2121_v58 = vmax.f32 %v4447_v53, 0.0 }
 0x41a   :  { %v2122_v59 = vmax.f32 %v4448_v56, 0.0 }
 0x41c   :  { %v2161_v60 = vpack.c.bf16 %v2122_v59, %v2121_v58 }
 0x41d   :  { %v2018_v61 = vpop.f32.mrb[164].mxu1 }
 0x41e   :  { %v4449_v62 = vadd.f32 %v5654_v11, %v2018_v61  ;;  %v2020_v63 = vpop.f32.mrb[165].mxu1  ;;  %4383 = vmatprep.mubr.bf16.mxu0 %v2161_v60 }
 0x41f   :  { %v2021_v0 = vpop.f32.mrb[166].mxu1 }
 0x420   :  { %v4450_v1 = vadd.f32 %v5654_v11, %v2021_v0  ;;  %v2023_v2 = vpop.f32.mrb[167].mxu1  ;;  %v2123_v3 = vmax.f32 %v4449_v62, 0.0 }
 0x422   :  { %v2124_v4 = vmax.f32 %v4450_v1, 0.0 }
 0x424   :  { %v2162_v5 = vpack.c.bf16 %v2124_v4, %v2123_v3 }
 0x425   :  { %v2026_v6 = vpop.f32.mrb[168].mxu1 }
 0x426   :  { %v4451_v7 = vadd.f32 %v5654_v11, %v2026_v6  ;;  %v2028_v8 = vpop.f32.mrb[169].mxu1  ;;  %4384 = vmatmul.mubr.bf16.gmra.mrb[48].mxu0 %v2162_v5 }
 0x427   :  { %v2029_v9 = vpop.f32.mrb[170].mxu1 }
 0x428   :  { %v4452_v10 = vadd.f32 %v5654_v11, %v2029_v9  ;;  %v2031_v12 = vpop.f32.mrb[171].mxu1  ;;  %v2125_v13 = vmax.f32 %v4451_v7, 0.0 }
 0x42a   :  { %v2126_v14 = vmax.f32 %v4452_v10, 0.0  ;;  %v5288_v10 = vld [vmem:[#allocation2 + $0x4] ss:$16 sps:$4 sm:$0xff]  }
 0x42c   :  { %v2163_v15 = vpack.c.bf16 %v2126_v14, %v2125_v13 }
 0x42d   :  { %v2034_v16 = vpop.f32.mrb[172].mxu1 }
 0x42e   :  { %v4453_v17 = vadd.f32 %v5654_v11, %v2034_v16  ;;  %v2036_v18 = vpop.f32.mrb[173].mxu1  ;;  %4387 = vmatprep.mubr.bf16.mxu0 %v2163_v15 }
 0x42f   :  { %v2037_v19 = vpop.f32.mrb[174].mxu1 }
 0x430   :  { %v4454_v20 = vadd.f32 %v5654_v11, %v2037_v19  ;;  %v2039_v21 = vpop.f32.mrb[175].mxu1  ;;  %v2127_v22 = vmax.f32 %v4453_v17, 0.0 }
 0x432   :  { %v2128_v23 = vmax.f32 %v4454_v20, 0.0 }
 0x434   :  { %v2164_v24 = vpack.c.bf16 %v2128_v23, %v2127_v22 }
 0x435   :  { %v2042_v25 = vpop.f32.mrb[176].mxu1 }
 0x436   :  { %v4455_v26 = vadd.f32 %v5654_v11, %v2042_v25  ;;  %v2044_v27 = vpop.f32.mrb[177].mxu1  ;;  %4388 = vmatmul.mubr.bf16.gmra.mrb[52].mxu0 %v2164_v24 }
 0x437   :  { %v2045_v28 = vpop.f32.mrb[178].mxu1 }
 0x438   :  { %v4456_v29 = vadd.f32 %v5654_v11, %v2045_v28  ;;  %v2047_v30 = vpop.f32.mrb[179].mxu1  ;;  %v2129_v33 = vmax.f32 %v4455_v26, 0.0 }
 0x439   :  { %v4337_v31 = vpop.f32.mrb[0].mxu0 }
 0x43a   :  { %v2130_v34 = vmax.f32 %v4456_v29, 0.0  ;;  %v2267_v35 = vpop.f32.mrb[1].mxu0 }
 0x43b   :  { %v4338_v36 = vpop.f32.mrb[2].mxu0 }
 0x43c   :  { %v2165_v37 = vpack.c.bf16 %v2130_v34, %v2129_v33  ;;  %v2523_v38 = vpack.c.bf16 %v4338_v36, %v4337_v31  ;;  %v2270_v39 = vpop.f32.mrb[3].mxu0 }
 0x43d   :  { %v2522_v40 = vpack.c.bf16 %v2270_v39, %v2267_v35  ;;  %v2050_v41 = vpop.f32.mrb[180].mxu1 }
 0x43e   :  { %v4457_v42 = vadd.f32 %v5654_v11, %v2050_v41  ;;  %v2052_v43 = vpop.f32.mrb[181].mxu1  ;;  %4391 = vmatprep.mubr.bf16.mxu0 %v2165_v37 }
 0x43f   :  { %v2053_v44 = vpop.f32.mrb[182].mxu1  ;;  %2562 = vmatpush1.bf16.msra.mxu0 %v2522_v40 }
 0x440   :  { %v4458_v45 = vadd.f32 %v5654_v11, %v2053_v44  ;;  %v2055_v46 = vpop.f32.mrb[183].mxu1  ;;  %2563 = vmatprep.subr.bf16.mxu0 %v5518_v32  ;;  %v2131_v47 = vmax.f32 %v4457_v42, 0.0 }
 0x442   :  { %v2132_v48 = vmax.f32 %v4458_v45, 0.0 }
 0x443   :  { %2564 = vmatpush1.bf16.msra.mxu0 %v2523_v38 }
 0x444   :  { %v2166_v49 = vpack.c.bf16 %v2132_v48, %v2131_v47  ;;  %2565 = vmatprep.subr.bf16.mxu0 %v5518_v32  ;;  %v5289_v48 = vld [vmem:[#allocation2] ss:$16 sps:$4 sm:$0xff]  }
 0x445   :  { %v2058_v50 = vpop.f32.mrb[184].mxu1 }
 0x446   :  { %v4459_v51 = vadd.f32 %v5654_v11, %v2058_v50  ;;  %v2060_v52 = vpop.f32.mrb[185].mxu1  ;;  %4392 = vmatmul.mubr.bf16.gmra.mrb[56].mxu0 %v2166_v49  ;;  %v5290_v49 = vld [vmem:[#allocation2 + $0x24] ss:$16 sps:$4 sm:$0xff]  }
 0x447   :  { %v2061_v53 = vpop.f32.mrb[186].mxu1 }
 0x448   :  { %v4460_v54 = vadd.f32 %v5654_v11, %v2061_v53  ;;  %v2063_v55 = vpop.f32.mrb[187].mxu1  ;;  %v2133_v57 = vmax.f32 %v4459_v51, 0.0 }
 0x449   :  { %v4341_v56 = vpop.f32.mrb[4].mxu0 }
 0x44a   :  { %v2134_v58 = vmax.f32 %v4460_v54, 0.0  ;;  %v2283_v59 = vpop.f32.mrb[5].mxu0 }
 0x44b   :  { %v4342_v60 = vpop.f32.mrb[6].mxu0 }
 0x44c   :  { %v2167_v61 = vpack.c.bf16 %v2134_v58, %v2133_v57  ;;  %v2525_v62 = vpack.c.bf16 %v4342_v60, %v4341_v56  ;;  %v2286_v63 = vpop.f32.mrb[7].mxu0  ;;  %v5291_v56 = vld [vmem:[#allocation2 + $0x20] ss:$16 sps:$4 sm:$0xff]   ;;  %v5292_v57 = vld [vmem:[#allocation2 + $0x44] ss:$16 sps:$4 sm:$0xff]  }
 0x44d   :  { %v2524_v0 = vpack.c.bf16 %v2286_v63, %v2283_v59  ;;  %v2066_v1 = vpop.f32.mrb[188].mxu1  ;;  %v5293_v58 = vld [vmem:[#allocation2 + $0x40] ss:$16 sps:$4 sm:$0xff]   ;;  %v5294_v59 = vld [vmem:[#allocation2 + $0x64] ss:$16 sps:$4 sm:$0xff]  }
 0x44e   :  { %v4461_v2 = vadd.f32 %v5654_v11, %v2066_v1  ;;  %v2068_v3 = vpop.f32.mrb[189].mxu1  ;;  %4395 = vmatprep.mubr.bf16.mxu0 %v2167_v61 }
 0x44f   :  { %v2069_v4 = vpop.f32.mrb[190].mxu1  ;;  %2566 = vmatpush1.bf16.msra.mxu0 %v2524_v0  ;;  %v5296_v3 = vld [vmem:[#allocation2 + $0x84] ss:$16 sps:$4 sm:$0xff]  }
 0x450   :  { %v4462_v5 = vadd.f32 %v5654_v11, %v2069_v4  ;;  %v2071_v6 = vpop.f32.mrb[191].mxu1  ;;  %2567 = vmatprep.subr.bf16.mxu0 %v5518_v32  ;;  %v2135_v7 = vmax.f32 %v4461_v2, 0.0  ;;  %v5295_v2 = vld [vmem:[#allocation2 + $0x60] ss:$16 sps:$4 sm:$0xff]  }
 0x451   :  { %v5297_v4 = vld [vmem:[#allocation2 + $0x80] ss:$16 sps:$4 sm:$0xff]  }
 0x452   :  { %v2136_v8 = vmax.f32 %v4462_v5, 0.0  ;;  %v5298_v5 = vld [vmem:[#allocation2 + $0xa4] ss:$16 sps:$4 sm:$0xff]  }
 0x453   :  { %2568 = vmatpush1.bf16.msra.mxu0 %v2525_v62 }
 0x454   :  { %v2168_v9 = vpack.c.bf16 %v2136_v8, %v2135_v7  ;;  %2569 = vmatprep.subr.bf16.mxu0 %v5518_v32 }
 0x456   :  { %4396 = vmatmul.mubr.bf16.gmra.mrb[60].mxu0 %v2168_v9 }
 0x457   :  { %2593 = vmatprep.mubr.bf16.mxu0 %v5288_v10 }
 0x459   :  { %v4345_v12 = vpop.f32.mrb[8].mxu0 }
 0x45a   :  { %v2299_v13 = vpop.f32.mrb[9].mxu0 }
 0x45b   :  { %v4346_v14 = vpop.f32.mrb[10].mxu0 }
 0x45c   :  { %v2527_v15 = vpack.c.bf16 %v4346_v14, %v4345_v12  ;;  %v2302_v16 = vpop.f32.mrb[11].mxu0  ;;  %v5300_v14 = vld [vmem:[#allocation2 + $0xc4] ss:$16 sps:$4 sm:$0xff]  }
 0x45d   :  { %v2526_v17 = vpack.c.bf16 %v2302_v16, %v2299_v13  ;;  %v5299_v13 = vld [vmem:[#allocation2 + $0xa0] ss:$16 sps:$4 sm:$0xff]   ;;  %v5302_v16 = vld [vmem:[#allocation2 + $0xe4] ss:$16 sps:$4 sm:$0xff]  }
 0x45f   :  { %2570 = vmatpush1.bf16.msra.mxu0 %v2526_v17 }
 0x460   :  { %2571 = vmatprep.subr.bf16.mxu0 %v5518_v32 }
 0x463   :  { %2572 = vmatpush1.bf16.msra.mxu0 %v2527_v15  ;;  %v5301_v15 = vld [vmem:[#allocation2 + $0xc0] ss:$16 sps:$4 sm:$0xff]  }
 0x464   :  { %2573 = vmatprep.subr.bf16.mxu0 %v5518_v32 }
 0x469   :  { %v4349_v11 = vpop.f32.mrb[12].mxu0 }
 0x46a   :  { %v2315_v18 = vpop.f32.mrb[13].mxu0 }
 0x46b   :  { %v4350_v19 = vpop.f32.mrb[14].mxu0 }
 0x46c   :  { %v2529_v20 = vpack.c.bf16 %v4350_v19, %v4349_v11  ;;  %v2318_v21 = vpop.f32.mrb[15].mxu0 }
 0x46d   :  { %v2528_v22 = vpack.c.bf16 %v2318_v21, %v2315_v18 }
 0x46f   :  { %2574 = vmatpush1.bf16.msra.mxu0 %v2528_v22  ;;  %v5303_v22 = vld [vmem:[#allocation2 + $0xe0] ss:$16 sps:$4 sm:$0xff]  }
 0x470   :  { %2575 = vmatprep.subr.bf16.mxu0 %v5518_v32 }
 0x473   :  { %2576 = vmatpush1.bf16.msra.mxu0 %v2529_v20 }
 0x474   :  { %2577 = vmatprep.subr.bf16.mxu0 %v5518_v32 }
 0x479   :  { %v4353_v23 = vpop.f32.mrb[16].mxu0 }
 0x47a   :  { %v2331_v24 = vpop.f32.mrb[17].mxu0 }
 0x47b   :  { %v4354_v25 = vpop.f32.mrb[18].mxu0 }
 0x47c   :  { %v2531_v26 = vpack.c.bf16 %v4354_v25, %v4353_v23  ;;  %v2334_v27 = vpop.f32.mrb[19].mxu0  ;;  %v5304_v23 = vld [vmem:[#allocation2 + $0x104] ss:$16 sps:$4 sm:$0xff]  }
 0x47d   :  { %v2530_v28 = vpack.c.bf16 %v2334_v27, %v2331_v24  ;;  %v5305_v24 = vld [vmem:[#allocation2 + $0x100] ss:$16 sps:$4 sm:$0xff]   ;;  %v5306_v25 = vld [vmem:[#allocation2 + $0x124] ss:$16 sps:$4 sm:$0xff]  }
 0x47f   :  { %2578 = vmatpush1.bf16.msra.mxu0 %v2530_v28 }
 0x480   :  { %2579 = vmatprep.subr.bf16.mxu0 %v5518_v32 }
 0x483   :  { %2580 = vmatpush1.bf16.msra.mxu0 %v2531_v26 }
 0x484   :  { %2581 = vmatprep.subr.bf16.mxu0 %v5518_v32 }
 0x489   :  { %v4357_v29 = vpop.f32.mrb[20].mxu0 }
 0x48a   :  { %v2347_v30 = vpop.f32.mrb[21].mxu0 }
 0x48b   :  { %v4358_v31 = vpop.f32.mrb[22].mxu0 }
 0x48c   :  { %v2533_v33 = vpack.c.bf16 %v4358_v31, %v4357_v29  ;;  %v2350_v34 = vpop.f32.mrb[23].mxu0 }
 0x48d   :  { %v2532_v35 = vpack.c.bf16 %v2350_v34, %v2347_v30  ;;  %v5308_v34 = vld [vmem:[#allocation2 + $0x144] ss:$16 sps:$4 sm:$0xff]  }
 0x48f   :  { %2582 = vmatpush1.bf16.msra.mxu0 %v2532_v35  ;;  %v5309_v35 = vld [vmem:[#allocation2 + $0x140] ss:$16 sps:$4 sm:$0xff]  }
 0x490   :  { %2583 = vmatprep.subr.bf16.mxu0 %v5518_v32 }
 0x493   :  { %2584 = vmatpush1.bf16.msra.mxu0 %v2533_v33  ;;  %v5307_v33 = vld [vmem:[#allocation2 + $0x120] ss:$16 sps:$4 sm:$0xff]  }
 0x494   :  { %2585 = vmatprep.subr.bf16.mxu0 %v5518_v32 }
 0x499   :  { %v4361_v36 = vpop.f32.mrb[24].mxu0 }
 0x49a   :  { %v2363_v37 = vpop.f32.mrb[25].mxu0 }
 0x49b   :  { %v4362_v38 = vpop.f32.mrb[26].mxu0 }
 0x49c   :  { %v2535_v39 = vpack.c.bf16 %v4362_v38, %v4361_v36  ;;  %v2366_v40 = vpop.f32.mrb[27].mxu0  ;;  %v5310_v36 = vld [vmem:[#allocation2 + $0x164] ss:$16 sps:$4 sm:$0xff]  }
 0x49d   :  { %v2534_v41 = vpack.c.bf16 %v2366_v40, %v2363_v37 }
 0x49f   :  { %2586 = vmatpush1.bf16.msra.mxu0 %v2534_v41 }
 0x4a0   :  { %2587 = vmatprep.subr.bf16.mxu0 %v5518_v32 }
 0x4a3   :  { %2588 = vmatpush1.bf16.msra.mxu0 %v2535_v39 }
 0x4a4   :  { %2589 = vmatprep.subr.bf16.mxu0 %v5518_v32 }
 0x4a9   :  { %v4365_v42 = vpop.f32.mrb[28].mxu0 }
 0x4aa   :  { %v2379_v43 = vpop.f32.mrb[29].mxu0 }
 0x4ab   :  { %v4366_v44 = vpop.f32.mrb[30].mxu0 }
 0x4ac   :  { %v2537_v45 = vpack.c.bf16 %v4366_v44, %v4365_v42  ;;  %v2382_v46 = vpop.f32.mrb[31].mxu0  ;;  %v5312_v44 = vld [vmem:[#allocation2 + $0x184] ss:$16 sps:$4 sm:$0xff]  }
 0x4ad   :  { %v2536_v47 = vpack.c.bf16 %v2382_v46, %v2379_v43  ;;  %v5311_v43 = vld [vmem:[#allocation2 + $0x160] ss:$16 sps:$4 sm:$0xff]   ;;  %v5314_v46 = vld [vmem:[#allocation2 + $0x1a4] ss:$16 sps:$4 sm:$0xff]  }
 0x4af   :  { %2590 = vmatpush1.bf16.msra.mxu0 %v2536_v47 }
 0x4b0   :  { %2591 = vmatprep.subr.bf16.mxu0 %v5518_v32 }
 0x4b3   :  { %2592 = vmatpush1.bf16.msra.mxu0 %v2537_v45  ;;  %v5313_v45 = vld [vmem:[#allocation2 + $0x180] ss:$16 sps:$4 sm:$0xff]  }
 0x4b4   :  { %2850 = vmatprep.subr.bf16.mxu0 %v5518_v32 }
 0x4b6   :  { %2594 = vmatmul.mubr.bf16.vlgmr.msra.gmra.mrb[64].mxu0 %v5289_v48 }
 0x4b7   :  { %2601 = vmatprep.mubr.bf16.mxu0 %v5290_v49 }
 0x4b9   :  { %v4369_v50 = vpop.f32.mrb[32].mxu0 }
 0x4ba   :  { %v2395_v51 = vpop.f32.mrb[33].mxu0 }
 0x4bb   :  { %v4370_v52 = vpop.f32.mrb[34].mxu0 }
 0x4bc   :  { %v2539_v53 = vpack.c.bf16 %v4370_v52, %v4369_v50  ;;  %v2398_v54 = vpop.f32.mrb[35].mxu0 }
 0x4bd   :  { %v2538_v55 = vpack.c.bf16 %v2398_v54, %v2395_v51  ;;  %v5316_v54 = vld [vmem:[#allocation2 + $0x1c4] ss:$16 sps:$4 sm:$0xff]  }
 0x4be   :  { %2602 = vmatmul.mubr.bf16.gmra.mrb[68].mxu0 %v5291_v56  ;;  %v5318_v56 = vld [vmem:[#allocation2 + $0x1e4] ss:$16 sps:$4 sm:$0xff]  }
 0x4bf   :  { %2851 = vmatpush1.bf16.msra.mxu0 %v2538_v55  ;;  %2609 = vmatprep.mubr.bf16.mxu0 %v5292_v57  ;;  %v5317_v55 = vld [vmem:[#allocation2 + $0x1c0] ss:$16 sps:$4 sm:$0xff]  }
 0x4c0   :  { %2852 = vmatprep.subr.bf16.mxu0 %v5518_v32 }
 0x4c3   :  { %2853 = vmatpush1.bf16.msra.mxu0 %v2539_v53  ;;  %v5315_v53 = vld [vmem:[#allocation2 + $0x1a0] ss:$16 sps:$4 sm:$0xff]  }
 0x4c4   :  { %2854 = vmatprep.subr.bf16.mxu0 %v5518_v32 }
 0x4c6   :  { %2610 = vmatmul.mubr.bf16.gmra.mrb[72].mxu0 %v5293_v58 }
 0x4c7   :  { %2617 = vmatprep.mubr.bf16.mxu0 %v5294_v59 }
 0x4c9   :  { %v4373_v60 = vpop.f32.mrb[36].mxu0 }
 0x4ca   :  { %v2411_v61 = vpop.f32.mrb[37].mxu0 }
 0x4cb   :  { %v4374_v62 = vpop.f32.mrb[38].mxu0 }
 0x4cc   :  { %v2541_v63 = vpack.c.bf16 %v4374_v62, %v4373_v60  ;;  %v2414_v0 = vpop.f32.mrb[39].mxu0 }
 0x4cd   :  { %v2540_v1 = vpack.c.bf16 %v2414_v0, %v2411_v61  ;;  %v5320_v0 = vld [vmem:[#allocation2 + $0x204] ss:$16 sps:$4 sm:$0xff]  }
 0x4ce   :  { %2618 = vmatmul.mubr.bf16.gmra.mrb[76].mxu0 %v5295_v2  ;;  %v5322_v2 = vld [vmem:[#allocation2 + $0x224] ss:$16 sps:$4 sm:$0xff]  }
 0x4cf   :  { %2855 = vmatpush1.bf16.msra.mxu0 %v2540_v1  ;;  %2625 = vmatprep.mubr.bf16.mxu0 %v5296_v3  ;;  %v5321_v1 = vld [vmem:[#allocation2 + $0x200] ss:$16 sps:$4 sm:$0xff]  }
 0x4d0   :  { %2856 = vmatprep.subr.bf16.mxu0 %v5518_v32  ;;  %v5323_v3 = vld [vmem:[#allocation2 + $0x220] ss:$16 sps:$4 sm:$0xff]  }
 0x4d3   :  { %2857 = vmatpush1.bf16.msra.mxu0 %v2541_v63  ;;  %v5319_v63 = vld [vmem:[#allocation2 + $0x1e0] ss:$16 sps:$4 sm:$0xff]  }
 0x4d4   :  { %2858 = vmatprep.subr.bf16.mxu0 %v5518_v32 }
 0x4d6   :  { %2626 = vmatmul.mubr.bf16.gmra.mrb[80].mxu0 %v5297_v4  ;;  %v5324_v4 = vld [vmem:[#allocation2 + $0x244] ss:$16 sps:$4 sm:$0xff]  }
 0x4d7   :  { %2633 = vmatprep.mubr.bf16.mxu0 %v5298_v5  ;;  %v5325_v5 = vld [vmem:[#allocation2 + $0x240] ss:$16 sps:$4 sm:$0xff]  }
 0x4d9   :  { %v4377_v6 = vpop.f32.mrb[40].mxu0 }
 0x4da   :  { %v2427_v7 = vpop.f32.mrb[41].mxu0 }
 0x4db   :  { %v4378_v8 = vpop.f32.mrb[42].mxu0 }
 0x4dc   :  { %v2543_v9 = vpack.c.bf16 %v4378_v8, %v4377_v6  ;;  %v2430_v10 = vpop.f32.mrb[43].mxu0  ;;  %v5326_v6 = vld [vmem:[#allocation2 + $0x264] ss:$16 sps:$4 sm:$0xff]  }
 0x4dd   :  { %v2542_v12 = vpack.c.bf16 %v2430_v10, %v2427_v7  ;;  %v5327_v7 = vld [vmem:[#allocation2 + $0x260] ss:$16 sps:$4 sm:$0xff]   ;;  %v5328_v8 = vld [vmem:[#allocation2 + $0x284] ss:$16 sps:$4 sm:$0xff]  }
 0x4de   :  { %2634 = vmatmul.mubr.bf16.gmra.mrb[84].mxu0 %v5299_v13  ;;  %v5331_v10 = vld [vmem:[#allocation2 + $0x2a0] ss:$16 sps:$4 sm:$0xff]  }
 0x4df   :  { %2859 = vmatpush1.bf16.msra.mxu0 %v2542_v12  ;;  %2641 = vmatprep.mubr.bf16.mxu0 %v5300_v14  ;;  %v5332_v12 = vld [vmem:[#allocation2 + $0x2c4] ss:$16 sps:$4 sm:$0xff]   ;;  %v5333_v13 = vld [vmem:[#allocation2 + $0x2c0] ss:$16 sps:$4 sm:$0xff]  }
 0x4e0   :  { %2860 = vmatprep.subr.bf16.mxu0 %v5518_v32  ;;  %v5334_v14 = vld [vmem:[#allocation2 + $0x2e4] ss:$16 sps:$4 sm:$0xff]  }
 0x4e3   :  { %2861 = vmatpush1.bf16.msra.mxu0 %v2543_v9  ;;  %v5329_v9 = vld [vmem:[#allocation2 + $0x280] ss:$16 sps:$4 sm:$0xff]  }
 0x4e4   :  { %2862 = vmatprep.subr.bf16.mxu0 %v5518_v32 }
 0x4e6   :  { %2642 = vmatmul.mubr.bf16.gmra.mrb[88].mxu0 %v5301_v15  ;;  %v5335_v15 = vld [vmem:[#allocation2 + $0x2e0] ss:$16 sps:$4 sm:$0xff]  }
 0x4e7   :  { %2649 = vmatprep.mubr.bf16.mxu0 %v5302_v16  ;;  %v5336_v16 = vld [vmem:[#allocation2 + $0x304] ss:$16 sps:$4 sm:$0xff]  }
 0x4e9   :  { %v4381_v17 = vpop.f32.mrb[44].mxu0 }
 0x4ea   :  { %v2443_v11 = vpop.f32.mrb[45].mxu0 }
 0x4eb   :  { %v4382_v18 = vpop.f32.mrb[46].mxu0 }
 0x4ec   :  { %v2545_v19 = vpack.c.bf16 %v4382_v18, %v4381_v17  ;;  %v2446_v20 = vpop.f32.mrb[47].mxu0  ;;  %v5337_v17 = vld [vmem:[#allocation2 + $0x300] ss:$16 sps:$4 sm:$0xff]  }
 0x4ed   :  { %v2544_v21 = vpack.c.bf16 %v2446_v20, %v2443_v11  ;;  %v5338_v11 = vld [vmem:[#allocation2 + $0x324] ss:$16 sps:$4 sm:$0xff]   ;;  %v5339_v18 = vld [vmem:[#allocation2 + $0x320] ss:$16 sps:$4 sm:$0xff]  }
 0x4ee   :  { %2650 = vmatmul.mubr.bf16.gmra.mrb[92].mxu0 %v5303_v22  ;;  %v5341_v20 = vld [vmem:[#allocation2 + $0x340] ss:$16 sps:$4 sm:$0xff]  }
 0x4ef   :  { %2863 = vmatpush1.bf16.msra.mxu0 %v2544_v21  ;;  %2657 = vmatprep.mubr.bf16.mxu0 %v5304_v23  ;;  %v5342_v21 = vld [vmem:[#allocation2 + $0x364] ss:$16 sps:$4 sm:$0xff]   ;;  %v5343_v22 = vld [vmem:[#allocation2 + $0x360] ss:$16 sps:$4 sm:$0xff]  }
 0x4f0   :  { %2864 = vmatprep.subr.bf16.mxu0 %v5518_v32  ;;  %v5344_v23 = vld [vmem:[#allocation2 + $0x384] ss:$16 sps:$4 sm:$0xff]  }
 0x4f3   :  { %2865 = vmatpush1.bf16.msra.mxu0 %v2545_v19  ;;  %v5340_v19 = vld [vmem:[#allocation2 + $0x344] ss:$16 sps:$4 sm:$0xff]  }
 0x4f4   :  { %2866 = vmatprep.subr.bf16.mxu0 %v5518_v32 }
 0x4f6   :  { %2658 = vmatmul.mubr.bf16.gmra.mrb[96].mxu0 %v5305_v24  ;;  %v5345_v24 = vld [vmem:[#allocation2 + $0x380] ss:$16 sps:$4 sm:$0xff]  }
 0x4f7   :  { %2665 = vmatprep.mubr.bf16.mxu0 %v5306_v25  ;;  %v5346_v25 = vld [vmem:[#allocation2 + $0x3a4] ss:$16 sps:$4 sm:$0xff]  }
 0x4f9   :  { %v4385_v26 = vpop.f32.mrb[48].mxu0 }
 0x4fa   :  { %v2459_v27 = vpop.f32.mrb[49].mxu0 }
 0x4fb   :  { %v4386_v28 = vpop.f32.mrb[50].mxu0 }
 0x4fc   :  { %v2547_v29 = vpack.c.bf16 %v4386_v28, %v4385_v26  ;;  %v2462_v30 = vpop.f32.mrb[51].mxu0  ;;  %v5347_v26 = vld [vmem:[#allocation2 + $0x3a0] ss:$16 sps:$4 sm:$0xff]  }
 0x4fd   :  { %v2546_v31 = vpack.c.bf16 %v2462_v30, %v2459_v27  ;;  %v5348_v27 = vld [vmem:[#allocation2 + $0x3c4] ss:$16 sps:$4 sm:$0xff]   ;;  %v5349_v28 = vld [vmem:[#allocation2 + $0x3c0] ss:$16 sps:$4 sm:$0xff]  }
 0x4fe   :  { %2666 = vmatmul.mubr.bf16.gmra.mrb[100].mxu0 %v5307_v33  ;;  %v5351_v30 = vld [vmem:[#allocation2 + $0x3e0] ss:$16 sps:$4 sm:$0xff]   ;;  %v5353_v33 = vld [vmem:[#allocation2 + $0x8] ss:$16 sps:$4 sm:$0xff]  }
 0x4ff   :  { %2867 = vmatpush1.bf16.msra.mxu0 %v2546_v31  ;;  %2673 = vmatprep.mubr.bf16.mxu0 %v5308_v34  ;;  %v5352_v31 = vld [vmem:[#allocation2 + $0xc] ss:$16 sps:$4 sm:$0xff]  }
 0x500   :  { %2868 = vmatprep.subr.bf16.mxu0 %v5518_v32  ;;  %v5354_v34 = vld [vmem:[#allocation2 + $0x2c] ss:$16 sps:$4 sm:$0xff]  }
 0x503   :  { %2869 = vmatpush1.bf16.msra.mxu0 %v2547_v29  ;;  %v5350_v29 = vld [vmem:[#allocation2 + $0x3e4] ss:$16 sps:$4 sm:$0xff]  }
 0x504   :  { %2870 = vmatprep.subr.bf16.mxu0 %v5518_v32 }
 0x506   :  { %2674 = vmatmul.mubr.bf16.gmra.mrb[104].mxu0 %v5309_v35  ;;  %v5355_v35 = vld [vmem:[#allocation2 + $0x28] ss:$16 sps:$4 sm:$0xff]  }
 0x507   :  { %2681 = vmatprep.mubr.bf16.mxu0 %v5310_v36  ;;  %v5356_v36 = vld [vmem:[#allocation2 + $0x4c] ss:$16 sps:$4 sm:$0xff]  }
 0x509   :  { %v4389_v37 = vpop.f32.mrb[52].mxu0 }
 0x50a   :  { %v2475_v38 = vpop.f32.mrb[53].mxu0 }
 0x50b   :  { %v4390_v39 = vpop.f32.mrb[54].mxu0 }
 0x50c   :  { %v2549_v40 = vpack.c.bf16 %v4390_v39, %v4389_v37  ;;  %v2478_v41 = vpop.f32.mrb[55].mxu0  ;;  %v5357_v37 = vld [vmem:[#allocation2 + $0x48] ss:$16 sps:$4 sm:$0xff]  }
 0x50d   :  { %v2548_v42 = vpack.c.bf16 %v2478_v41, %v2475_v38  ;;  %v5358_v38 = vld [vmem:[#allocation2 + $0x6c] ss:$16 sps:$4 sm:$0xff]   ;;  %v5359_v39 = vld [vmem:[#allocation2 + $0x68] ss:$16 sps:$4 sm:$0xff]  }
 0x50e   :  { %2682 = vmatmul.mubr.bf16.gmra.mrb[108].mxu0 %v5311_v43  ;;  %v5361_v41 = vld [vmem:[#allocation2 + $0x88] ss:$16 sps:$4 sm:$0xff]  }
 0x50f   :  { %2871 = vmatpush1.bf16.msra.mxu0 %v2548_v42  ;;  %2689 = vmatprep.mubr.bf16.mxu0 %v5312_v44  ;;  %v5362_v42 = vld [vmem:[#allocation2 + $0xac] ss:$16 sps:$4 sm:$0xff]   ;;  %v5363_v43 = vld [vmem:[#allocation2 + $0xa8] ss:$16 sps:$4 sm:$0xff]  }
 0x510   :  { %2872 = vmatprep.subr.bf16.mxu0 %v5518_v32  ;;  %v5364_v44 = vld [vmem:[#allocation2 + $0xcc] ss:$16 sps:$4 sm:$0xff]  }
 0x513   :  { %2873 = vmatpush1.bf16.msra.mxu0 %v2549_v40  ;;  %v5360_v40 = vld [vmem:[#allocation2 + $0x8c] ss:$16 sps:$4 sm:$0xff]  }
 0x514   :  { %2874 = vmatprep.subr.bf16.mxu0 %v5518_v32 }
 0x516   :  { %2690 = vmatmul.mubr.bf16.gmra.mrb[112].mxu0 %v5313_v45  ;;  %v5365_v45 = vld [vmem:[#allocation2 + $0xc8] ss:$16 sps:$4 sm:$0xff]  }
 0x517   :  { %2697 = vmatprep.mubr.bf16.mxu0 %v5314_v46  ;;  %v5366_v46 = vld [vmem:[#allocation2 + $0xec] ss:$16 sps:$4 sm:$0xff]  }
 0x519   :  { %v4393_v47 = vpop.f32.mrb[56].mxu0 }
 0x51a   :  { %v2491_v48 = vpop.f32.mrb[57].mxu0 }
 0x51b   :  { %v4394_v49 = vpop.f32.mrb[58].mxu0 }
 0x51c   :  { %v2551_v50 = vpack.c.bf16 %v4394_v49, %v4393_v47  ;;  %v2494_v51 = vpop.f32.mrb[59].mxu0  ;;  %v5367_v47 = vld [vmem:[#allocation2 + $0xe8] ss:$16 sps:$4 sm:$0xff]  }
 0x51d   :  { %v2550_v52 = vpack.c.bf16 %v2494_v51, %v2491_v48  ;;  %v5368_v48 = vld [vmem:[#allocation2 + $0x10c] ss:$16 sps:$4 sm:$0xff]   ;;  %v5369_v49 = vld [vmem:[#allocation2 + $0x108] ss:$16 sps:$4 sm:$0xff]  }
 0x51e   :  { %2698 = vmatmul.mubr.bf16.gmra.mrb[116].mxu0 %v5315_v53  ;;  %v5371_v51 = vld [vmem:[#allocation2 + $0x128] ss:$16 sps:$4 sm:$0xff]  }
 0x51f   :  { %2875 = vmatpush1.bf16.msra.mxu0 %v2550_v52  ;;  %2705 = vmatprep.mubr.bf16.mxu0 %v5316_v54  ;;  %v5372_v52 = vld [vmem:[#allocation2 + $0x14c] ss:$16 sps:$4 sm:$0xff]   ;;  %v5373_v53 = vld [vmem:[#allocation2 + $0x148] ss:$16 sps:$4 sm:$0xff]  }
 0x520   :  { %2876 = vmatprep.subr.bf16.mxu0 %v5518_v32  ;;  %v5374_v54 = vld [vmem:[#allocation2 + $0x16c] ss:$16 sps:$4 sm:$0xff]  }
 0x523   :  { %2877 = vmatpush1.bf16.msra.mxu0 %v2551_v50  ;;  %v5370_v50 = vld [vmem:[#allocation2 + $0x12c] ss:$16 sps:$4 sm:$0xff]  }
 0x524   :  { %2878 = vmatprep.subr.bf16.mxu0 %v5518_v32 }
 0x526   :  { %2706 = vmatmul.mubr.bf16.gmra.mrb[120].mxu0 %v5317_v55  ;;  %v5375_v55 = vld [vmem:[#allocation2 + $0x168] ss:$16 sps:$4 sm:$0xff]  }
 0x527   :  { %2713 = vmatprep.mubr.bf16.mxu0 %v5318_v56  ;;  %v5376_v56 = vld [vmem:[#allocation2 + $0x18c] ss:$16 sps:$4 sm:$0xff]  }
 0x529   :  { %v4397_v57 = vpop.f32.mrb[60].mxu0 }
 0x52a   :  { %v2507_v58 = vpop.f32.mrb[61].mxu0 }
 0x52b   :  { %v4398_v59 = vpop.f32.mrb[62].mxu0 }
 0x52c   :  { %v2553_v60 = vpack.c.bf16 %v4398_v59, %v4397_v57  ;;  %v2510_v61 = vpop.f32.mrb[63].mxu0  ;;  %v5377_v57 = vld [vmem:[#allocation2 + $0x188] ss:$16 sps:$4 sm:$0xff]  }
 0x52d   :  { %v2552_v62 = vpack.c.bf16 %v2510_v61, %v2507_v58  ;;  %v5378_v58 = vld [vmem:[#allocation2 + $0x1ac] ss:$16 sps:$4 sm:$0xff]   ;;  %v5379_v59 = vld [vmem:[#allocation2 + $0x1a8] ss:$16 sps:$4 sm:$0xff]  }
 0x52e   :  { %2714 = vmatmul.mubr.bf16.gmra.mrb[124].mxu0 %v5319_v63  ;;  %v5381_v61 = vld [vmem:[#allocation2 + $0x1c8] ss:$16 sps:$4 sm:$0xff]  }
 0x52f   :  { %2879 = vmatpush1.bf16.msra.mxu0 %v2552_v62  ;;  %2721 = vmatprep.mubr.bf16.mxu0 %v5320_v0  ;;  %v5382_v62 = vld [vmem:[#allocation2 + $0x1ec] ss:$16 sps:$4 sm:$0xff]   ;;  %v5383_v63 = vld [vmem:[#allocation2 + $0x1e8] ss:$16 sps:$4 sm:$0xff]  }
 0x530   :  { %2880 = vmatprep.subr.bf16.mxu0 %v5518_v32  ;;  %v5330_v32 = vld [vmem:[#allocation2 + $0x2a4] ss:$16 sps:$4 sm:$0xff]   ;;  %v5384_v0 = vld [vmem:[#allocation2 + $0x20c] ss:$16 sps:$4 sm:$0xff]  }
 0x533   :  { %2881 = vmatpush1.bf16.msra.mxu0 %v2553_v60  ;;  %v5380_v60 = vld [vmem:[#allocation2 + $0x1cc] ss:$16 sps:$4 sm:$0xff]  }
 0x536   :  { %2722 = vmatmul.mubr.bf16.gmra.mrb[128].mxu0 %v5321_v1  ;;  %v5385_v1 = vld [vmem:[#allocation2 + $0x208] ss:$16 sps:$4 sm:$0xff]  }
 0x537   :  { %2729 = vmatprep.mubr.bf16.mxu0 %v5322_v2  ;;  %v5386_v2 = vld [vmem:[#allocation2 + $0x22c] ss:$16 sps:$4 sm:$0xff]  }
 0x53e   :  { %2730 = vmatmul.mubr.bf16.gmra.mrb[132].mxu0 %v5323_v3  ;;  %v5387_v3 = vld [vmem:[#allocation2 + $0x228] ss:$16 sps:$4 sm:$0xff]  }
 0x53f   :  { %2737 = vmatprep.mubr.bf16.mxu0 %v5324_v4  ;;  %v5388_v4 = vld [vmem:[#allocation2 + $0x24c] ss:$16 sps:$4 sm:$0xff]  }
 0x546   :  { %2738 = vmatmul.mubr.bf16.gmra.mrb[136].mxu0 %v5325_v5  ;;  %v5389_v5 = vld [vmem:[#allocation2 + $0x248] ss:$16 sps:$4 sm:$0xff]  }
 0x547   :  { %2745 = vmatprep.mubr.bf16.mxu0 %v5326_v6  ;;  %v5390_v6 = vld [vmem:[#allocation2 + $0x26c] ss:$16 sps:$4 sm:$0xff]  }
 0x54e   :  { %2746 = vmatmul.mubr.bf16.gmra.mrb[140].mxu0 %v5327_v7  ;;  %v5391_v7 = vld [vmem:[#allocation2 + $0x268] ss:$16 sps:$4 sm:$0xff]  }
 0x54f   :  { %2753 = vmatprep.mubr.bf16.mxu0 %v5328_v8  ;;  %v5392_v8 = vld [vmem:[#allocation2 + $0x28c] ss:$16 sps:$4 sm:$0xff]  }
 0x556   :  { %2754 = vmatmul.mubr.bf16.gmra.mrb[144].mxu0 %v5329_v9  ;;  %v5393_v9 = vld [vmem:[#allocation2 + $0x288] ss:$16 sps:$4 sm:$0xff]  }
 0x557   :  { %2761 = vmatprep.mubr.bf16.mxu0 %v5330_v32  ;;  %v5394_v32 = vld [vmem:[#allocation2 + $0x2ac] ss:$16 sps:$4 sm:$0xff]  }
 0x55e   :  { %2762 = vmatmul.mubr.bf16.gmra.mrb[148].mxu0 %v5331_v10  ;;  %v5395_v10 = vld [vmem:[#allocation2 + $0x2a8] ss:$16 sps:$4 sm:$0xff]  }
 0x55f   :  { %2769 = vmatprep.mubr.bf16.mxu0 %v5332_v12  ;;  %v5396_v12 = vld [vmem:[#allocation2 + $0x2cc] ss:$16 sps:$4 sm:$0xff]  }
 0x566   :  { %2770 = vmatmul.mubr.bf16.gmra.mrb[152].mxu0 %v5333_v13  ;;  %v5397_v13 = vld [vmem:[#allocation2 + $0x2c8] ss:$16 sps:$4 sm:$0xff]  }
 0x567   :  { %2777 = vmatprep.mubr.bf16.mxu0 %v5334_v14  ;;  %v5398_v14 = vld [vmem:[#allocation2 + $0x2ec] ss:$16 sps:$4 sm:$0xff]  }
 0x56e   :  { %2778 = vmatmul.mubr.bf16.gmra.mrb[156].mxu0 %v5335_v15  ;;  %v5399_v15 = vld [vmem:[#allocation2 + $0x2e8] ss:$16 sps:$4 sm:$0xff]  }
 0x56f   :  { %2785 = vmatprep.mubr.bf16.mxu0 %v5336_v16  ;;  %v5400_v16 = vld [vmem:[#allocation2 + $0x30c] ss:$16 sps:$4 sm:$0xff]  }
 0x576   :  { %2786 = vmatmul.mubr.bf16.gmra.mrb[160].mxu0 %v5337_v17  ;;  %v5401_v17 = vld [vmem:[#allocation2 + $0x308] ss:$16 sps:$4 sm:$0xff]  }
 0x577   :  { %2793 = vmatprep.mubr.bf16.mxu0 %v5338_v11  ;;  %v5402_v11 = vld [vmem:[#allocation2 + $0x32c] ss:$16 sps:$4 sm:$0xff]  }
 0x57e   :  { %2794 = vmatmul.mubr.bf16.gmra.mrb[164].mxu0 %v5339_v18  ;;  %v5403_v18 = vld [vmem:[#allocation2 + $0x328] ss:$16 sps:$4 sm:$0xff]  }
 0x57f   :  { %2801 = vmatprep.mubr.bf16.mxu0 %v5340_v19  ;;  %v5404_v19 = vld [vmem:[#allocation2 + $0x34c] ss:$16 sps:$4 sm:$0xff]  }
 0x586   :  { %2802 = vmatmul.mubr.bf16.gmra.mrb[168].mxu0 %v5341_v20  ;;  %v3139_v20 = vlaneseq }
 0x587   :  { %2809 = vmatprep.mubr.bf16.mxu0 %v5342_v21 }
 0x588   :  { %v5751_v21 = vand.u32 127, %v3139_v20 }
 0x58a   :  { %vm3141_vm0 = vcmp.lt.s32.totalorder %v5751_v21, 7 }
 0x58e   :  { %2810 = vmatmul.mubr.bf16.gmra.mrb[172].mxu0 %v5343_v22  ;;  %v5405_v22 = vld [vmem:[#allocation2 + $0x348] ss:$16 sps:$4 sm:$0xff]  }
 0x58f   :  { %2817 = vmatprep.mubr.bf16.mxu0 %v5344_v23  ;;  %v5756_v23 = vld [vmem:[%s6788_s5] ss:$0 sm:$0xff] }
 0x596   :  { %2818 = vmatmul.mubr.bf16.gmra.mrb[176].mxu0 %v5345_v24  ;;  %v5406_v24 = vld [vmem:[#allocation2 + $0x36c] ss:$16 sps:$4 sm:$0xff]  }
 0x597   :  { %2825 = vmatprep.mubr.bf16.mxu0 %v5346_v25 }
 0x59e   :  { %2826 = vmatmul.mubr.bf16.gmra.mrb[180].mxu0 %v5347_v26 }
 0x59f   :  { %2833 = vmatprep.mubr.bf16.mxu0 %v5348_v27 }
 0x5a6   :  { %2834 = vmatmul.mubr.bf16.gmra.mrb[184].mxu0 %v5349_v28 }
 0x5a7   :  { %2841 = vmatprep.mubr.bf16.mxu0 %v5350_v29 }
 0x5ae   :  { %2842 = vmatmul.mubr.bf16.gmra.mrb[188].mxu0 %v5351_v30 }
 0x5af   :  { %2882 = vmatprep.mubr.bf16.mxu0 %v5352_v31 }
 0x5b6   :  { %2883 = vmatmul.mubr.bf16.vlgmr.msra.gmra.mrb[64].mxu0 %v5353_v33  ;;  %v5407_v33 = vld [vmem:[#allocation2 + $0x368] ss:$16 sps:$4 sm:$0xff]  }
 0x5b7   :  { %2890 = vmatprep.mubr.bf16.mxu0 %v5354_v34  ;;  %v5408_v34 = vld [vmem:[#allocation2 + $0x38c] ss:$16 sps:$4 sm:$0xff]  }
 0x5be   :  { %2891 = vmatmul.mubr.bf16.gmra.mrb[68].mxu0 %v5355_v35 }
 0x5bf   :  { %2898 = vmatprep.mubr.bf16.mxu0 %v5356_v36 }
 0x5c6   :  { %2899 = vmatmul.mubr.bf16.gmra.mrb[72].mxu0 %v5357_v37 }
 0x5c7   :  { %2906 = vmatprep.mubr.bf16.mxu0 %v5358_v38 }
 0x5ce   :  { %2907 = vmatmul.mubr.bf16.gmra.mrb[76].mxu0 %v5359_v39 }
 0x5cf   :  { %2914 = vmatprep.mubr.bf16.mxu0 %v5360_v40 }
 0x5d6   :  { %2915 = vmatmul.mubr.bf16.gmra.mrb[80].mxu0 %v5361_v41 }
 0x5d7   :  { %2922 = vmatprep.mubr.bf16.mxu0 %v5362_v42 }
 0x5de   :  { %2923 = vmatmul.mubr.bf16.gmra.mrb[84].mxu0 %v5363_v43  ;;  %v5409_v43 = vld [vmem:[#allocation2 + $0x388] ss:$16 sps:$4 sm:$0xff]  }
 0x5df   :  { %2930 = vmatprep.mubr.bf16.mxu0 %v5364_v44  ;;  %v5410_v44 = vld [vmem:[#allocation2 + $0x3ac] ss:$16 sps:$4 sm:$0xff]  }
 0x5e6   :  { %2931 = vmatmul.mubr.bf16.gmra.mrb[88].mxu0 %v5365_v45 }
 0x5e7   :  { %2938 = vmatprep.mubr.bf16.mxu0 %v5366_v46 }
 0x5ee   :  { %2939 = vmatmul.mubr.bf16.gmra.mrb[92].mxu0 %v5367_v47 }
 0x5ef   :  { %2946 = vmatprep.mubr.bf16.mxu0 %v5368_v48 }
 0x5f6   :  { %2947 = vmatmul.mubr.bf16.gmra.mrb[96].mxu0 %v5369_v49 }
 0x5f7   :  { %2954 = vmatprep.mubr.bf16.mxu0 %v5370_v50 }
 0x5fe   :  { %2955 = vmatmul.mubr.bf16.gmra.mrb[100].mxu0 %v5371_v51 }
 0x5ff   :  { %2962 = vmatprep.mubr.bf16.mxu0 %v5372_v52 }
 0x606   :  { %2963 = vmatmul.mubr.bf16.gmra.mrb[104].mxu0 %v5373_v53  ;;  %v5411_v53 = vld [vmem:[#allocation2 + $0x3a8] ss:$16 sps:$4 sm:$0xff]  }
 0x607   :  { %2970 = vmatprep.mubr.bf16.mxu0 %v5374_v54 }
 0x60e   :  { %2971 = vmatmul.mubr.bf16.gmra.mrb[108].mxu0 %v5375_v55  ;;  %v5412_v55 = vld [vmem:[#allocation2 + $0x3cc] ss:$16 sps:$4 sm:$0xff]  }
 0x60f   :  { %2978 = vmatprep.mubr.bf16.mxu0 %v5376_v56 }
 0x616   :  { %2979 = vmatmul.mubr.bf16.gmra.mrb[112].mxu0 %v5377_v57 }
 0x617   :  { %2986 = vmatprep.mubr.bf16.mxu0 %v5378_v58 }
 0x61e   :  { %2987 = vmatmul.mubr.bf16.gmra.mrb[116].mxu0 %v5379_v59 }
 0x61f   :  { %2994 = vmatprep.mubr.bf16.mxu0 %v5380_v60 }
 0x626   :  { %2995 = vmatmul.mubr.bf16.gmra.mrb[120].mxu0 %v5381_v61 }
 0x627   :  { %3002 = vmatprep.mubr.bf16.mxu0 %v5382_v62 }
 0x62e   :  { %3003 = vmatmul.mubr.bf16.gmra.mrb[124].mxu0 %v5383_v63  ;;  %v5413_v63 = vld [vmem:[#allocation2 + $0x3c8] ss:$16 sps:$4 sm:$0xff]  }
 0x62f   :  { %3010 = vmatprep.mubr.bf16.mxu0 %v5384_v0 }
 0x636   :  { %3011 = vmatmul.mubr.bf16.gmra.mrb[128].mxu0 %v5385_v1  ;;  %v5414_v1 = vld [vmem:[#allocation2 + $0x3ec] ss:$16 sps:$4 sm:$0xff]  }
 0x637   :  { %3018 = vmatprep.mubr.bf16.mxu0 %v5386_v2 }
 0x63e   :  { %3019 = vmatmul.mubr.bf16.gmra.mrb[132].mxu0 %v5387_v3 }
 0x63f   :  { %3026 = vmatprep.mubr.bf16.mxu0 %v5388_v4 }
 0x646   :  { %3027 = vmatmul.mubr.bf16.gmra.mrb[136].mxu0 %v5389_v5 }
 0x647   :  { %3034 = vmatprep.mubr.bf16.mxu0 %v5390_v6 }
 0x64e   :  { %3035 = vmatmul.mubr.bf16.gmra.mrb[140].mxu0 %v5391_v7 }
 0x64f   :  { %3042 = vmatprep.mubr.bf16.mxu0 %v5392_v8 }
 0x656   :  { %3043 = vmatmul.mubr.bf16.gmra.mrb[144].mxu0 %v5393_v9  ;;  %v5415_v9 = vld [vmem:[#allocation2 + $0x3e8] ss:$16 sps:$4 sm:$0xff]  }
 0x657   :  { %3050 = vmatprep.mubr.bf16.mxu0 %v5394_v32 }
 0x65e   :  { %3051 = vmatmul.mubr.bf16.gmra.mrb[148].mxu0 %v5395_v10 }
 0x65f   :  { %3058 = vmatprep.mubr.bf16.mxu0 %v5396_v12 }
 0x666   :  { %3059 = vmatmul.mubr.bf16.gmra.mrb[152].mxu0 %v5397_v13 }
 0x667   :  { %3066 = vmatprep.mubr.bf16.mxu0 %v5398_v14 }
 0x66e   :  { %3067 = vmatmul.mubr.bf16.gmra.mrb[156].mxu0 %v5399_v15 }
 0x66f   :  { %3074 = vmatprep.mubr.bf16.mxu0 %v5400_v16 }
 0x676   :  { %3075 = vmatmul.mubr.bf16.gmra.mrb[160].mxu0 %v5401_v17 }
 0x677   :  { %3082 = vmatprep.mubr.bf16.mxu0 %v5402_v11 }
 0x67e   :  { %3083 = vmatmul.mubr.bf16.gmra.mrb[164].mxu0 %v5403_v18 }
 0x67f   :  { %3090 = vmatprep.mubr.bf16.mxu0 %v5404_v19 }
 0x686   :  { %3091 = vmatmul.mubr.bf16.gmra.mrb[168].mxu0 %v5405_v22 }
 0x687   :  { %3098 = vmatprep.mubr.bf16.mxu0 %v5406_v24 }
 0x689   :  { %v2884_v25 = vpop.f32.mrb[64].mxu0 }
 0x68a   :  { %v4463_v26 = vadd.f32 %v5756_v23, %v2884_v25  ;;  %v2886_v27 = vpop.f32.mrb[65].mxu0 }
 0x68b   :  { %v2887_v28 = vpop.f32.mrb[66].mxu0 }
 0x68c   :  { %v4464_v29 = vadd.f32 %v5756_v23, %v2887_v28  ;;  %v2889_v30 = vpop.f32.mrb[67].mxu0  ;;  %v5763_v31 = vsel %vm3141_vm0, %v4463_v26, -1e+30 }
 0x68d   :  { %3206 = vmax.xlane.f32.xlu0 %v5763_v31 }
 0x68e   :  { %3099 = vmatmul.mubr.bf16.gmra.mrb[172].mxu0 %v5407_v33  ;;  %v5768_v35 = vsel %vm3141_vm0, %v4464_v29, -1e+30 }
 0x68f   :  { %3106 = vmatprep.mubr.bf16.mxu0 %v5408_v34 }
 0x691   :  { %v2892_v36 = vpop.f32.mrb[68].mxu0  ;;  %3208 = vmax.xlane.f32.xlu0 %v5768_v35 }
 0x692   :  { %v4465_v37 = vadd.f32 %v5756_v23, %v2892_v36  ;;  %v2894_v38 = vpop.f32.mrb[69].mxu0 }
 0x693   :  { %v2895_v39 = vpop.f32.mrb[70].mxu0 }
 0x694   :  { %v4466_v40 = vadd.f32 %v5756_v23, %v2895_v39  ;;  %v2897_v41 = vpop.f32.mrb[71].mxu0  ;;  %v5775_v42 = vsel %vm3141_vm0, %v4465_v37, -1e+30 }
 0x695   :  { %3210 = vmax.xlane.f32.xlu1 %v5775_v42 }
 0x696   :  { %3107 = vmatmul.mubr.bf16.gmra.mrb[176].mxu0 %v5409_v43  ;;  %v5780_v45 = vsel %vm3141_vm0, %v4466_v40, -1e+30 }
 0x697   :  { %3114 = vmatprep.mubr.bf16.mxu0 %v5410_v44 }
 0x699   :  { %v2900_v46 = vpop.f32.mrb[72].mxu0  ;;  %3212 = vmax.xlane.f32.xlu1 %v5780_v45 }
 0x69a   :  { %v4467_v47 = vadd.f32 %v5756_v23, %v2900_v46  ;;  %v2902_v48 = vpop.f32.mrb[73].mxu0 }
 0x69b   :  { %v2903_v49 = vpop.f32.mrb[74].mxu0 }
 0x69c   :  { %v4468_v50 = vadd.f32 %v5756_v23, %v2903_v49  ;;  %v2905_v51 = vpop.f32.mrb[75].mxu0  ;;  %v5787_v52 = vsel %vm3141_vm0, %v4467_v47, -1e+30 }
 0x69d   :  { %3214 = vmax.xlane.f32.xlu0 %v5787_v52 }
 0x69e   :  { %3115 = vmatmul.mubr.bf16.gmra.mrb[180].mxu0 %v5411_v53  ;;  %v5792_v54 = vsel %vm3141_vm0, %v4468_v50, -1e+30 }
 0x69f   :  { %3216 = vmax.xlane.f32.xlu1 %v5792_v54  ;;  %3122 = vmatprep.mubr.bf16.mxu0 %v5412_v55 }
 0x6a1   :  { %v2908_v56 = vpop.f32.mrb[76].mxu0 }
 0x6a2   :  { %v4469_v57 = vadd.f32 %v5756_v23, %v2908_v56  ;;  %v2910_v58 = vpop.f32.mrb[77].mxu0 }
 0x6a3   :  { %v2911_v59 = vpop.f32.mrb[78].mxu0 }
 0x6a4   :  { %v4470_v60 = vadd.f32 %v5756_v23, %v2911_v59  ;;  %v2913_v61 = vpop.f32.mrb[79].mxu0  ;;  %v5799_v62 = vsel %vm3141_vm0, %v4469_v57, -1e+30 }
 0x6a5   :  { %3218 = vmax.xlane.f32.xlu0 %v5799_v62 }
 0x6a6   :  { %3123 = vmatmul.mubr.bf16.gmra.mrb[184].mxu0 %v5413_v63  ;;  %v5804_v0 = vsel %vm3141_vm0, %v4470_v60, -1e+30 }
 0x6a7   :  { %3220 = vmax.xlane.f32.xlu1 %v5804_v0  ;;  %3130 = vmatprep.mubr.bf16.mxu0 %v5414_v1 }
 0x6a9   :  { %v2916_v2 = vpop.f32.mrb[80].mxu0 }
 0x6aa   :  { %v4471_v3 = vadd.f32 %v5756_v23, %v2916_v2  ;;  %v2918_v4 = vpop.f32.mrb[81].mxu0 }
 0x6ab   :  { %v2919_v5 = vpop.f32.mrb[82].mxu0 }
 0x6ac   :  { %v4472_v6 = vadd.f32 %v5756_v23, %v2919_v5  ;;  %v2921_v7 = vpop.f32.mrb[83].mxu0  ;;  %v5811_v8 = vsel %vm3141_vm0, %v4471_v3, -1e+30 }
 0x6ad   :  { %3222 = vmax.xlane.f32.xlu0 %v5811_v8 }
 0x6ae   :  { %3131 = vmatmul.mubr.bf16.gmra.mrb[188].mxu0 %v5415_v9  ;;  %v5816_v32 = vsel %vm3141_vm0, %v4472_v6, -1e+30 }
 0x6af   :  { %3224 = vmax.xlane.f32.xlu1 %v5816_v32 }
 0x6b1   :  { %v2924_v10 = vpop.f32.mrb[84].mxu0 }
 0x6b2   :  { %v4473_v12 = vadd.f32 %v5756_v23, %v2924_v10  ;;  %v2926_v13 = vpop.f32.mrb[85].mxu0 }
 0x6b3   :  { %v2927_v14 = vpop.f32.mrb[86].mxu0 }
 0x6b4   :  { %v4474_v15 = vadd.f32 %v5756_v23, %v2927_v14  ;;  %v2929_v16 = vpop.f32.mrb[87].mxu0  ;;  %v5823_v17 = vsel %vm3141_vm0, %v4473_v12, -1e+30 }
 0x6b5   :  { %3226 = vmax.xlane.f32.xlu0 %v5823_v17 }
 0x6b6   :  { %v5828_v11 = vsel %vm3141_vm0, %v4474_v15, -1e+30 }
 0x6b7   :  { %3228 = vmax.xlane.f32.xlu1 %v5828_v11 }
 0x6b9   :  { %v2932_v18 = vpop.f32.mrb[88].mxu0 }
 0x6ba   :  { %v4475_v19 = vadd.f32 %v5756_v23, %v2932_v18  ;;  %v2934_v20 = vpop.f32.mrb[89].mxu0 }
 0x6bb   :  { %v2935_v22 = vpop.f32.mrb[90].mxu0 }
 0x6bc   :  { %v4476_v24 = vadd.f32 %v5756_v23, %v2935_v22  ;;  %v2937_v25 = vpop.f32.mrb[91].mxu0  ;;  %v5835_v26 = vsel %vm3141_vm0, %v4475_v19, -1e+30 }
 0x6bd   :  { %3230 = vmax.xlane.f32.xlu0 %v5835_v26 }
 0x6be   :  { %v5840_v27 = vsel %vm3141_vm0, %v4476_v24, -1e+30 }
 0x6bf   :  { %3232 = vmax.xlane.f32.xlu1 %v5840_v27 }
 0x6c1   :  { %v2940_v28 = vpop.f32.mrb[92].mxu0 }
 0x6c2   :  { %v4477_v29 = vadd.f32 %v5756_v23, %v2940_v28  ;;  %v2942_v30 = vpop.f32.mrb[93].mxu0 }
 0x6c3   :  { %v2943_v33 = vpop.f32.mrb[94].mxu0 }
 0x6c4   :  { %v4478_v34 = vadd.f32 %v5756_v23, %v2943_v33  ;;  %v2945_v36 = vpop.f32.mrb[95].mxu0  ;;  %v5847_v37 = vsel %vm3141_vm0, %v4477_v29, -1e+30 }
 0x6c5   :  { %3234 = vmax.xlane.f32.xlu0 %v5847_v37 }
 0x6c6   :  { %v5852_v38 = vsel %vm3141_vm0, %v4478_v34, -1e+30 }
 0x6c7   :  { %3236 = vmax.xlane.f32.xlu1 %v5852_v38 }
 0x6c9   :  { %v2948_v39 = vpop.f32.mrb[96].mxu0 }
 0x6ca   :  { %v4479_v40 = vadd.f32 %v5756_v23, %v2948_v39  ;;  %v2950_v41 = vpop.f32.mrb[97].mxu0 }
 0x6cb   :  { %v2951_v43 = vpop.f32.mrb[98].mxu0 }
 0x6cc   :  { %v4480_v44 = vadd.f32 %v5756_v23, %v2951_v43  ;;  %v2953_v46 = vpop.f32.mrb[99].mxu0  ;;  %v5859_v47 = vsel %vm3141_vm0, %v4479_v40, -1e+30 }
 0x6cd   :  { %3238 = vmax.xlane.f32.xlu0 %v5859_v47 }
 0x6ce   :  { %v5864_v48 = vsel %vm3141_vm0, %v4480_v44, -1e+30 }
 0x6cf   :  { %3240 = vmax.xlane.f32.xlu1 %v5864_v48 }
 0x6d1   :  { %v2956_v49 = vpop.f32.mrb[100].mxu0 }
 0x6d2   :  { %v4481_v50 = vadd.f32 %v5756_v23, %v2956_v49  ;;  %v2958_v51 = vpop.f32.mrb[101].mxu0 }
 0x6d3   :  { %v2959_v53 = vpop.f32.mrb[102].mxu0 }
 0x6d4   :  { %v4482_v55 = vadd.f32 %v5756_v23, %v2959_v53  ;;  %v2961_v56 = vpop.f32.mrb[103].mxu0  ;;  %v5871_v57 = vsel %vm3141_vm0, %v4481_v50, -1e+30 }
 0x6d5   :  { %3242 = vmax.xlane.f32.xlu0 %v5871_v57 }
 0x6d6   :  { %v5876_v58 = vsel %vm3141_vm0, %v4482_v55, -1e+30 }
 0x6d7   :  { %3244 = vmax.xlane.f32.xlu1 %v5876_v58 }
 0x6d9   :  { %v2964_v59 = vpop.f32.mrb[104].mxu0 }
 0x6da   :  { %v4483_v60 = vadd.f32 %v5756_v23, %v2964_v59  ;;  %v2966_v61 = vpop.f32.mrb[105].mxu0 }
 0x6db   :  { %v2967_v63 = vpop.f32.mrb[106].mxu0 }
 0x6dc   :  { %v4484_v1 = vadd.f32 %v5756_v23, %v2967_v63  ;;  %v2969_v2 = vpop.f32.mrb[107].mxu0  ;;  %v5883_v3 = vsel %vm3141_vm0, %v4483_v60, -1e+30 }
 0x6dd   :  { %3246 = vmax.xlane.f32.xlu0 %v5883_v3 }
 0x6de   :  { %v5888_v4 = vsel %vm3141_vm0, %v4484_v1, -1e+30 }
 0x6df   :  { %3248 = vmax.xlane.f32.xlu1 %v5888_v4 }
 0x6e1   :  { %v2972_v5 = vpop.f32.mrb[108].mxu0 }
 0x6e2   :  { %v4485_v6 = vadd.f32 %v5756_v23, %v2972_v5  ;;  %v2974_v7 = vpop.f32.mrb[109].mxu0 }
 0x6e3   :  { %v2975_v9 = vpop.f32.mrb[110].mxu0 }
 0x6e4   :  { %v4486_v10 = vadd.f32 %v5756_v23, %v2975_v9  ;;  %v2977_v12 = vpop.f32.mrb[111].mxu0  ;;  %v5895_v13 = vsel %vm3141_vm0, %v4485_v6, -1e+30 }
 0x6e5   :  { %3250 = vmax.xlane.f32.xlu0 %v5895_v13 }
 0x6e6   :  { %v5900_v14 = vsel %vm3141_vm0, %v4486_v10, -1e+30 }
 0x6e7   :  { %3252 = vmax.xlane.f32.xlu1 %v5900_v14 }
 0x6e9   :  { %v2980_v15 = vpop.f32.mrb[112].mxu0 }
 0x6ea   :  { %v4487_v16 = vadd.f32 %v5756_v23, %v2980_v15  ;;  %v2982_v18 = vpop.f32.mrb[113].mxu0 }
 0x6eb   :  { %v2983_v19 = vpop.f32.mrb[114].mxu0 }
 0x6ec   :  { %v4488_v20 = vadd.f32 %v5756_v23, %v2983_v19  ;;  %v2985_v22 = vpop.f32.mrb[115].mxu0  ;;  %v5907_v24 = vsel %vm3141_vm0, %v4487_v16, -1e+30 }
 0x6ed   :  { %3254 = vmax.xlane.f32.xlu0 %v5907_v24 }
 0x6ee   :  { %v5912_v25 = vsel %vm3141_vm0, %v4488_v20, -1e+30 }
 0x6ef   :  { %3256 = vmax.xlane.f32.xlu1 %v5912_v25 }
 0x6f1   :  { %v2988_v28 = vpop.f32.mrb[116].mxu0 }
 0x6f2   :  { %v4489_v29 = vadd.f32 %v5756_v23, %v2988_v28  ;;  %v2990_v30 = vpop.f32.mrb[117].mxu0 }
 0x6f3   :  { %v2991_v33 = vpop.f32.mrb[118].mxu0 }
 0x6f4   :  { %v4490_v34 = vadd.f32 %v5756_v23, %v2991_v33  ;;  %v2993_v36 = vpop.f32.mrb[119].mxu0  ;;  %v5919_v39 = vsel %vm3141_vm0, %v4489_v29, -1e+30 }
 0x6f5   :  { %3258 = vmax.xlane.f32.xlu0 %v5919_v39 }
 0x6f6   :  { %v5924_v40 = vsel %vm3141_vm0, %v4490_v34, -1e+30 }
 0x6f7   :  { %3260 = vmax.xlane.f32.xlu1 %v5924_v40 }
 0x6f9   :  { %v2996_v41 = vpop.f32.mrb[120].mxu0 }
 0x6fa   :  { %v4491_v43 = vadd.f32 %v5756_v23, %v2996_v41  ;;  %v2998_v44 = vpop.f32.mrb[121].mxu0 }
 0x6fb   :  { %v2999_v46 = vpop.f32.mrb[122].mxu0 }
 0x6fc   :  { %v4492_v49 = vadd.f32 %v5756_v23, %v2999_v46  ;;  %v3001_v50 = vpop.f32.mrb[123].mxu0  ;;  %v5931_v51 = vsel %vm3141_vm0, %v4491_v43, -1e+30 }
 0x6fd   :  { %3262 = vmax.xlane.f32.xlu0 %v5931_v51 }
 0x6fe   :  { %v5936_v53 = vsel %vm3141_vm0, %v4492_v49, -1e+30 }
 0x6ff   :  { %3264 = vmax.xlane.f32.xlu1 %v5936_v53 }
 0x701   :  { %v3004_v55 = vpop.f32.mrb[124].mxu0 }
 0x702   :  { %v4493_v56 = vadd.f32 %v5756_v23, %v3004_v55  ;;  %v3006_v59 = vpop.f32.mrb[125].mxu0 }
 0x703   :  { %v3007_v60 = vpop.f32.mrb[126].mxu0 }
 0x704   :  { %v4494_v61 = vadd.f32 %v5756_v23, %v3007_v60  ;;  %v3009_v63 = vpop.f32.mrb[127].mxu0  ;;  %v5943_v1 = vsel %vm3141_vm0, %v4493_v56, -1e+30 }
 0x705   :  { %3266 = vmax.xlane.f32.xlu0 %v5943_v1 }
 0x706   :  { %v5948_v2 = vsel %vm3141_vm0, %v4494_v61, -1e+30 }
 0x707   :  { %3268 = vmax.xlane.f32.xlu1 %v5948_v2 }
 0x709   :  { %v3012_v5 = vpop.f32.mrb[128].mxu0 }
 0x70a   :  { %v4495_v6 = vadd.f32 %v5756_v23, %v3012_v5  ;;  %v3014_v7 = vpop.f32.mrb[129].mxu0 }
 0x70b   :  { %v3015_v9 = vpop.f32.mrb[130].mxu0 }
 0x70c   :  { %v4496_v10 = vadd.f32 %v5756_v23, %v3015_v9  ;;  %v3017_v12 = vpop.f32.mrb[131].mxu0  ;;  %v5955_v15 = vsel %vm3141_vm0, %v4495_v6, -1e+30 }
 0x70d   :  { %3270 = vmax.xlane.f32.xlu0 %v5955_v15 }
 0x70e   :  { %v5960_v16 = vsel %vm3141_vm0, %v4496_v10, -1e+30 }
 0x70f   :  { %3272 = vmax.xlane.f32.xlu1 %v5960_v16 }
 0x711   :  { %v3020_v18 = vpop.f32.mrb[132].mxu0 }
 0x712   :  { %v4497_v19 = vadd.f32 %v5756_v23, %v3020_v18  ;;  %v3022_v20 = vpop.f32.mrb[133].mxu0 }
 0x713   :  { %v3023_v22 = vpop.f32.mrb[134].mxu0 }
 0x714   :  { %v4498_v28 = vadd.f32 %v5756_v23, %v3023_v22  ;;  %v3025_v29 = vpop.f32.mrb[135].mxu0  ;;  %v5967_v30 = vsel %vm3141_vm0, %v4497_v19, -1e+30 }
 0x715   :  { %3274 = vmax.xlane.f32.xlu0 %v5967_v30 }
 0x716   :  { %v5972_v33 = vsel %vm3141_vm0, %v4498_v28, -1e+30 }
 0x717   :  { %3276 = vmax.xlane.f32.xlu1 %v5972_v33 }
 0x719   :  { %v3028_v34 = vpop.f32.mrb[136].mxu0 }
 0x71a   :  { %v4499_v36 = vadd.f32 %v5756_v23, %v3028_v34  ;;  %v3030_v41 = vpop.f32.mrb[137].mxu0  ;;  %v3207_v43 = vpop.xlane.xlu0 %3206 }
 0x71b   :  { %v5977_v44 = vsub.f32 %v5763_v31, %v3207_v43  ;;  %v3031_v46 = vpop.f32.mrb[138].mxu0 }
 0x71c   :  { %v4500_v49 = vadd.f32 %v5756_v23, %v3031_v46  ;;  %v3033_v50 = vpop.f32.mrb[139].mxu0  ;;  %v5982_v55 = vsel %vm3141_vm0, %v4499_v36, -1e+30 }
 0x71d   :  { %v3398_v56 = vmul.f32 1.442695, %v5977_v44  ;;  %3278 = vmax.xlane.f32.xlu0 %v5982_v55 }
 0x71e   :  { %v3209_v59 = vpop.xlane.xlu0 %3208  ;;  %v5988_v60 = vsel %vm3141_vm0, %v4500_v49, -1e+30 }
 0x71f   :  { %5032 = vpow2.f32 %v3398_v56  ;;  %v5991_v31 = vsub.f32 %v5768_v35, %v3209_v59  ;;  %3280 = vmax.xlane.f32.xlu1 %v5988_v60 }
 0x721   :  { %v3400_v61 = vmul.f32 1.442695, %v5991_v31  ;;  %v3036_v63 = vpop.f32.mrb[140].mxu0 }
 0x722   :  { %v4501_v5 = vadd.f32 %v5756_v23, %v3036_v63  ;;  %v3038_v6 = vpop.f32.mrb[141].mxu0  ;;  %v3211_v7 = vpop.xlane.xlu1 %3210 }
 0x723   :  { %5034 = vpow2.f32 %v3400_v61  ;;  %v5997_v9 = vsub.f32 %v5775_v42, %v3211_v7  ;;  %v3039_v10 = vpop.f32.mrb[142].mxu0 }
 0x724   :  { %v4502_v12 = vadd.f32 %v5756_v23, %v3039_v10  ;;  %v3041_v18 = vpop.f32.mrb[143].mxu0  ;;  %v6002_v35 = vsel %vm3141_vm0, %v4501_v5, -1e+30 }
 0x725   :  { %v3402_v19 = vmul.f32 1.442695, %v5997_v9  ;;  %3282 = vmax.xlane.f32.xlu0 %v6002_v35 }
 0x726   :  { %v3213_v20 = vpop.xlane.xlu1 %3212  ;;  %v6008_v22 = vsel %vm3141_vm0, %v4502_v12, -1e+30 }
 0x727   :  { %5036 = vpow2.f32 %v3402_v19  ;;  %v6011_v42 = vsub.f32 %v5780_v45, %v3213_v20  ;;  %3284 = vmax.xlane.f32.xlu1 %v6008_v22 }
 0x729   :  { %v5033_v28 = vpop.eup %5032  ;;  %v3404_v29 = vmul.f32 1.442695, %v6011_v42  ;;  %v3044_v34 = vpop.f32.mrb[144].mxu0 }
 0x72a   :  { %v4503_v36 = vadd.f32 %v5756_v23, %v3044_v34  ;;  %v3046_v41 = vpop.f32.mrb[145].mxu0  ;;  %v3215_v43 = vpop.xlane.xlu0 %3214  ;;  %v3526_v46 = vsel %vm3141_vm0, %v5033_v28, 0.0 }
 0x72b   :  { %5038 = vpow2.f32 %v3404_v29  ;;  %v6019_v49 = vsub.f32 %v5787_v52, %v3215_v43  ;;  %v3047_v50 = vpop.f32.mrb[146].mxu0  ;;  %3590 = vadd.xlane.f32.xlu0 %v3526_v46 }
 0x72c   :  { %v3049_v45 = vpop.f32.mrb[147].mxu0  ;;  %v3217_v56 = vpop.xlane.xlu1 %3216  ;;  %v4504_v5 = vadd.f32 %v5756_v23, %v3047_v50  ;;  %v6028_v6 = vsel %vm3141_vm0, %v4503_v36, -1e+30 }
 0x72d   :  { %v5035_v59 = vpop.eup %5034  ;;  %v3406_v61 = vmul.f32 1.442695, %v6019_v49  ;;  %v6023_v63 = vsub.f32 %v5792_v54, %v3217_v56 }
 0x72e   :  { %v3527_v52 = vsel %vm3141_vm0, %v5035_v59, 0.0  ;;  %v6039_v28 = vsel %vm3141_vm0, %v4504_v5, -1e+30 }
 0x72f   :  { %5040 = vpow2.f32 %v3406_v61  ;;  %v3408_v7 = vmul.f32 1.442695, %v6023_v63  ;;  %3286 = vmax.xlane.f32.xlu0 %v6028_v6  ;;  %3592 = vadd.xlane.f32.xlu1 %v3527_v52 }
 0x731   :  { %v5037_v10 = vpop.eup %5036  ;;  %5042 = vpow2.f32 %v3408_v7  ;;  %v3052_v12 = vpop.f32.mrb[148].mxu0 }
 0x732   :  { %v4505_v54 = vadd.f32 %v5756_v23, %v3052_v12  ;;  %v3054_v18 = vpop.f32.mrb[149].mxu0  ;;  %v3219_v19 = vpop.xlane.xlu0 %3218  ;;  %v3528_v20 = vsel %vm3141_vm0, %v5037_v10, 0.0 }
 0x733   :  { %v6042_v29 = vsub.f32 %v5799_v62, %v3219_v19  ;;  %v3055_v34 = vpop.f32.mrb[150].mxu0  ;;  %3594 = vadd.xlane.f32.xlu0 %v3528_v20  ;;  %3288 = vmax.xlane.f32.xlu1 %v6039_v28 }
 0x734   :  { %v3057_v36 = vpop.f32.mrb[151].mxu0  ;;  %v3221_v41 = vpop.xlane.xlu1 %3220  ;;  %v4506_v45 = vadd.f32 %v5756_v23, %v3055_v34  ;;  %v6052_v56 = vsel %vm3141_vm0, %v4505_v54, -1e+30 }
 0x735   :  { %v5039_v43 = vpop.eup %5038  ;;  %v3410_v46 = vmul.f32 1.442695, %v6042_v29  ;;  %v6047_v50 = vsub.f32 %v5804_v0, %v3221_v41 }
 0x736   :  { %v3529_v62 = vsel %vm3141_vm0, %v5039_v43, 0.0  ;;  %v6061_v10 = vsel %vm3141_vm0, %v4506_v45, -1e+30 }
 0x737   :  { %5044 = vpow2.f32 %v3410_v46  ;;  %v3412_v59 = vmul.f32 1.442695, %v6047_v50  ;;  %3290 = vmax.xlane.f32.xlu0 %v6052_v56  ;;  %3596 = vadd.xlane.f32.xlu1 %v3529_v62 }
 0x739   :  { %v5041_v61 = vpop.eup %5040  ;;  %5046 = vpow2.f32 %v3412_v59  ;;  %v3060_v5 = vpop.f32.mrb[152].mxu0 }
 0x73a   :  { %v4507_v0 = vadd.f32 %v5756_v23, %v3060_v5  ;;  %v3062_v52 = vpop.f32.mrb[153].mxu0  ;;  %v3223_v7 = vpop.xlane.xlu0 %3222  ;;  %v3530_v12 = vsel %vm3141_vm0, %v5041_v61, 0.0 }
 0x73b   :  { %v5043_v54 = vpop.eup %5042  ;;  %v6066_v18 = vsub.f32 %v5811_v8, %v3223_v7  ;;  %v3063_v19 = vpop.f32.mrb[154].mxu0  ;;  %3292 = vmax.xlane.f32.xlu1 %v6061_v10  ;;  %3598 = vadd.xlane.f32.xlu0 %v3530_v12 }
 0x73c   :  { %v3065_v20 = vpop.f32.mrb[155].mxu0  ;;  %v3225_v34 = vpop.xlane.xlu1 %3224  ;;  %v4508_v43 = vadd.f32 %v5756_v23, %v3063_v19  ;;  %v3531_v46 = vsel %vm3141_vm0, %v5043_v54, 0.0  ;;  %v6078_v8 = vsel %vm3141_vm0, %v4507_v0, -1e+30 }
 0x73d   :  { %v3414_v36 = vmul.f32 1.442695, %v6066_v18  ;;  %v6071_v41 = vsub.f32 %v5816_v32, %v3225_v34 }
 0x73e   :  { %v6085_v52 = vsel %vm3141_vm0, %v4508_v43, -1e+30 }
 0x73f   :  { %5048 = vpow2.f32 %v3414_v36  ;;  %v3416_v45 = vmul.f32 1.442695, %v6071_v41  ;;  %3600 = vadd.xlane.f32.xlu1 %v3531_v46  ;;  %3294 = vmax.xlane.f32.xlu0 %v6078_v8 }
 0x741   :  { %v5045_v62 = vpop.eup %5044  ;;  %5050 = vpow2.f32 %v3416_v45  ;;  %v3068_v59 = vpop.f32.mrb[156].mxu0 }
 0x742   :  { %v4509_v32 = vadd.f32 %v5756_v23, %v3068_v59  ;;  %v3070_v61 = vpop.f32.mrb[157].mxu0  ;;  %v3227_v5 = vpop.xlane.xlu0 %3226  ;;  %v3532_v0 = vsel %vm3141_vm0, %v5045_v62, 0.0 }
 0x743   :  { %v5047_v7 = vpop.eup %5046  ;;  %v6090_v12 = vsub.f32 %v5823_v17, %v3227_v5  ;;  %v3071_v54 = vpop.f32.mrb[158].mxu0  ;;  %3296 = vmax.xlane.f32.xlu1 %v6085_v52  ;;  %3602 = vadd.xlane.f32.xlu0 %v3532_v0 }
 0x744   :  { %v3073_v19 = vpop.f32.mrb[159].mxu0  ;;  %v3229_v20 = vpop.xlane.xlu1 %3228  ;;  %v4510_v43 = vadd.f32 %v5756_v23, %v3071_v54  ;;  %v3533_v46 = vsel %vm3141_vm0, %v5047_v7, 0.0  ;;  %v6102_v17 = vsel %vm3141_vm0, %v4509_v32, -1e+30 }
 0x745   :  { %v3418_v34 = vmul.f32 1.442695, %v6090_v12  ;;  %v6095_v36 = vsub.f32 %v5828_v11, %v3229_v20 }
 0x746   :  { %v6109_v0 = vsel %vm3141_vm0, %v4510_v43, -1e+30 }
 0x747   :  { %5052 = vpow2.f32 %v3418_v34  ;;  %v3420_v45 = vmul.f32 1.442695, %v6095_v36  ;;  %3604 = vadd.xlane.f32.xlu1 %v3533_v46  ;;  %3298 = vmax.xlane.f32.xlu0 %v6102_v17 }
 0x749   :  { %v5049_v62 = vpop.eup %5048  ;;  %5054 = vpow2.f32 %v3420_v45  ;;  %v3076_v59 = vpop.f32.mrb[160].mxu0 }
 0x74a   :  { %v4511_v11 = vadd.f32 %v5756_v23, %v3076_v59  ;;  %v3078_v61 = vpop.f32.mrb[161].mxu0  ;;  %v3231_v5 = vpop.xlane.xlu0 %3230  ;;  %v3534_v32 = vsel %vm3141_vm0, %v5049_v62, 0.0 }
 0x74b   :  { %v5051_v7 = vpop.eup %5050  ;;  %v6114_v54 = vsub.f32 %v5835_v26, %v3231_v5  ;;  %v3079_v19 = vpop.f32.mrb[162].mxu0  ;;  %3300 = vmax.xlane.f32.xlu1 %v6109_v0  ;;  %3606 = vadd.xlane.f32.xlu0 %v3534_v32 }
 0x74c   :  { %v3081_v20 = vpop.f32.mrb[163].mxu0  ;;  %v3233_v34 = vpop.xlane.xlu1 %3232  ;;  %v4512_v43 = vadd.f32 %v5756_v23, %v3079_v19  ;;  %v3535_v62 = vsel %vm3141_vm0, %v5051_v7, 0.0  ;;  %v6126_v26 = vsel %vm3141_vm0, %v4511_v11, -1e+30 }
 0x74d   :  { %6805 = vst [vmem:[#allocation12_spill] sm:$0xff] %v6114_v54  ;;  %v3422_v46 = vmul.f32 1.442695, %v6114_v54  ;;  %v6119_v45 = vsub.f32 %v5840_v27, %v3233_v34 }
 0x74e   :  { %v6133_v7 = vsel %vm3141_vm0, %v4512_v43, -1e+30 }
 0x74f   :  { %6806 = vst [vmem:[#allocation13_spill] sm:$0xff] %v6119_v45  ;;  %5056 = vpow2.f32 %v3422_v46  ;;  %v3424_v59 = vmul.f32 1.442695, %v6119_v45  ;;  %3608 = vadd.xlane.f32.xlu1 %v3535_v62  ;;  %3302 = vmax.xlane.f32.xlu0 %v6126_v26 }
 0x751   :  { %v5053_v61 = vpop.eup %5052  ;;  %5058 = vpow2.f32 %v3424_v59  ;;  %v3084_v5 = vpop.f32.mrb[164].mxu0 }
 0x752   :  { %v4513_v27 = vadd.f32 %v5756_v23, %v3084_v5  ;;  %v3086_v32 = vpop.f32.mrb[165].mxu0  ;;  %v3235_v19 = vpop.xlane.xlu0 %3234  ;;  %v3536_v11 = vsel %vm3141_vm0, %v5053_v61, 0.0 }
 0x753   :  { %v5055_v20 = vpop.eup %5054  ;;  %v6138_v34 = vsub.f32 %v5847_v37, %v3235_v19  ;;  %v3087_v46 = vpop.f32.mrb[166].mxu0  ;;  %3304 = vmax.xlane.f32.xlu1 %v6133_v7  ;;  %3610 = vadd.xlane.f32.xlu0 %v3536_v11 }
 0x754   :  { %v3089_v62 = vpop.f32.mrb[167].mxu0  ;;  %v3237_v59 = vpop.xlane.xlu1 %3236  ;;  %v4514_v43 = vadd.f32 %v5756_v23, %v3087_v46  ;;  %v3537_v61 = vsel %vm3141_vm0, %v5055_v20, 0.0  ;;  %v6150_v37 = vsel %vm3141_vm0, %v4513_v27, -1e+30 }
 0x755   :  { %6807 = vst [vmem:[#allocation14_spill] sm:$0xff] %v6138_v34  ;;  %v3426_v5 = vmul.f32 1.442695, %v6138_v34  ;;  %v6143_v32 = vsub.f32 %v5852_v38, %v3237_v59 }
 0x756   :  { %v6157_v20 = vsel %vm3141_vm0, %v4514_v43, -1e+30 }
 0x757   :  { %6808 = vst [vmem:[#allocation15_spill] sm:$0xff] %v6143_v32  ;;  %5060 = vpow2.f32 %v3426_v5  ;;  %v3428_v19 = vmul.f32 1.442695, %v6143_v32  ;;  %3612 = vadd.xlane.f32.xlu1 %v3537_v61  ;;  %3306 = vmax.xlane.f32.xlu0 %v6150_v37 }
 0x759   :  { %v5057_v11 = vpop.eup %5056  ;;  %5062 = vpow2.f32 %v3428_v19  ;;  %v3092_v62 = vpop.f32.mrb[168].mxu0 }
 0x75a   :  { %v4515_v38 = vadd.f32 %v5756_v23, %v3092_v62  ;;  %v3094_v59 = vpop.f32.mrb[169].mxu0  ;;  %v3239_v46 = vpop.xlane.xlu0 %3238  ;;  %v3538_v27 = vsel %vm3141_vm0, %v5057_v11, 0.0 }
 0x75b   :  { %v5059_v5 = vpop.eup %5058  ;;  %v6162_v32 = vsub.f32 %v5859_v47, %v3239_v46  ;;  %v3095_v61 = vpop.f32.mrb[170].mxu0  ;;  %3308 = vmax.xlane.f32.xlu1 %v6157_v20  ;;  %3614 = vadd.xlane.f32.xlu0 %v3538_v27 }
 0x75c   :  { %v3097_v19 = vpop.f32.mrb[171].mxu0  ;;  %v3241_v34 = vpop.xlane.xlu1 %3240  ;;  %v4516_v43 = vadd.f32 %v5756_v23, %v3095_v61  ;;  %v3539_v11 = vsel %vm3141_vm0, %v5059_v5, 0.0  ;;  %v6174_v47 = vsel %vm3141_vm0, %v4515_v38, -1e+30 }
 0x75d   :  { %6809 = vst [vmem:[#allocation16_spill] sm:$0xff] %v6162_v32  ;;  %v3430_v62 = vmul.f32 1.442695, %v6162_v32  ;;  %v6167_v59 = vsub.f32 %v5864_v48, %v3241_v34 }
 0x75e   :  { %v6181_v5 = vsel %vm3141_vm0, %v4516_v43, -1e+30 }
 0x75f   :  { %6810 = vst [vmem:[#allocation17_spill] sm:$0xff] %v6167_v59  ;;  %5064 = vpow2.f32 %v3430_v62  ;;  %v3432_v46 = vmul.f32 1.442695, %v6167_v59  ;;  %3616 = vadd.xlane.f32.xlu1 %v3539_v11  ;;  %3310 = vmax.xlane.f32.xlu0 %v6174_v47 }
 0x761   :  { %v5061_v27 = vpop.eup %5060  ;;  %5066 = vpow2.f32 %v3432_v46  ;;  %v3100_v19 = vpop.f32.mrb[172].mxu0 }
 0x762   :  { %v4517_v48 = vadd.f32 %v5756_v23, %v3100_v19  ;;  %v3102_v34 = vpop.f32.mrb[173].mxu0  ;;  %v3243_v61 = vpop.xlane.xlu0 %3242  ;;  %v3540_v38 = vsel %vm3141_vm0, %v5061_v27, 0.0 }
 0x763   :  { %v5063_v62 = vpop.eup %5062  ;;  %v6186_v59 = vsub.f32 %v5871_v57, %v3243_v61  ;;  %v3103_v11 = vpop.f32.mrb[174].mxu0  ;;  %3312 = vmax.xlane.f32.xlu1 %v6181_v5  ;;  %3618 = vadd.xlane.f32.xlu0 %v3540_v38 }
 0x764   :  { %v3105_v46 = vpop.f32.mrb[175].mxu0  ;;  %v3245_v32 = vpop.xlane.xlu1 %3244  ;;  %v4518_v43 = vadd.f32 %v5756_v23, %v3103_v11  ;;  %v3541_v27 = vsel %vm3141_vm0, %v5063_v62, 0.0  ;;  %v6198_v57 = vsel %vm3141_vm0, %v4517_v48, -1e+30 }
 0x765   :  { %6811 = vst [vmem:[#allocation18_spill] sm:$0xff] %v6186_v59  ;;  %v3434_v19 = vmul.f32 1.442695, %v6186_v59  ;;  %v6191_v34 = vsub.f32 %v5876_v58, %v3245_v32 }
 0x766   :  { %v6205_v11 = vsel %vm3141_vm0, %v4518_v43, -1e+30 }
 0x767   :  { %6812 = vst [vmem:[#allocation19_spill] sm:$0xff] %v6191_v34  ;;  %5068 = vpow2.f32 %v3434_v19  ;;  %v3436_v61 = vmul.f32 1.442695, %v6191_v34  ;;  %3620 = vadd.xlane.f32.xlu1 %v3541_v27  ;;  %3314 = vmax.xlane.f32.xlu0 %v6198_v57  ;;  %6813 = vst [vmem:[#allocation20_spill] sm:$0xff] %v6205_v11 }
 0x769   :  { %v5065_v38 = vpop.eup %5064  ;;  %5070 = vpow2.f32 %v3436_v61  ;;  %v3108_v46 = vpop.f32.mrb[176].mxu0 }
 0x76a   :  { %v4519_v58 = vadd.f32 %v5756_v23, %v3108_v46  ;;  %v3110_v32 = vpop.f32.mrb[177].mxu0  ;;  %v3542_v48 = vsel %vm3141_vm0, %v5065_v38, 0.0  ;;  %v3247_v43 = vpop.xlane.xlu0 %3246 }
 0x76b   :  { %v5067_v62 = vpop.eup %5066  ;;  %v3111_v19 = vpop.f32.mrb[178].mxu0  ;;  %3316 = vmax.xlane.f32.xlu1 %v6205_v11  ;;  %3622 = vadd.xlane.f32.xlu0 %v3542_v48 }
 0x76c   :  { %v3113_v27 = vpop.f32.mrb[179].mxu0  ;;  %v4520_v34 = vadd.f32 %v5756_v23, %v3111_v19  ;;  %v3543_v61 = vsel %vm3141_vm0, %v5067_v62, 0.0  ;;  %v6215_v46 = vsel %vm3141_vm0, %v4519_v58, -1e+30  ;;  %v3249_v59 = vpop.xlane.xlu1 %3248  ;;  %v6226_v58 = vsub.f32 %v5883_v3, %v3247_v43 }
 0x76d   :  { %6814 = vst [vmem:[#allocation21_spill] sm:$0xff] %v6215_v46 }
 0x76e   :  { %v6221_v19 = vsel %vm3141_vm0, %v4520_v34, -1e+30  ;;  %v3438_v3 = vmul.f32 1.442695, %v6226_v58 }
 0x76f   :  { %3624 = vadd.xlane.f32.xlu1 %v3543_v61  ;;  %3318 = vmax.xlane.f32.xlu0 %v6215_v46 }
 0x770   :  { %5072 = vpow2.f32 %v3438_v3 }
 0x771   :  { %v5069_v38 = vpop.eup %5068  ;;  %v3116_v32 = vpop.f32.mrb[180].mxu0 }
 0x772   :  { %v4521_v45 = vadd.f32 %v5756_v23, %v3116_v32  ;;  %v3118_v48 = vpop.f32.mrb[181].mxu0  ;;  %v3544_v62 = vsel %vm3141_vm0, %v5069_v38, 0.0  ;;  %v3251_v46 = vpop.xlane.xlu0 %3250  ;;  %v6230_v32 = vsub.f32 %v5888_v4, %v3249_v59 }
 0x773   :  { %v5071_v27 = vpop.eup %5070  ;;  %v3119_v61 = vpop.f32.mrb[182].mxu0  ;;  %3320 = vmax.xlane.f32.xlu1 %v6221_v19  ;;  %3626 = vadd.xlane.f32.xlu0 %v3544_v62  ;;  %v6241_v43 = vsub.f32 %v5895_v13, %v3251_v46 }
 0x774   :  { %v3121_v11 = vpop.f32.mrb[183].mxu0  ;;  %6815 = vst [vmem:[#allocation22_spill] sm:$0xff] %v6230_v32  ;;  %v4522_v48 = vadd.f32 %v5756_v23, %v3119_v61  ;;  %v3253_v34 = vpop.xlane.xlu1 %3252  ;;  %v3545_v54 = vsel %vm3141_vm0, %v5071_v27, 0.0  ;;  %v6237_v38 = vsel %vm3141_vm0, %v4521_v45, -1e+30 }
 0x775   :  { %v3440_v4 = vmul.f32 1.442695, %v6230_v32  ;;  %v6246_v59 = vsub.f32 %v5900_v14, %v3253_v34  ;;  %v3442_v13 = vmul.f32 1.442695, %v6241_v43 }
 0x776   :  { %v6251_v45 = vsel %vm3141_vm0, %v4522_v48, -1e+30 }
 0x777   :  { %3628 = vadd.xlane.f32.xlu1 %v3545_v54  ;;  %3322 = vmax.xlane.f32.xlu0 %v6237_v38  ;;  %6816 = vst [vmem:[#allocation23_spill] sm:$0xff] %v6246_v59  ;;  %5074 = vpow2.f32 %v3440_v4  ;;  %v3444_v48 = vmul.f32 1.442695, %v6246_v59 }
 0x778   :  { %5076 = vpow2.f32 %v3442_v13 }
 0x779   :  { %v3124_v11 = vpop.f32.mrb[184].mxu0  ;;  %5078 = vpow2.f32 %v3444_v48 }
 0x77a   :  { %v4523_v62 = vadd.f32 %v5756_v23, %v3124_v11  ;;  %v3126_v27 = vpop.f32.mrb[185].mxu0  ;;  %v3255_v61 = vpop.xlane.xlu0 %3254 }
 0x77b   :  { %v6255_v54 = vsub.f32 %v5907_v24, %v3255_v61  ;;  %v3127_v46 = vpop.f32.mrb[186].mxu0  ;;  %3324 = vmax.xlane.f32.xlu1 %v6251_v45  ;;  %v5073_v48 = vpop.eup %5072 }
 0x77c   :  { %v4524_v14 = vadd.f32 %v5756_v23, %v3127_v46  ;;  %v3129_v34 = vpop.f32.mrb[187].mxu0  ;;  %v3257_v32 = vpop.xlane.xlu1 %3256  ;;  %v6261_v11 = vsel %vm3141_vm0, %v4523_v62, -1e+30 }
 0x77d   :  { %6817 = vst [vmem:[#allocation24_spill] sm:$0xff] %v6255_v54  ;;  %v6265_v3 = vsub.f32 %v5912_v25, %v3257_v32  ;;  %3326 = vmax.xlane.f32.xlu0 %v6261_v11  ;;  %v3446_v27 = vmul.f32 1.442695, %v6255_v54 }
 0x77e   :  { %v6270_v24 = vsel %vm3141_vm0, %v4524_v14, -1e+30 }
 0x77f   :  { %6818 = vst [vmem:[#allocation25_spill] sm:$0xff] %v6265_v3  ;;  %3328 = vmax.xlane.f32.xlu1 %v6270_v24  ;;  %v3448_v62 = vmul.f32 1.442695, %v6265_v3  ;;  %5080 = vpow2.f32 %v3446_v27 }
 0x781   :  { %v3132_v4 = vpop.f32.mrb[188].mxu0  ;;  %5082 = vpow2.f32 %v3448_v62  ;;  %v3546_v62 = vsel %vm3141_vm0, %v5073_v48, 0.0 }
 0x782   :  { %v4525_v61 = vadd.f32 %v5756_v23, %v3132_v4  ;;  %v3134_v46 = vpop.f32.mrb[189].mxu0  ;;  %v3259_v25 = vpop.xlane.xlu0 %3258 }
 0x783   :  { %v6277_v32 = vsub.f32 %v5919_v39, %v3259_v25  ;;  %v3135_v34 = vpop.f32.mrb[190].mxu0 }
 0x784   :  { %v4526_v14 = vadd.f32 %v5756_v23, %v3135_v34  ;;  %v3137_v13 = vpop.f32.mrb[191].mxu0  ;;  %v3261_v59 = vpop.xlane.xlu1 %3260  ;;  %v6282_v54 = vsel %vm3141_vm0, %v4525_v61, -1e+30 }
 0x785   :  { %v3450_v3 = vmul.f32 1.442695, %v6277_v32  ;;  %v6286_v4 = vsub.f32 %v5924_v40, %v3261_v59  ;;  %3330 = vmax.xlane.f32.xlu0 %v6282_v54  ;;  %v5075_v23 = vpop.eup %5074 }
 0x786   :  { %v6291_v39 = vsel %vm3141_vm0, %v4526_v14, -1e+30  ;;  %v5077_v61 = vpop.eup %5076  ;;  %v3547_v59 = vsel %vm3141_vm0, %v5075_v23, 0.0 }
 0x787   :  { %5084 = vpow2.f32 %v3450_v3  ;;  %v3452_v27 = vmul.f32 1.442695, %v6286_v4  ;;  %3332 = vmax.xlane.f32.xlu1 %v6291_v39  ;;  %v5079_v46 = vpop.eup %5078  ;;  %v3548_v34 = vsel %vm3141_vm0, %v5077_v61, 0.0 }
 0x789   :  { %5086 = vpow2.f32 %v3452_v27  ;;  %3630 = vadd.xlane.f32.xlu0 %v3546_v62  ;;  %v5081_v14 = vpop.eup %5080  ;;  %v3549_v27 = vsel %vm3141_vm0, %v5079_v46, 0.0 }
 0x78a   :  { %v3263_v40 = vpop.xlane.xlu0 %3262  ;;  %v3550_v62 = vsel %vm3141_vm0, %v5081_v14, 0.0 }
 0x78b   :  { %v6300_v25 = vsub.f32 %v5931_v51, %v3263_v40  ;;  %3632 = vadd.xlane.f32.xlu1 %v3547_v59  ;;  %v5083_v23 = vpop.eup %5082 }
 0x78c   :  { %v3265_v3 = vpop.xlane.xlu1 %3264 }
 0x78d   :  { %v3454_v13 = vmul.f32 1.442695, %v6300_v25  ;;  %v6306_v48 = vsub.f32 %v5936_v53, %v3265_v3  ;;  %3634 = vadd.xlane.f32.xlu0 %v3548_v34  ;;  %v3551_v53 = vsel %vm3141_vm0, %v5083_v23, 0.0 }
 0x78f   :  { %5088 = vpow2.f32 %v3454_v13  ;;  %v3456_v51 = vmul.f32 1.442695, %v6306_v48  ;;  %3636 = vadd.xlane.f32.xlu1 %v3549_v27 }
 0x791   :  { %v5085_v40 = vpop.eup %5084  ;;  %5090 = vpow2.f32 %v3456_v51  ;;  %3638 = vadd.xlane.f32.xlu0 %v3550_v62 }
 0x792   :  { %v3267_v61 = vpop.xlane.xlu0 %3266  ;;  %v3552_v34 = vsel %vm3141_vm0, %v5085_v40, 0.0 }
 0x793   :  { %v5087_v59 = vpop.eup %5086  ;;  %v6316_v3 = vsub.f32 %v5943_v1, %v3267_v61  ;;  %3640 = vadd.xlane.f32.xlu1 %v3551_v53 }
 0x794   :  { %v3269_v46 = vpop.xlane.xlu1 %3268  ;;  %v3553_v27 = vsel %vm3141_vm0, %v5087_v59, 0.0 }
 0x795   :  { %v3458_v13 = vmul.f32 1.442695, %v6316_v3  ;;  %v6322_v14 = vsub.f32 %v5948_v2, %v3269_v46  ;;  %3642 = vadd.xlane.f32.xlu0 %v3552_v34 }
 0x797   :  { %5092 = vpow2.f32 %v3458_v13  ;;  %v3460_v23 = vmul.f32 1.442695, %v6322_v14  ;;  %3644 = vadd.xlane.f32.xlu1 %v3553_v27 }
 0x799   :  { %v5089_v1 = vpop.eup %5088  ;;  %5094 = vpow2.f32 %v3460_v23 }
 0x79a   :  { %v3271_v51 = vpop.xlane.xlu0 %3270  ;;  %v3554_v62 = vsel %vm3141_vm0, %v5089_v1, 0.0 }
 0x79b   :  { %v5091_v40 = vpop.eup %5090  ;;  %v6330_v61 = vsub.f32 %v5955_v15, %v3271_v51  ;;  %3646 = vadd.xlane.f32.xlu0 %v3554_v62 }
 0x79c   :  { %v3273_v2 = vpop.xlane.xlu1 %3272  ;;  %v3555_v53 = vsel %vm3141_vm0, %v5091_v40, 0.0 }
 0x79d   :  { %v3462_v59 = vmul.f32 1.442695, %v6330_v61  ;;  %v6336_v46 = vsub.f32 %v5960_v16, %v3273_v2  ;;  %3648 = vadd.xlane.f32.xlu1 %v3555_v53 }
 0x79f   :  { %5096 = vpow2.f32 %v3462_v59  ;;  %v3464_v34 = vmul.f32 1.442695, %v6336_v46 }
 0x7a1   :  { %v5093_v13 = vpop.eup %5092  ;;  %5098 = vpow2.f32 %v3464_v34 }
 0x7a2   :  { %v3275_v27 = vpop.xlane.xlu0 %3274  ;;  %v3556_v15 = vsel %vm3141_vm0, %v5093_v13, 0.0 }
 0x7a3   :  { %v5095_v23 = vpop.eup %5094  ;;  %v6342_v1 = vsub.f32 %v5967_v30, %v3275_v27  ;;  %3650 = vadd.xlane.f32.xlu0 %v3556_v15 }
 0x7a4   :  { %v3277_v51 = vpop.xlane.xlu1 %3276  ;;  %v3557_v16 = vsel %vm3141_vm0, %v5095_v23, 0.0 }
 0x7a5   :  { %v3466_v62 = vmul.f32 1.442695, %v6342_v1  ;;  %v6348_v40 = vsub.f32 %v5972_v33, %v3277_v51  ;;  %3652 = vadd.xlane.f32.xlu1 %v3557_v16 }
 0x7a7   :  { %5100 = vpow2.f32 %v3466_v62  ;;  %v3468_v2 = vmul.f32 1.442695, %v6348_v40 }
 0x7a9   :  { %v5097_v53 = vpop.eup %5096  ;;  %5102 = vpow2.f32 %v3468_v2 }
 0x7aa   :  { %v3279_v59 = vpop.xlane.xlu0 %3278  ;;  %v3558_v30 = vsel %vm3141_vm0, %v5097_v53, 0.0 }
 0x7ab   :  { %v5099_v34 = vpop.eup %5098  ;;  %v6354_v13 = vsub.f32 %v5982_v55, %v3279_v59  ;;  %3654 = vadd.xlane.f32.xlu0 %v3558_v30 }
 0x7ac   :  { %v3281_v27 = vpop.xlane.xlu1 %3280  ;;  %v3559_v33 = vsel %vm3141_vm0, %v5099_v34, 0.0 }
 0x7ad   :  { %v3470_v15 = vmul.f32 1.442695, %v6354_v13  ;;  %v6360_v23 = vsub.f32 %v5988_v60, %v3281_v27  ;;  %3656 = vadd.xlane.f32.xlu1 %v3559_v33 }
 0x7af   :  { %5104 = vpow2.f32 %v3470_v15  ;;  %v3472_v51 = vmul.f32 1.442695, %v6360_v23 }
 0x7b1   :  { %v5101_v16 = vpop.eup %5100  ;;  %5106 = vpow2.f32 %v3472_v51 }
 0x7b2   :  { %v3283_v62 = vpop.xlane.xlu0 %3282  ;;  %v3560_v55 = vsel %vm3141_vm0, %v5101_v16, 0.0 }
 0x7b3   :  { %v5103_v2 = vpop.eup %5102  ;;  %v6366_v53 = vsub.f32 %v6002_v35, %v3283_v62  ;;  %3658 = vadd.xlane.f32.xlu0 %v3560_v55 }
 0x7b4   :  { %v3285_v59 = vpop.xlane.xlu1 %3284  ;;  %v3561_v60 = vsel %vm3141_vm0, %v5103_v2, 0.0 }
 0x7b5   :  { %v3474_v30 = vmul.f32 1.442695, %v6366_v53  ;;  %v6372_v34 = vsub.f32 %v6008_v22, %v3285_v59  ;;  %3660 = vadd.xlane.f32.xlu1 %v3561_v60 }
 0x7b7   :  { %5108 = vpow2.f32 %v3474_v30  ;;  %v3476_v27 = vmul.f32 1.442695, %v6372_v34 }
 0x7b8   :  { %v3591_v33 = vpop.xlane.xlu0 %3590 }
 0x7b9   :  { %v5105_v15 = vpop.eup %5104  ;;  %5110 = vpow2.f32 %v3476_v27 }
 0x7ba   :  { %5112 = vlog2.f32 %v3591_v33  ;;  %v3562_v35 = vsel %vm3141_vm0, %v5105_v15, 0.0 }
 0x7bb   :  { %v5107_v51 = vpop.eup %5106  ;;  %3662 = vadd.xlane.f32.xlu0 %v3562_v35 }
 0x7bc   :  { %v3593_v16 = vpop.xlane.xlu1 %3592  ;;  %v3287_v62 = vpop.xlane.xlu0 %3286  ;;  %v3563_v55 = vsel %vm3141_vm0, %v5107_v51, 0.0 }
 0x7bd   :  { %5114 = vlog2.f32 %v3593_v16  ;;  %v6380_v22 = vsub.f32 %v6028_v6, %v3287_v62  ;;  %3664 = vadd.xlane.f32.xlu1 %v3563_v55 }
 0x7bf   :  { %v3478_v2 = vmul.f32 1.442695, %v6380_v22 }
 0x7c0   :  { %v3289_v59 = vpop.xlane.xlu1 %3288  ;;  %v3595_v60 = vpop.xlane.xlu0 %3594 }
 0x7c1   :  { %v5109_v30 = vpop.eup %5108  ;;  %5116 = vpow2.f32 %v3478_v2  ;;  %v6384_v27 = vsub.f32 %v6039_v28, %v3289_v59 }
 0x7c2   :  { %5118 = vlog2.f32 %v3595_v60  ;;  %v3564_v33 = vsel %vm3141_vm0, %v5109_v30, 0.0 }
 0x7c3   :  { %6819 = vst [vmem:[#allocation26_spill] sm:$0xff] %v6384_v27  ;;  %v5111_v15 = vpop.eup %5110  ;;  %v3480_v35 = vmul.f32 1.442695, %v6384_v27  ;;  %3666 = vadd.xlane.f32.xlu0 %v3564_v33 }
 0x7c4   :  { %v5113_v6 = vpop.eup %5112  ;;  %v3597_v51 = vpop.xlane.xlu1 %3596  ;;  %v3565_v62 = vsel %vm3141_vm0, %v5111_v15, 0.0 }
 0x7c5   :  { %v3291_v16 = vpop.xlane.xlu0 %3290  ;;  %v3719_v55 = vmul.f32 0.6931472, %v5113_v6  ;;  %5120 = vpow2.f32 %v3480_v35  ;;  %3668 = vadd.xlane.f32.xlu1 %v3565_v62 }
 0x7c6   :  { %v6392_v2 = vsub.f32 %v6052_v56, %v3291_v16  ;;  %5122 = vlog2.f32 %v3597_v51 }
 0x7c7   :  { %v5115_v28 = vpop.eup %5114  ;;  %v3846_v59 = vsub.f32 %v5977_v44, %v3719_v55 }
 0x7c8   :  { %v3482_v60 = vmul.f32 1.442695, %v6392_v2  ;;  %v3721_v30 = vmul.f32 0.6931472, %v5115_v28  ;;  %v3293_v33 = vpop.xlane.xlu1 %3292 }
 0x7c9   :  { %v3599_v27 = vpop.xlane.xlu0 %3598  ;;  %3910 = vst [vmem:[%s6789_s6] sm:$0xff] %v3846_v59  ;;  %v6400_v15 = vsub.f32 %v6061_v10, %v3293_v33 }
 0x7ca   :  { %5124 = vpow2.f32 %v3482_v60  ;;  %v3847_v56 = vsub.f32 %v5991_v31, %v3721_v30 }
 0x7cb   :  { %5126 = vlog2.f32 %v3599_v27  ;;  %v5117_v35 = vpop.eup %5116  ;;  %v3484_v6 = vmul.f32 1.442695, %v6400_v15 }
 0x7cc   :  { %v5119_v44 = vpop.eup %5118  ;;  %3911 = vst [vmem:[%s6789_s6 + $0x8] sm:$0xff] %v3847_v56  ;;  %v3601_v51 = vpop.xlane.xlu1 %3600  ;;  %v3566_v62 = vsel %vm3141_vm0, %v5117_v35, 0.0 }
 0x7cd   :  { %v3295_v16 = vpop.xlane.xlu0 %3294  ;;  %v3723_v55 = vmul.f32 0.6931472, %v5119_v44  ;;  %5128 = vpow2.f32 %v3484_v6  ;;  %3670 = vadd.xlane.f32.xlu0 %v3566_v62 }
 0x7ce   :  { %v6410_v10 = vsub.f32 %v6078_v8, %v3295_v16  ;;  %5130 = vlog2.f32 %v3601_v51 }
 0x7cf   :  { %v5121_v31 = vpop.eup %5120  ;;  %v3848_v27 = vsub.f32 %v5997_v9, %v3723_v55 }
 0x7d0   :  { %v3486_v28 = vmul.f32 1.442695, %v6410_v10  ;;  %v5123_v59 = vpop.eup %5122  ;;  %v3297_v60 = vpop.xlane.xlu1 %3296  ;;  %v3567_v33 = vsel %vm3141_vm0, %v5121_v31, 0.0 }
 0x7d1   :  { %v3603_v30 = vpop.xlane.xlu0 %3602  ;;  %3912 = vst [vmem:[%s6789_s6 + $0x10] sm:$0xff] %v3848_v27  ;;  %v3725_v56 = vmul.f32 0.6931472, %v5123_v59  ;;  %v6420_v8 = vsub.f32 %v6085_v52, %v3297_v60  ;;  %3672 = vadd.xlane.f32.xlu1 %v3567_v33 }
 0x7d2   :  { %5132 = vpow2.f32 %v3486_v28 }
 0x7d3   :  { %5134 = vlog2.f32 %v3603_v30  ;;  %v3849_v35 = vsub.f32 %v6011_v42, %v3725_v56  ;;  %v3488_v6 = vmul.f32 1.442695, %v6420_v8 }
 0x7d4   :  { %v5125_v9 = vpop.eup %5124  ;;  %v3605_v51 = vpop.xlane.xlu1 %3604 }
 0x7d5   :  { %v5127_v44 = vpop.eup %5126  ;;  %v3299_v16 = vpop.xlane.xlu0 %3298  ;;  %v3568_v62 = vsel %vm3141_vm0, %v5125_v9, 0.0  ;;  %3913 = vst [vmem:[%s6789_s6 + $0x18] sm:$0xff] %v3849_v35  ;;  %5136 = vpow2.f32 %v3488_v6 }
 0x7d6   :  { %v3727_v55 = vmul.f32 0.6931472, %v5127_v44  ;;  %v6430_v52 = vsub.f32 %v6102_v17, %v3299_v16  ;;  %3674 = vadd.xlane.f32.xlu0 %v3568_v62  ;;  %5138 = vlog2.f32 %v3605_v51 }
 0x7d7   :  { %v5129_v42 = vpop.eup %5128 }
 0x7d8   :  { %v3850_v31 = vsub.f32 %v6019_v49, %v3727_v55  ;;  %v3490_v27 = vmul.f32 1.442695, %v6430_v52  ;;  %v5131_v28 = vpop.eup %5130  ;;  %v3301_v59 = vpop.xlane.xlu1 %3300  ;;  %v3569_v30 = vsel %vm3141_vm0, %v5129_v42, 0.0 }
 0x7d9   :  { %v3607_v60 = vpop.xlane.xlu0 %3606  ;;  %v3729_v33 = vmul.f32 0.6931472, %v5131_v28  ;;  %v6440_v17 = vsub.f32 %v6109_v0, %v3301_v59  ;;  %3676 = vadd.xlane.f32.xlu1 %v3569_v30 }
 0x7da   :  { %3914 = vst [vmem:[%s6789_s6 + $0x20] sm:$0xff] %v3850_v31  ;;  %5140 = vpow2.f32 %v3490_v27 }
 0x7db   :  { %5142 = vlog2.f32 %v3607_v60  ;;  %v3851_v56 = vsub.f32 %v6023_v63, %v3729_v33  ;;  %v3492_v9 = vmul.f32 1.442695, %v6440_v17 }
 0x7dc   :  { %v5133_v49 = vpop.eup %5132  ;;  %v3609_v6 = vpop.xlane.xlu1 %3608 }
 0x7dd   :  { %v5135_v35 = vpop.eup %5134  ;;  %v3303_v44 = vpop.xlane.xlu0 %3302  ;;  %v3570_v51 = vsel %vm3141_vm0, %v5133_v49, 0.0  ;;  %3915 = vst [vmem:[%s6789_s6 + $0x28] sm:$0xff] %v3851_v56  ;;  %5144 = vpow2.f32 %v3492_v9 }
 0x7de   :  { %v3731_v16 = vmul.f32 0.6931472, %v5135_v35  ;;  %v6450_v0 = vsub.f32 %v6126_v26, %v3303_v44  ;;  %3678 = vadd.xlane.f32.xlu0 %v3570_v51  ;;  %5146 = vlog2.f32 %v3609_v6 }
 0x7df   :  { %v5137_v63 = vpop.eup %5136 }
 0x7e0   :  { %v3852_v62 = vsub.f32 %v6042_v29, %v3731_v16  ;;  %v3494_v55 = vmul.f32 1.442695, %v6450_v0  ;;  %v5139_v42 = vpop.eup %5138  ;;  %v3305_v31 = vpop.xlane.xlu1 %3304  ;;  %v3571_v28 = vsel %vm3141_vm0, %v5137_v63, 0.0 }
 0x7e1   :  { %v3611_v27 = vpop.xlane.xlu0 %3610  ;;  %v3733_v59 = vmul.f32 0.6931472, %v5139_v42  ;;  %v6460_v26 = vsub.f32 %v6133_v7, %v3305_v31  ;;  %3680 = vadd.xlane.f32.xlu1 %v3571_v28 }
 0x7e2   :  { %3916 = vst [vmem:[%s6789_s6 + $0x30] sm:$0xff] %v3852_v62  ;;  %5148 = vpow2.f32 %v3494_v55 }
 0x7e3   :  { %5150 = vlog2.f32 %v3611_v27  ;;  %v3853_v60 = vsub.f32 %v6047_v50, %v3733_v59  ;;  %v3496_v30 = vmul.f32 1.442695, %v6460_v26 }
 0x7e4   :  { %v5141_v29 = vpop.eup %5140  ;;  %v3613_v49 = vpop.xlane.xlu1 %3612 }
 0x7e5   :  { %v5143_v33 = vpop.eup %5142  ;;  %v3307_v56 = vpop.xlane.xlu0 %3306  ;;  %v3572_v9 = vsel %vm3141_vm0, %v5141_v29, 0.0  ;;  %3917 = vst [vmem:[%s6789_s6 + $0x38] sm:$0xff] %v3853_v60  ;;  %5152 = vpow2.f32 %v3496_v30 }
 0x7e6   :  { %v3735_v35 = vmul.f32 0.6931472, %v5143_v33  ;;  %v6470_v7 = vsub.f32 %v6150_v37, %v3307_v56  ;;  %3682 = vadd.xlane.f32.xlu0 %v3572_v9  ;;  %5154 = vlog2.f32 %v3613_v49 }
 0x7e7   :  { %v5145_v50 = vpop.eup %5144 }
 0x7e8   :  { %v3854_v6 = vsub.f32 %v6066_v18, %v3735_v35  ;;  %v3498_v44 = vmul.f32 1.442695, %v6470_v7  ;;  %v5147_v51 = vpop.eup %5146  ;;  %v3309_v16 = vpop.xlane.xlu1 %3308  ;;  %v3573_v62 = vsel %vm3141_vm0, %v5145_v50, 0.0 }
 0x7e9   :  { %v3615_v63 = vpop.xlane.xlu0 %3614  ;;  %v3737_v55 = vmul.f32 0.6931472, %v5147_v51  ;;  %v6480_v37 = vsub.f32 %v6157_v20, %v3309_v16  ;;  %3684 = vadd.xlane.f32.xlu1 %v3573_v62 }
 0x7ea   :  { %3918 = vst [vmem:[%s6789_s6 + $0x40] sm:$0xff] %v3854_v6  ;;  %5156 = vpow2.f32 %v3498_v44 }
 0x7eb   :  { %5158 = vlog2.f32 %v3615_v63  ;;  %v3855_v42 = vsub.f32 %v6071_v41, %v3737_v55  ;;  %v3500_v31 = vmul.f32 1.442695, %v6480_v37 }
 0x7ec   :  { %v5149_v18 = vpop.eup %5148  ;;  %v3617_v28 = vpop.xlane.xlu1 %3616 }
 0x7ed   :  { %v5151_v27 = vpop.eup %5150  ;;  %v3311_v59 = vpop.xlane.xlu0 %3310  ;;  %v3574_v29 = vsel %vm3141_vm0, %v5149_v18, 0.0  ;;  %3919 = vst [vmem:[%s6789_s6 + $0x48] sm:$0xff] %v3855_v42  ;;  %5160 = vpow2.f32 %v3500_v31  ;;  %v6820_v18 = vld [vmem:[#allocation12_spill] sm:$0xff] }
 0x7ee   :  { %v3739_v60 = vmul.f32 0.6931472, %v5151_v27  ;;  %v6490_v20 = vsub.f32 %v6174_v47, %v3311_v59  ;;  %3686 = vadd.xlane.f32.xlu0 %v3574_v29  ;;  %5162 = vlog2.f32 %v3617_v28 }
 0x7ef   :  { %v5153_v41 = vpop.eup %5152 }
 0x7f0   :  { %v3856_v30 = vsub.f32 %v6090_v12, %v3739_v60  ;;  %v3502_v33 = vmul.f32 1.442695, %v6490_v20  ;;  %v5155_v49 = vpop.eup %5154  ;;  %v3313_v56 = vpop.xlane.xlu1 %3312  ;;  %v3575_v35 = vsel %vm3141_vm0, %v5153_v41, 0.0 }
 0x7f1   :  { %v3619_v9 = vpop.xlane.xlu0 %3618  ;;  %v3741_v50 = vmul.f32 0.6931472, %v5155_v49  ;;  %v6500_v47 = vsub.f32 %v6181_v5, %v3313_v56  ;;  %3688 = vadd.xlane.f32.xlu1 %v3575_v35 }
 0x7f2   :  { %3920 = vst [vmem:[%s6789_s6 + $0x50] sm:$0xff] %v3856_v30  ;;  %5164 = vpow2.f32 %v3502_v33  ;;  %v6822_v33 = vld [vmem:[#allocation13_spill] sm:$0xff] }
 0x7f3   :  { %5166 = vlog2.f32 %v3619_v9  ;;  %v3857_v6 = vsub.f32 %v6095_v36, %v3741_v50  ;;  %v3504_v44 = vmul.f32 1.442695, %v6500_v47 }
 0x7f4   :  { %v5157_v12 = vpop.eup %5156  ;;  %v3621_v16 = vpop.xlane.xlu1 %3620 }
 0x7f5   :  { %v5159_v51 = vpop.eup %5158  ;;  %v3315_v63 = vpop.xlane.xlu0 %3314  ;;  %v3576_v62 = vsel %vm3141_vm0, %v5157_v12, 0.0  ;;  %3921 = vst [vmem:[%s6789_s6 + $0x58] sm:$0xff] %v3857_v6  ;;  %5168 = vpow2.f32 %v3504_v44  ;;  %v6823_v44 = vld [vmem:[#allocation21_spill] sm:$0xff] }
 0x7f6   :  { %v3743_v55 = vmul.f32 0.6931472, %v5159_v51  ;;  %v6510_v5 = vsub.f32 %v6198_v57, %v3315_v63  ;;  %3690 = vadd.xlane.f32.xlu0 %v3576_v62  ;;  %5170 = vlog2.f32 %v3621_v16  ;;  %v6821_v57 = vld [vmem:[#allocation20_spill] sm:$0xff]  ;;  %v6824_v63 = vld [vmem:[#allocation14_spill] sm:$0xff] }
 0x7f7   :  { %v5161_v36 = vpop.eup %5160 }
 0x7f8   :  { %v3858_v42 = vsub.f32 %v6820_v18, %v3743_v55  ;;  %v3506_v31 = vmul.f32 1.442695, %v6510_v5  ;;  %v5163_v27 = vpop.eup %5162  ;;  %v3317_v28 = vpop.xlane.xlu1 %3316  ;;  %v3577_v29 = vsel %vm3141_vm0, %v5161_v36, 0.0 }
 0x7f9   :  { %v3623_v59 = vpop.xlane.xlu0 %3622  ;;  %v3745_v60 = vmul.f32 0.6931472, %v5163_v27  ;;  %v6520_v41 = vsub.f32 %v6821_v57, %v3317_v28  ;;  %3692 = vadd.xlane.f32.xlu1 %v3577_v29  ;;  %v6825_v29 = vld [vmem:[#allocation15_spill] sm:$0xff] }
 0x7fa   :  { %3922 = vst [vmem:[%s6789_s6 + $0x60] sm:$0xff] %v3858_v42  ;;  %5172 = vpow2.f32 %v3506_v31 }
 0x7fb   :  { %5174 = vlog2.f32 %v3623_v59  ;;  %v3859_v49 = vsub.f32 %v6822_v33, %v3745_v60  ;;  %v3508_v56 = vmul.f32 1.442695, %v6520_v41 }
 0x7fc   :  { %v5165_v30 = vpop.eup %5164  ;;  %v3625_v35 = vpop.xlane.xlu1 %3624 }
 0x7fd   :  { %v5167_v9 = vpop.eup %5166  ;;  %v3319_v50 = vpop.xlane.xlu0 %3318  ;;  %v3578_v12 = vsel %vm3141_vm0, %v5165_v30, 0.0  ;;  %3923 = vst [vmem:[%s6789_s6 + $0x68] sm:$0xff] %v3859_v49  ;;  %5176 = vpow2.f32 %v3508_v56 }
 0x7fe   :  { %v3747_v6 = vmul.f32 0.6931472, %v5167_v9  ;;  %v6530_v51 = vsub.f32 %v6823_v44, %v3319_v50  ;;  %3694 = vadd.xlane.f32.xlu0 %v3578_v12  ;;  %5178 = vlog2.f32 %v3625_v35  ;;  %v6826_v50 = vld [vmem:[#allocation16_spill] sm:$0xff] }
 0x7ff   :  { %v5169_v16 = vpop.eup %5168 }
 0x800   :  { %v3860_v62 = vsub.f32 %v6824_v63, %v3747_v6  ;;  %v3510_v55 = vmul.f32 1.442695, %v6530_v51  ;;  %v5171_v36 = vpop.eup %5170  ;;  %v3321_v18 = vpop.xlane.xlu1 %3320  ;;  %v3579_v31 = vsel %vm3141_vm0, %v5169_v16, 0.0 }
 0x801   :  { %v3627_v42 = vpop.xlane.xlu0 %3626  ;;  %v3749_v27 = vmul.f32 0.6931472, %v5171_v36  ;;  %v6540_v28 = vsub.f32 %v6221_v19, %v3321_v18  ;;  %3696 = vadd.xlane.f32.xlu1 %v3579_v31  ;;  %v6827_v18 = vld [vmem:[#allocation17_spill] sm:$0xff] }
 0x802   :  { %3924 = vst [vmem:[%s6789_s6 + $0x70] sm:$0xff] %v3860_v62  ;;  %5180 = vpow2.f32 %v3510_v55 }
 0x803   :  { %5182 = vlog2.f32 %v3627_v42  ;;  %v3861_v60 = vsub.f32 %v6825_v29, %v3749_v27  ;;  %v3512_v57 = vmul.f32 1.442695, %v6540_v28 }
 0x804   :  { %v5173_v59 = vpop.eup %5172  ;;  %v3629_v33 = vpop.xlane.xlu1 %3628 }
 0x805   :  { %v5175_v30 = vpop.eup %5174  ;;  %v3323_v49 = vpop.xlane.xlu0 %3322  ;;  %v3580_v56 = vsel %vm3141_vm0, %v5173_v59, 0.0  ;;  %3925 = vst [vmem:[%s6789_s6 + $0x78] sm:$0xff] %v3861_v60  ;;  %5184 = vpow2.f32 %v3512_v57 }
 0x806   :  { %v3751_v9 = vmul.f32 0.6931472, %v5175_v30  ;;  %v6550_v19 = vsub.f32 %v6237_v38, %v3323_v49  ;;  %3698 = vadd.xlane.f32.xlu0 %v3580_v56  ;;  %5186 = vlog2.f32 %v3629_v33 }
 0x807   :  { %v5177_v35 = vpop.eup %5176 }
 0x808   :  { %v3862_v12 = vsub.f32 %v6826_v50, %v3751_v9  ;;  %v3514_v6 = vmul.f32 1.442695, %v6550_v19  ;;  %v5179_v44 = vpop.eup %5178  ;;  %v3325_v16 = vpop.xlane.xlu1 %3324  ;;  %v3581_v63 = vsel %vm3141_vm0, %v5177_v35, 0.0 }
 0x809   :  { %v3753_v62 = vmul.f32 0.6931472, %v5179_v44  ;;  %v6560_v38 = vsub.f32 %v6251_v45, %v3325_v16  ;;  %3700 = vadd.xlane.f32.xlu1 %v3581_v63 }
 0x80a   :  { %3926 = vst [vmem:[%s6789_s6 + $0x80] sm:$0xff] %v3862_v12  ;;  %5188 = vpow2.f32 %v3514_v6  ;;  %v3327_v55 = vpop.xlane.xlu0 %3326  ;;  %v6829_v6 = vld [vmem:[#allocation19_spill] sm:$0xff] }
 0x80b   :  { %v3863_v42 = vsub.f32 %v6827_v18, %v3753_v62  ;;  %v3516_v31 = vmul.f32 1.442695, %v6560_v38  ;;  %v6565_v27 = vsub.f32 %v6261_v11, %v3327_v55  ;;  %v6828_v11 = vld [vmem:[#allocation18_spill] sm:$0xff] }
 0x80c   :  { %v5181_v36 = vpop.eup %5180  ;;  %v3329_v29 = vpop.xlane.xlu1 %3328 }
 0x80d   :  { %v5183_v59 = vpop.eup %5182  ;;  %v3582_v60 = vsel %vm3141_vm0, %v5181_v36, 0.0  ;;  %3927 = vst [vmem:[%s6789_s6 + $0x88] sm:$0xff] %v3863_v42  ;;  %5190 = vpow2.f32 %v3516_v31  ;;  %v3518_v57 = vmul.f32 1.442695, %v6565_v27  ;;  %v6574_v30 = vsub.f32 %v6270_v24, %v3329_v29 }
 0x80e   :  { %v3755_v45 = vmul.f32 0.6931472, %v5183_v59  ;;  %3702 = vadd.xlane.f32.xlu0 %v3582_v60 }
 0x80f   :  { %v5185_v33 = vpop.eup %5184  ;;  %5192 = vpow2.f32 %v3518_v57  ;;  %v3520_v56 = vmul.f32 1.442695, %v6574_v30 }
 0x810   :  { %v3864_v49 = vsub.f32 %v6828_v11, %v3755_v45  ;;  %v5187_v9 = vpop.eup %5186  ;;  %v3583_v35 = vsel %vm3141_vm0, %v5185_v33, 0.0 }
 0x811   :  { %v3757_v50 = vmul.f32 0.6931472, %v5187_v9  ;;  %5194 = vpow2.f32 %v3520_v56  ;;  %3704 = vadd.xlane.f32.xlu1 %v3583_v35 }
 0x812   :  { %3928 = vst [vmem:[%s6789_s6 + $0x90] sm:$0xff] %v3864_v49  ;;  %v3331_v24 = vpop.xlane.xlu0 %3330 }
 0x813   :  { %v3865_v44 = vsub.f32 %v6829_v6, %v3757_v50  ;;  %v6585_v16 = vsub.f32 %v6282_v54, %v3331_v24 }
 0x814   :  { %v5189_v12 = vpop.eup %5188  ;;  %v3333_v63 = vpop.xlane.xlu1 %3332 }
 0x815   :  { %v3584_v62 = vsel %vm3141_vm0, %v5189_v12, 0.0  ;;  %3929 = vst [vmem:[%s6789_s6 + $0x98] sm:$0xff] %v3865_v44  ;;  %v3522_v55 = vmul.f32 1.442695, %v6585_v16  ;;  %v6594_v36 = vsub.f32 %v6291_v39, %v3333_v63 }
 0x816   :  { %3706 = vadd.xlane.f32.xlu0 %v3584_v62  ;;  %v3631_v18 = vpop.xlane.xlu0 %3630 }
 0x817   :  { %v5191_v42 = vpop.eup %5190  ;;  %5196 = vpow2.f32 %v3522_v55  ;;  %v3524_v54 = vmul.f32 1.442695, %v6594_v36 }
 0x818   :  { %5198 = vlog2.f32 %v3631_v18  ;;  %v3633_v31 = vpop.xlane.xlu1 %3632  ;;  %v3585_v59 = vsel %vm3141_vm0, %v5191_v42, 0.0 }
 0x819   :  { %v5193_v29 = vpop.eup %5192  ;;  %5200 = vpow2.f32 %v3524_v54  ;;  %3708 = vadd.xlane.f32.xlu1 %v3585_v59 }
 0x81a   :  { %5202 = vlog2.f32 %v3633_v31  ;;  %v3635_v60 = vpop.xlane.xlu0 %3634  ;;  %v3586_v39 = vsel %vm3141_vm0, %v5193_v29, 0.0  ;;  %v6830_v31 = vld [vmem:[#allocation22_spill] sm:$0xff] }
 0x81b   :  { %v5195_v45 = vpop.eup %5194  ;;  %5204 = vlog2.f32 %v3635_v60  ;;  %3710 = vadd.xlane.f32.xlu0 %v3586_v39 }
 0x81c   :  { %v3637_v57 = vpop.xlane.xlu1 %3636  ;;  %v3587_v33 = vsel %vm3141_vm0, %v5195_v45, 0.0 }
 0x81d   :  { %5206 = vlog2.f32 %v3637_v57  ;;  %3712 = vadd.xlane.f32.xlu1 %v3587_v33 }
 0x81e   :  { %v3639_v11 = vpop.xlane.xlu0 %3638 }
 0x81f   :  { %5208 = vlog2.f32 %v3639_v11 }
 0x820   :  { %v3641_v49 = vpop.xlane.xlu1 %3640 }
 0x821   :  { %v5197_v56 = vpop.eup %5196  ;;  %5210 = vlog2.f32 %v3641_v49 }
 0x822   :  { %v5199_v9 = vpop.eup %5198  ;;  %v3643_v35 = vpop.xlane.xlu0 %3642  ;;  %v3588_v50 = vsel %vm3141_vm0, %v5197_v56, 0.0 }
 0x823   :  { %v5201_v24 = vpop.eup %5200  ;;  %v3759_v12 = vmul.f32 0.6931472, %v5199_v9  ;;  %5212 = vlog2.f32 %v3643_v35  ;;  %3714 = vadd.xlane.f32.xlu0 %v3588_v50  ;;  %v6833_v35 = vld [vmem:[#allocation25_spill] sm:$0xff] }
 0x824   :  { %v5203_v6 = vpop.eup %5202  ;;  %v3645_v44 = vpop.xlane.xlu1 %3644  ;;  %v3589_v63 = vsel %vm3141_vm0, %v5201_v24, 0.0 }
 0x825   :  { %v5205_v62 = vpop.eup %5204  ;;  %v3866_v55 = vsub.f32 %v6226_v58, %v3759_v12  ;;  %v3761_v18 = vmul.f32 0.6931472, %v5203_v6  ;;  %5214 = vlog2.f32 %v3645_v44  ;;  %3716 = vadd.xlane.f32.xlu1 %v3589_v63  ;;  %v6831_v58 = vld [vmem:[#allocation23_spill] sm:$0xff] }
 0x826   :  { %v3763_v42 = vmul.f32 0.6931472, %v5205_v62 }
 0x827   :  { %v5207_v54 = vpop.eup %5206  ;;  %3930 = vst [vmem:[%s6789_s6 + $0xa0] sm:$0xff] %v3866_v55  ;;  %v3867_v59 = vsub.f32 %v6830_v31, %v3761_v18 }
 0x828   :  { %v3868_v29 = vsub.f32 %v6241_v43, %v3763_v42  ;;  %v3765_v60 = vmul.f32 0.6931472, %v5207_v54  ;;  %v3647_v39 = vpop.xlane.xlu0 %3646  ;;  %v6832_v43 = vld [vmem:[#allocation24_spill] sm:$0xff] }
 0x829   :  { %v5209_v21 = vpop.eup %5208  ;;  %3931 = vst [vmem:[%s6789_s6 + $0xa8] sm:$0xff] %v3867_v59  ;;  %5216 = vlog2.f32 %v3647_v39 }
 0x82a   :  { %3932 = vst [vmem:[%s6789_s6 + $0xb0] sm:$0xff] %v3868_v29  ;;  %v3869_v45 = vsub.f32 %v6831_v58, %v3765_v60  ;;  %v3767_v57 = vmul.f32 0.6931472, %v5209_v21  ;;  %v3649_v33 = vpop.xlane.xlu1 %3648 }
 0x82b   :  { %v5211_v11 = vpop.eup %5210  ;;  %5218 = vlog2.f32 %v3649_v33 }
 0x82c   :  { %3933 = vst [vmem:[%s6789_s6 + $0xb8] sm:$0xff] %v3869_v45  ;;  %v3870_v49 = vsub.f32 %v6832_v43, %v3767_v57  ;;  %v3769_v56 = vmul.f32 0.6931472, %v5211_v11 }
 0x82d   :  { %v5213_v9 = vpop.eup %5212 }
 0x82e   :  { %3934 = vst [vmem:[%s6789_s6 + $0xc0] sm:$0xff] %v3870_v49  ;;  %v3871_v50 = vsub.f32 %v6833_v35, %v3769_v56  ;;  %v3771_v24 = vmul.f32 0.6931472, %v5213_v9 }
 0x82f   :  { %v5215_v12 = vpop.eup %5214 }
 0x830   :  { %3935 = vst [vmem:[%s6789_s6 + $0xc8] sm:$0xff] %v3871_v50  ;;  %v3872_v6 = vsub.f32 %v6277_v32, %v3771_v24  ;;  %v3773_v44 = vmul.f32 0.6931472, %v5215_v12  ;;  %v3651_v63 = vpop.xlane.xlu0 %3650 }
 0x831   :  { %5220 = vlog2.f32 %v3651_v63 }
 0x832   :  { %3936 = vst [vmem:[%s6789_s6 + $0xd0] sm:$0xff] %v3872_v6  ;;  %v3873_v62 = vsub.f32 %v6286_v4, %v3773_v44  ;;  %v3653_v55 = vpop.xlane.xlu1 %3652 }
 0x833   :  { %v5217_v18 = vpop.eup %5216  ;;  %5222 = vlog2.f32 %v3653_v55 }
 0x834   :  { %3937 = vst [vmem:[%s6789_s6 + $0xd8] sm:$0xff] %v3873_v62  ;;  %v3775_v42 = vmul.f32 0.6931472, %v5217_v18 }
 0x835   :  { %v5219_v54 = vpop.eup %5218 }
 0x836   :  { %v3874_v32 = vsub.f32 %v6300_v25, %v3775_v42  ;;  %v3777_v31 = vmul.f32 0.6931472, %v5219_v54 }
 0x838   :  { %3938 = vst [vmem:[%s6789_s6 + $0xe0] sm:$0xff] %v3874_v32  ;;  %v3875_v59 = vsub.f32 %v6306_v48, %v3777_v31  ;;  %v3655_v29 = vpop.xlane.xlu0 %3654 }
 0x839   :  { %5224 = vlog2.f32 %v3655_v29 }
 0x83a   :  { %3939 = vst [vmem:[%s6789_s6 + $0xe8] sm:$0xff] %v3875_v59  ;;  %v3657_v4 = vpop.xlane.xlu1 %3656 }
 0x83b   :  { %v5221_v60 = vpop.eup %5220  ;;  %5226 = vlog2.f32 %v3657_v4 }
 0x83c   :  { %v3779_v39 = vmul.f32 0.6931472, %v5221_v60 }
 0x83d   :  { %v5223_v21 = vpop.eup %5222 }
 0x83e   :  { %v3876_v25 = vsub.f32 %v6316_v3, %v3779_v39  ;;  %v3781_v58 = vmul.f32 0.6931472, %v5223_v21 }
 0x840   :  { %3940 = vst [vmem:[%s6789_s6 + $0xf0] sm:$0xff] %v3876_v25  ;;  %v3877_v48 = vsub.f32 %v6322_v14, %v3781_v58  ;;  %v3659_v45 = vpop.xlane.xlu0 %3658 }
 0x841   :  { %5228 = vlog2.f32 %v3659_v45 }
 0x842   :  { %3941 = vst [vmem:[%s6789_s6 + $0xf8] sm:$0xff] %v3877_v48  ;;  %v3661_v57 = vpop.xlane.xlu1 %3660 }
 0x843   :  { %v5225_v33 = vpop.eup %5224  ;;  %5230 = vlog2.f32 %v3661_v57 }
 0x844   :  { %v3783_v11 = vmul.f32 0.6931472, %v5225_v33 }
 0x845   :  { %v5227_v43 = vpop.eup %5226 }
 0x846   :  { %v3878_v3 = vsub.f32 %v6330_v61, %v3783_v11  ;;  %v3785_v49 = vmul.f32 0.6931472, %v5227_v43 }
 0x848   :  { %3942 = vst [vmem:[%s6789_s6 + $0x100] sm:$0xff] %v3878_v3  ;;  %v3879_v14 = vsub.f32 %v6336_v46, %v3785_v49  ;;  %v3663_v56 = vpop.xlane.xlu0 %3662 }
 0x849   :  { %5232 = vlog2.f32 %v3663_v56 }
 0x84a   :  { %3943 = vst [vmem:[%s6789_s6 + $0x108] sm:$0xff] %v3879_v14  ;;  %v3665_v9 = vpop.xlane.xlu1 %3664 }
 0x84b   :  { %v5229_v35 = vpop.eup %5228  ;;  %5234 = vlog2.f32 %v3665_v9 }
 0x84c   :  { %v3787_v50 = vmul.f32 0.6931472, %v5229_v35 }
 0x84d   :  { %v5231_v24 = vpop.eup %5230 }
 0x84e   :  { %v3880_v61 = vsub.f32 %v6342_v1, %v3787_v50  ;;  %v3789_v12 = vmul.f32 0.6931472, %v5231_v24 }
 0x850   :  { %3944 = vst [vmem:[%s6789_s6 + $0x110] sm:$0xff] %v3880_v61  ;;  %v3881_v46 = vsub.f32 %v6348_v40, %v3789_v12  ;;  %v3667_v6 = vpop.xlane.xlu0 %3666 }
 0x851   :  { %5236 = vlog2.f32 %v3667_v6 }
 0x852   :  { %3945 = vst [vmem:[%s6789_s6 + $0x118] sm:$0xff] %v3881_v46  ;;  %v3669_v44 = vpop.xlane.xlu1 %3668 }
 0x853   :  { %v5233_v63 = vpop.eup %5232  ;;  %5238 = vlog2.f32 %v3669_v44 }
 0x854   :  { %v3791_v62 = vmul.f32 0.6931472, %v5233_v63 }
 0x855   :  { %v5235_v55 = vpop.eup %5234 }
 0x856   :  { %v3882_v1 = vsub.f32 %v6354_v13, %v3791_v62  ;;  %v3793_v18 = vmul.f32 0.6931472, %v5235_v55 }
 0x858   :  { %3946 = vst [vmem:[%s6789_s6 + $0x120] sm:$0xff] %v3882_v1  ;;  %v3883_v40 = vsub.f32 %v6360_v23, %v3793_v18 }
 0x85a   :  { %3947 = vst [vmem:[%s6789_s6 + $0x128] sm:$0xff] %v3883_v40  ;;  %v3671_v42 = vpop.xlane.xlu0 %3670 }
 0x85b   :  { %v5237_v54 = vpop.eup %5236  ;;  %5240 = vlog2.f32 %v3671_v42 }
 0x85c   :  { %v3795_v32 = vmul.f32 0.6931472, %v5237_v54 }
 0x85d   :  { %v5239_v31 = vpop.eup %5238 }
 0x85e   :  { %v3884_v59 = vsub.f32 %v6366_v53, %v3795_v32  ;;  %v3797_v29 = vmul.f32 0.6931472, %v5239_v31  ;;  %v3673_v13 = vpop.xlane.xlu1 %3672 }
 0x85f   :  { %5242 = vlog2.f32 %v3673_v13 }
 0x860   :  { %3948 = vst [vmem:[%s6789_s6 + $0x130] sm:$0xff] %v3884_v59  ;;  %v3885_v23 = vsub.f32 %v6372_v34, %v3797_v29  ;;  %v6834_v34 = vld [vmem:[#allocation26_spill] sm:$0xff] }
 0x862   :  { %3949 = vst [vmem:[%s6789_s6 + $0x138] sm:$0xff] %v3885_v23 }
 0x863   :  { %v3675_v4 = vpop.xlane.xlu0 %3674 }
 0x864   :  { %5244 = vlog2.f32 %v3675_v4 }
 0x865   :  { %v5241_v60 = vpop.eup %5240 }
 0x866   :  { %v3799_v39 = vmul.f32 0.6931472, %v5241_v60  ;;  %v3677_v21 = vpop.xlane.xlu1 %3676 }
 0x867   :  { %5246 = vlog2.f32 %v3677_v21 }
 0x868   :  { %v3886_v53 = vsub.f32 %v6380_v22, %v3799_v39 }
 0x869   :  { %v5243_v25 = vpop.eup %5242 }
 0x86a   :  { %3950 = vst [vmem:[%s6789_s6 + $0x140] sm:$0xff] %v3886_v53  ;;  %v3801_v58 = vmul.f32 0.6931472, %v5243_v25 }
 0x86b   :  { %v3679_v48 = vpop.xlane.xlu0 %3678 }
 0x86c   :  { %5248 = vlog2.f32 %v3679_v48  ;;  %v3887_v45 = vsub.f32 %v6834_v34, %v3801_v58 }
 0x86e   :  { %v5245_v57 = vpop.eup %5244  ;;  %3951 = vst [vmem:[%s6789_s6 + $0x148] sm:$0xff] %v3887_v45  ;;  %v3681_v11 = vpop.xlane.xlu1 %3680 }
 0x86f   :  { %v3803_v33 = vmul.f32 0.6931472, %v5245_v57  ;;  %5250 = vlog2.f32 %v3681_v11 }
 0x871   :  { %v3888_v22 = vsub.f32 %v6392_v2, %v3803_v33  ;;  %v5247_v43 = vpop.eup %5246 }
 0x872   :  { %v3805_v3 = vmul.f32 0.6931472, %v5247_v43 }
 0x873   :  { %3952 = vst [vmem:[%s6789_s6 + $0x150] sm:$0xff] %v3888_v22  ;;  %v3683_v49 = vpop.xlane.xlu0 %3682 }
 0x874   :  { %5252 = vlog2.f32 %v3683_v49  ;;  %v3889_v14 = vsub.f32 %v6400_v15, %v3805_v3 }
 0x876   :  { %v5249_v56 = vpop.eup %5248  ;;  %3953 = vst [vmem:[%s6789_s6 + $0x158] sm:$0xff] %v3889_v14  ;;  %v3685_v35 = vpop.xlane.xlu1 %3684 }
 0x877   :  { %v3807_v9 = vmul.f32 0.6931472, %v5249_v56  ;;  %5254 = vlog2.f32 %v3685_v35 }
 0x879   :  { %v3890_v2 = vsub.f32 %v6410_v10, %v3807_v9  ;;  %v5251_v50 = vpop.eup %5250 }
 0x87a   :  { %v3809_v24 = vmul.f32 0.6931472, %v5251_v50 }
 0x87b   :  { %3954 = vst [vmem:[%s6789_s6 + $0x160] sm:$0xff] %v3890_v2  ;;  %v3687_v61 = vpop.xlane.xlu0 %3686 }
 0x87c   :  { %5256 = vlog2.f32 %v3687_v61  ;;  %v3891_v15 = vsub.f32 %v6420_v8, %v3809_v24 }
 0x87e   :  { %v5253_v12 = vpop.eup %5252  ;;  %3955 = vst [vmem:[%s6789_s6 + $0x168] sm:$0xff] %v3891_v15  ;;  %v3689_v6 = vpop.xlane.xlu1 %3688 }
 0x87f   :  { %v3811_v46 = vmul.f32 0.6931472, %v5253_v12  ;;  %5258 = vlog2.f32 %v3689_v6 }
 0x881   :  { %v3892_v10 = vsub.f32 %v6430_v52, %v3811_v46  ;;  %v5255_v44 = vpop.eup %5254 }
 0x882   :  { %v3813_v63 = vmul.f32 0.6931472, %v5255_v44 }
 0x883   :  { %3956 = vst [vmem:[%s6789_s6 + $0x170] sm:$0xff] %v3892_v10  ;;  %v3691_v62 = vpop.xlane.xlu0 %3690 }
 0x884   :  { %5260 = vlog2.f32 %v3691_v62  ;;  %v3893_v8 = vsub.f32 %v6440_v17, %v3813_v63 }
 0x886   :  { %v5257_v55 = vpop.eup %5256  ;;  %3957 = vst [vmem:[%s6789_s6 + $0x178] sm:$0xff] %v3893_v8  ;;  %v3693_v18 = vpop.xlane.xlu1 %3692 }
 0x887   :  { %v3815_v1 = vmul.f32 0.6931472, %v5257_v55  ;;  %5262 = vlog2.f32 %v3693_v18 }
 0x889   :  { %v3894_v52 = vsub.f32 %v6450_v0, %v3815_v1  ;;  %v5259_v40 = vpop.eup %5258 }
 0x88a   :  { %v3817_v42 = vmul.f32 0.6931472, %v5259_v40 }
 0x88b   :  { %3958 = vst [vmem:[%s6789_s6 + $0x180] sm:$0xff] %v3894_v52  ;;  %v3695_v54 = vpop.xlane.xlu0 %3694 }
 0x88c   :  { %5264 = vlog2.f32 %v3695_v54  ;;  %v3895_v17 = vsub.f32 %v6460_v26, %v3817_v42 }
 0x88e   :  { %v5261_v32 = vpop.eup %5260  ;;  %3959 = vst [vmem:[%s6789_s6 + $0x188] sm:$0xff] %v3895_v17  ;;  %v3697_v59 = vpop.xlane.xlu1 %3696 }
 0x88f   :  { %v3819_v31 = vmul.f32 0.6931472, %v5261_v32  ;;  %5266 = vlog2.f32 %v3697_v59 }
 0x891   :  { %v3896_v0 = vsub.f32 %v6470_v7, %v3819_v31  ;;  %v5263_v29 = vpop.eup %5262 }
 0x892   :  { %v3821_v13 = vmul.f32 0.6931472, %v5263_v29 }
 0x893   :  { %3960 = vst [vmem:[%s6789_s6 + $0x190] sm:$0xff] %v3896_v0  ;;  %v3699_v23 = vpop.xlane.xlu0 %3698 }
 0x894   :  { %5268 = vlog2.f32 %v3699_v23  ;;  %v3897_v26 = vsub.f32 %v6480_v37, %v3821_v13 }
 0x896   :  { %v5265_v4 = vpop.eup %5264  ;;  %3961 = vst [vmem:[%s6789_s6 + $0x198] sm:$0xff] %v3897_v26  ;;  %v3701_v39 = vpop.xlane.xlu1 %3700 }
 0x897   :  { %v3823_v60 = vmul.f32 0.6931472, %v5265_v4  ;;  %5270 = vlog2.f32 %v3701_v39 }
 0x899   :  { %v3898_v7 = vsub.f32 %v6490_v20, %v3823_v60  ;;  %v5267_v21 = vpop.eup %5266 }
 0x89a   :  { %v3825_v53 = vmul.f32 0.6931472, %v5267_v21 }
 0x89b   :  { %3962 = vst [vmem:[%s6789_s6 + $0x1a0] sm:$0xff] %v3898_v7  ;;  %v3703_v25 = vpop.xlane.xlu0 %3702 }
 0x89c   :  { %5272 = vlog2.f32 %v3703_v25  ;;  %v3899_v37 = vsub.f32 %v6500_v47, %v3825_v53 }
 0x89e   :  { %v5269_v58 = vpop.eup %5268  ;;  %3963 = vst [vmem:[%s6789_s6 + $0x1a8] sm:$0xff] %v3899_v37  ;;  %v3705_v34 = vpop.xlane.xlu1 %3704 }
 0x89f   :  { %v3827_v48 = vmul.f32 0.6931472, %v5269_v58  ;;  %5274 = vlog2.f32 %v3705_v34 }
 0x8a1   :  { %v3900_v20 = vsub.f32 %v6510_v5, %v3827_v48  ;;  %v5271_v45 = vpop.eup %5270 }
 0x8a2   :  { %v3829_v57 = vmul.f32 0.6931472, %v5271_v45 }
 0x8a3   :  { %3964 = vst [vmem:[%s6789_s6 + $0x1b0] sm:$0xff] %v3900_v20  ;;  %v3707_v33 = vpop.xlane.xlu0 %3706 }
 0x8a4   :  { %5276 = vlog2.f32 %v3707_v33  ;;  %v3901_v47 = vsub.f32 %v6520_v41, %v3829_v57 }
 0x8a6   :  { %v5273_v11 = vpop.eup %5272  ;;  %3965 = vst [vmem:[%s6789_s6 + $0x1b8] sm:$0xff] %v3901_v47  ;;  %v3709_v43 = vpop.xlane.xlu1 %3708 }
 0x8a7   :  { %v3831_v22 = vmul.f32 0.6931472, %v5273_v11  ;;  %5278 = vlog2.f32 %v3709_v43 }
 0x8a8   :  { %v3711_v3 = vpop.xlane.xlu0 %3710 }
 0x8a9   :  { %v3902_v5 = vsub.f32 %v6530_v51, %v3831_v22  ;;  %v5275_v49 = vpop.eup %5274  ;;  %5280 = vlog2.f32 %v3711_v3 }
 0x8aa   :  { %v3833_v14 = vmul.f32 0.6931472, %v5275_v49  ;;  %v3713_v56 = vpop.xlane.xlu1 %3712 }
 0x8ab   :  { %3966 = vst [vmem:[%s6789_s6 + $0x1c0] sm:$0xff] %v3902_v5  ;;  %5282 = vlog2.f32 %v3713_v56 }
 0x8ac   :  { %v3903_v41 = vsub.f32 %v6540_v28, %v3833_v14 }
 0x8ae   :  { %v5277_v9 = vpop.eup %5276  ;;  %3967 = vst [vmem:[%s6789_s6 + $0x1c8] sm:$0xff] %v3903_v41 }
 0x8af   :  { %v3835_v35 = vmul.f32 0.6931472, %v5277_v9 }
 0x8b0   :  { %v3715_v2 = vpop.xlane.xlu0 %3714 }
 0x8b1   :  { %v3904_v51 = vsub.f32 %v6550_v19, %v3835_v35  ;;  %v5279_v50 = vpop.eup %5278  ;;  %5284 = vlog2.f32 %v3715_v2 }
 0x8b2   :  { %v3837_v24 = vmul.f32 0.6931472, %v5279_v50  ;;  %v3717_v61 = vpop.xlane.xlu1 %3716 }
 0x8b3   :  { %3968 = vst [vmem:[%s6789_s6 + $0x1d0] sm:$0xff] %v3904_v51  ;;  %v5281_v15 = vpop.eup %5280  ;;  %5286 = vlog2.f32 %v3717_v61 }
 0x8b4   :  { %v3905_v28 = vsub.f32 %v6560_v38, %v3837_v24  ;;  %v3839_v12 = vmul.f32 0.6931472, %v5281_v15 }
 0x8b5   :  { %v5283_v46 = vpop.eup %5282 }
 0x8b6   :  { %3969 = vst [vmem:[%s6789_s6 + $0x1d8] sm:$0xff] %v3905_v28  ;;  %v3906_v19 = vsub.f32 %v6565_v27, %v3839_v12  ;;  %v3841_v6 = vmul.f32 0.6931472, %v5283_v46 }
 0x8b8   :  { %3970 = vst [vmem:[%s6789_s6 + $0x1e0] sm:$0xff] %v3906_v19  ;;  %v3907_v10 = vsub.f32 %v6574_v30, %v3841_v6 }
 0x8ba   :  { %3971 = vst [vmem:[%s6789_s6 + $0x1e8] sm:$0xff] %v3907_v10 }
 0x8bb   :  { %v5285_v38 = vpop.eup %5284 }
 0x8bc   :  { %v3843_v44 = vmul.f32 0.6931472, %v5285_v38 }
 0x8bd   :  { %v5287_v63 = vpop.eup %5286 }
 0x8be   :  { %v3908_v62 = vsub.f32 %v6585_v16, %v3843_v44  ;;  %v3845_v8 = vmul.f32 0.6931472, %v5287_v63 }
 0x8c0   :  { %3972 = vst [vmem:[%s6789_s6 + $0x1f0] sm:$0xff] %v3908_v62  ;;  %v3909_v27 = vsub.f32 %v6594_v36, %v3845_v8 }
 0x8c2   :  { %3973 = vst [vmem:[%s6789_s6 + $0x1f8] sm:$0xff] %v3909_v27 }
 0x8c3   :  { %3978 = vsyncpa [#allocation3], 1 }
 0x8c4   :  { %3979 = vsyncpa [#allocation5], 1 }
 0x8c5   :  { %3980 = vsyncpa [#allocation8], 1 }

</bundles_post_ra>
